<compile_context>
chip_gen: v5e
topology: v5e:2x2
jax: 0.10.0
libtpu: 0.0.40
codegen_flags: <defaults>
</compile_context>

<pallas_src>
import functools
import math

import jax
import jax.numpy as jnp
from jax import lax
from jax.experimental import pallas as pl
from jax.experimental.pallas import tpu as pltpu


MATMUL_DTYPE = jnp.bfloat16   # MXU operand dtype; accumulation stays f32.
LN_EPS = 1e-5


# ----------------------------- Pallas kernel ------------------------------- #

def _decoder_layer_kernel(
        x_ref, qpos_ref, memk_ref, memv_ref,
        swq_ref, sbq_ref, swk_ref, sbk_ref, swv_ref, sbv_ref, swo_ref, sbo_ref,
        ln1g_ref, ln1b_ref,
        cwq_ref, cbq_ref, cwk_ref, cbk_ref, cwv_ref, cbv_ref, cwo_ref, cbo_ref,
        ln2g_ref, ln2b_ref,
        w1_ref, b1_ref, w2_ref, b2_ref, ln3g_ref, ln3b_ref,
        ng_ref, nb_ref,
        out_ref, inter_ref,
        *, nhead, eps):
    """One full post-norm decoder layer for a single batch element.

    out_ref   <- layer output (feeds the next layer)
    inter_ref <- shared-final-LayerNorm(layer output)  (return_intermediate)
    The 1/sqrt(dh) attention scale is pre-folded into Wq / bq by the caller.
    """
    f32 = jnp.float32
    bf = MATMUL_DTYPE

    def layer_norm(y, g_ref, b_ref):
        mu = jnp.mean(y, axis=-1, keepdims=True)
        var = jnp.mean(jnp.square(y - mu), axis=-1, keepdims=True)
        return (y - mu) * lax.rsqrt(var + eps) * g_ref[...] + b_ref[...]

    def mha(q_in, k_in, v_in, res,
            wq_ref, bq_ref, wk_ref, bk_ref, wv_ref, bv_ref, wo_ref, bo_ref,
            g_ref, b_ref):
        """res + MHA(q_in, k_in, v_in), then LayerNorm.  q/k/v inputs bf16."""
        q = jnp.dot(q_in, wq_ref[...], preferred_element_type=f32) + bq_ref[...]
        k = jnp.dot(k_in, wk_ref[...], preferred_element_type=f32) + bk_ref[...]
        v = jnp.dot(v_in, wv_ref[...], preferred_element_type=f32) + bv_ref[...]
        D = q.shape[-1]
        dh = D // nhead
        qb, kb, vb = q.astype(bf), k.astype(bf), v.astype(bf)
        wo = wo_ref[...]                               # [D, D] bf16, one load
        # Output projection folded into the head loop:
        #   concat_h(a_h) @ Wo == sum_h a_h @ Wo[h*dh:(h+1)*dh, :]
        # so no lane-axis concatenate / XLU shuffles are needed.
        y = res + bo_ref[...]
        for h in range(nhead):                         # static unroll, dh tiny
            lo = h * dh
            qh = qb[:, lo:lo + dh]                     # [Tq, dh]
            kh = kb[:, lo:lo + dh]                     # [S,  dh]
            vh = vb[:, lo:lo + dh]                     # [S,  dh]
            # q @ k^T as a contraction — no materialized transpose.
            s = lax.dot_general(qh, kh, (((1,), (1,)), ((), ())),
                                preferred_element_type=f32)        # [Tq, S]
            m = jnp.max(s, axis=-1, keepdims=True)
            p = jnp.exp(s - m)
            p = p * pl.reciprocal(jnp.sum(p, axis=-1, keepdims=True),
                                  approx=True)                      # EUP divide
            ah = jnp.dot(p.astype(bf), vh, preferred_element_type=f32)
            y = y + jnp.dot(ah.astype(bf), wo[lo:lo + dh, :],
                            preferred_element_type=f32)
        return layer_norm(y, g_ref, b_ref)

    x = x_ref[0]                                      # [T, D] f32 (residual)
    qpos = qpos_ref[0]                                # [T, D] f32
    memk = memk_ref[0]                                # [S, D] bf16 (memory+pos)
    memv = memv_ref[0]                                # [S, D] bf16 (memory)

    # --- self-attention block: q = k = x + query_pos, v = x ---
    qk_in = (x + qpos).astype(bf)
    x1 = mha(qk_in, qk_in, x.astype(bf), x,
             swq_ref, sbq_ref, swk_ref, sbk_ref, swv_ref, sbv_ref,
             swo_ref, sbo_ref, ln1g_ref, ln1b_ref)

    # --- cross-attention block: q = x1 + query_pos, k = memory+pos, v = memory
    x2 = mha((x1 + qpos).astype(bf), memk, memv, x1,
             cwq_ref, cbq_ref, cwk_ref, cbk_ref, cwv_ref, cbv_ref,
             cwo_ref, cbo_ref, ln2g_ref, ln2b_ref)

    # --- feed-forward block: LN(x2 + W2 relu(x2 W1 + b1) + b2) ---
    h = jnp.dot(x2.astype(bf), w1_ref[...], preferred_element_type=f32) + b1_ref[...]
    h = jnp.maximum(h, 0.0)
    y = jnp.dot(h.astype(bf), w2_ref[...], preferred_element_type=f32) + b2_ref[...]
    x3 = layer_norm(x2 + y, ln3g_ref, ln3b_ref)

    out_ref[0] = x3                                   # feeds next layer
    inter_ref[0] = layer_norm(x3, ng_ref, nb_ref)     # decoder-norm(output)


# ------------------------------ wrapper ------------------------------------ #

def fused_decoder_layer(x, qpos, mem_k, mem_v, lp, norm_g, norm_b, nhead,
                        eps=LN_EPS):
    """x/qpos: [B,T,D] f32; mem_k/mem_v: [B,S,D] bf16 -> (out, normed) f32."""
    B, T, D = x.shape
    S = mem_k.shape[1]
    F = lp["w1"].shape[1]
    sa, ca = lp["self_attn"], lp["cross_attn"]
    act3 = lambda i: (i, 0, 0)
    c2 = lambda i: (0, 0)
    w_dd = pl.BlockSpec((D, D), c2)
    v_d = pl.BlockSpec((1, D), c2)

    # TODO(synk): at production sizes mark the constant weight specs
    # single-buffered (pipeline_mode=pl.Buffered(1)) and set vmem_limit_bytes.
    return pl.pallas_call(
        functools.partial(_decoder_layer_kernel, nhead=nhead, eps=eps),
        out_shape=(jax.ShapeDtypeStruct((B, T, D), jnp.float32),
                   jax.ShapeDtypeStruct((B, T, D), jnp.float32)),
        grid=(B,),
        in_specs=[
            pl.BlockSpec((1, T, D), act3),                     # x (residual)
            pl.BlockSpec((1, T, D), act3),                     # query_pos
            pl.BlockSpec((1, S, D), act3),                     # memory + pos
            pl.BlockSpec((1, S, D), act3),                     # memory
            w_dd, v_d, w_dd, v_d, w_dd, v_d, w_dd, v_d, v_d, v_d,  # self-attn
            w_dd, v_d, w_dd, v_d, w_dd, v_d, w_dd, v_d, v_d, v_d,  # cross-attn
            pl.BlockSpec((D, F), c2), pl.BlockSpec((1, F), c2),    # w1, b1
            pl.BlockSpec((F, D), c2), v_d,                         # w2, b2
            v_d, v_d,                                              # ln3
            v_d, v_d,                                              # final norm
        ],
        out_specs=(pl.BlockSpec((1, T, D), act3),
                   pl.BlockSpec((1, T, D), act3)),
        compiler_params=pltpu.CompilerParams(
            dimension_semantics=("parallel",)),        # megacore on v7x
    )(x, qpos, mem_k, mem_v,
      sa["wq"], sa["bq"], sa["wk"], sa["bk"], sa["wv"], sa["bv"],
      sa["wo"], sa["bo"], lp["ln1_g"], lp["ln1_b"],
      ca["wq"], ca["bq"], ca["wk"], ca["bk"], ca["wv"], ca["bv"],
      ca["wo"], ca["bo"], lp["ln2_g"], lp["ln2_b"],
      lp["w1"], lp["b1"], lp["w2"], lp["b2"], lp["ln3_g"], lp["ln3_b"],
      norm_g, norm_b)


# --------------------- one-time parameter preparation ---------------------- #

def prepare_params(params, nhead):
    """Hoisted out of the jitted forward: fold 1/sqrt(dh) into Wq/bq, cast
    matmul weights to bf16, make biases / LN params 2-D for the kernel."""
    bf = MATMUL_DTYPE
    D = params["norm_g"].shape[0]
    scale = 1.0 / math.sqrt(D // nhead)

    def prep_mha(p):
        return {
            "wq": (p["wq"] * scale).astype(bf),
            "bq": (p["bq"] * scale).reshape(1, -1),
            "wk": p["wk"].astype(bf), "bk": p["bk"].reshape(1, -1),
            "wv": p["wv"].astype(bf), "bv": p["bv"].reshape(1, -1),
            "wo": p["wo"].astype(bf), "bo": p["bo"].reshape(1, -1),
        }

    layers = []
    for lp in params["layers"]:
        layers.append({
            "self_attn": prep_mha(lp["self_attn"]),
            "cross_attn": prep_mha(lp["cross_attn"]),
            "w1": lp["w1"].astype(bf), "b1": lp["b1"].reshape(1, -1),
            "w2": lp["w2"].astype(bf), "b2": lp["b2"].reshape(1, -1),
            "ln1_g": lp["ln1_g"].reshape(1, -1), "ln1_b": lp["ln1_b"].reshape(1, -1),
            "ln2_g": lp["ln2_g"].reshape(1, -1), "ln2_b": lp["ln2_b"].reshape(1, -1),
            "ln3_g": lp["ln3_g"].reshape(1, -1), "ln3_b": lp["ln3_b"].reshape(1, -1),
        })
    return {
        "layers": layers,
        "norm_g": params["norm_g"].reshape(1, -1),
        "norm_b": params["norm_b"].reshape(1, -1),
    }


# ------------------------- decoder (glue in JAX) --------------------------- #

def transformer_decoder(tgt, memory, prepped, pos, query_pos, nhead,
                        return_intermediate=True):
    """Mirrors TransformerDecoder.forward (masks None, dropout eval-mode)."""
    # TODO(synk): tgt_mask / memory_mask / key_padding_mask paths are not
    # implemented (passed as None in this configuration); dropout is identity.
    output = jnp.transpose(tgt, (1, 0, 2))          # [B, T, D]
    memory_b = jnp.transpose(memory, (1, 0, 2))     # [B, S, D]
    pos_b = jnp.transpose(pos, (1, 0, 2))
    qpos_b = jnp.transpose(query_pos, (1, 0, 2))
    # Hoisted across layers; matmul-only operands pre-cast to bf16 (halves DMA).
    mem_k = (memory_b + pos_b).astype(MATMUL_DTYPE)
    mem_v = memory_b.astype(MATMUL_DTYPE)

    intermediate = []
    for lp in prepped["layers"]:
        output, normed = fused_decoder_layer(
            output, qpos_b, mem_k, mem_v, lp,
            prepped["norm_g"], prepped["norm_b"], nhead)
        intermediate.append(jnp.transpose(normed, (1, 0, 2)))   # [T, B, D]

    if return_intermediate:
        # Last entry already equals norm(final output) — exactly the value the
        # PyTorch code pops and re-appends.
        return jnp.stack(intermediate)              # [num_layers, T, B, D]
    return intermediate[-1][None]                   # [1, T, B, D]


# ------------------------------ param init --------------------------------- #

def init_params(key, d_model, nhead, dim_ff, num_layers):
    def lin_w(k, fan_in, fan_out):
        return (jax.random.normal(k, (fan_in, fan_out), jnp.float32)
                * (1.0 / math.sqrt(fan_in)))

    layers = []
    for li in range(num_layers):
        kk = jax.random.split(jax.random.fold_in(key, li), 12)

        def mha(ks):
            return {
                "wq": lin_w(ks[0], d_model, d_model),
                "bq": jnp.zeros((d_model,), jnp.float32),
                "wk": lin_w(ks[1], d_model, d_model),
                "bk": jnp.zeros((d_model,), jnp.float32),
                "wv": lin_w(ks[2], d_model, d_model),
                "bv": jnp.zeros((d_model,), jnp.float32),
                "wo": lin_w(ks[3], d_model, d_model),
                "bo": jnp.zeros((d_model,), jnp.float32),
            }

        layers.append({
            "self_attn": mha(kk[0:4]),
            "cross_attn": mha(kk[4:8]),
            "w1": lin_w(kk[8], d_model, dim_ff),
            "b1": jnp.zeros((dim_ff,), jnp.float32),
            "w2": lin_w(kk[9], dim_ff, d_model),
            "b2": jnp.zeros((d_model,), jnp.float32),
            "ln1_g": jnp.ones((d_model,), jnp.float32),
            "ln1_b": jnp.zeros((d_model,), jnp.float32),
            "ln2_g": jnp.ones((d_model,), jnp.float32),
            "ln2_b": jnp.zeros((d_model,), jnp.float32),
            "ln3_g": jnp.ones((d_model,), jnp.float32),
            "ln3_b": jnp.zeros((d_model,), jnp.float32),
        })
    return {
        "layers": layers,
        "norm_g": jnp.ones((d_model,), jnp.float32),
        "norm_b": jnp.zeros((d_model,), jnp.float32),
    }


# ---------------------------------- main ----------------------------------- #

if __name__ == "__main__":
    d_model, nhead, dim_ff, num_layers = 32, 4, 64, 2
    T, S, B = 8, 16, 2                     # num queries, memory length, batch

    key = jax.random.PRNGKey(0)
    k_tgt, k_mem, k_pos, k_qpos, k_par = jax.random.split(key, 5)

    tgt = jax.random.normal(k_tgt, (T, B, d_model), jnp.float32)
    memory = jax.random.normal(k_mem, (S, B, d_model), jnp.float32)
    pos = jax.random.normal(k_pos, (S, B, d_model), jnp.float32)
    query_pos = jax.random.normal(k_qpos, (T, B, d_model), jnp.float32)

    params = init_params(k_par, d_model, nhead, dim_ff, num_layers)
    prepped = prepare_params(params, nhead)      # one-time weight prep

    fwd = jax.jit(functools.partial(transformer_decoder, nhead=nhead,
                                    return_intermediate=True))
    out = fwd(tgt, memory, prepped, pos, query_pos)
    out = jax.block_until_ready(out)
    assert out.shape == (num_layers, T, B, d_model), out.shape
    assert jnp.all(jnp.isfinite(out))
    print("KERNEL_OK")
</pallas_src>

<mosaic_0001>
module attributes {stable_mosaic.version = 11 : i64} {
  func.func @_decoder_layer_kernel(%arg0: i32, %arg1: memref<1x8x32xf32, #tpu.memory_space<vmem>>, %arg2: memref<1x8x32xf32, #tpu.memory_space<vmem>>, %arg3: memref<1x16x32xbf16, #tpu.memory_space<vmem>>, %arg4: memref<1x16x32xbf16, #tpu.memory_space<vmem>>, %arg5: memref<32x32xbf16, #tpu.memory_space<vmem>>, %arg6: memref<1x32xf32, #tpu.memory_space<vmem>>, %arg7: memref<32x32xbf16, #tpu.memory_space<vmem>>, %arg8: memref<1x32xf32, #tpu.memory_space<vmem>>, %arg9: memref<32x32xbf16, #tpu.memory_space<vmem>>, %arg10: memref<1x32xf32, #tpu.memory_space<vmem>>, %arg11: memref<32x32xbf16, #tpu.memory_space<vmem>>, %arg12: memref<1x32xf32, #tpu.memory_space<vmem>>, %arg13: memref<1x32xf32, #tpu.memory_space<vmem>>, %arg14: memref<1x32xf32, #tpu.memory_space<vmem>>, %arg15: memref<32x32xbf16, #tpu.memory_space<vmem>>, %arg16: memref<1x32xf32, #tpu.memory_space<vmem>>, %arg17: memref<32x32xbf16, #tpu.memory_space<vmem>>, %arg18: memref<1x32xf32, #tpu.memory_space<vmem>>, %arg19: memref<32x32xbf16, #tpu.memory_space<vmem>>, %arg20: memref<1x32xf32, #tpu.memory_space<vmem>>, %arg21: memref<32x32xbf16, #tpu.memory_space<vmem>>, %arg22: memref<1x32xf32, #tpu.memory_space<vmem>>, %arg23: memref<1x32xf32, #tpu.memory_space<vmem>>, %arg24: memref<1x32xf32, #tpu.memory_space<vmem>>, %arg25: memref<32x64xbf16, #tpu.memory_space<vmem>>, %arg26: memref<1x64xf32, #tpu.memory_space<vmem>>, %arg27: memref<64x32xbf16, #tpu.memory_space<vmem>>, %arg28: memref<1x32xf32, #tpu.memory_space<vmem>>, %arg29: memref<1x32xf32, #tpu.memory_space<vmem>>, %arg30: memref<1x32xf32, #tpu.memory_space<vmem>>, %arg31: memref<1x32xf32, #tpu.memory_space<vmem>>, %arg32: memref<1x32xf32, #tpu.memory_space<vmem>>, %arg33: memref<1x8x32xf32, #tpu.memory_space<vmem>>, %arg34: memref<1x8x32xf32, #tpu.memory_space<vmem>>) attributes {dimension_semantics = [#tpu.dimension_semantics<parallel>], iteration_bounds = array<i64: 2>, scalar_prefetch = 0 : i64, scratch_operands = 0 : i64, tpu.core_type = #tpu.core_type<tc>, window_params = [{transform_indices = @transform_0, window_bounds = array<i64: 1, 8, 32>}, {transform_indices = @transform_1, window_bounds = array<i64: 1, 8, 32>}, {transform_indices = @transform_2, window_bounds = array<i64: 1, 16, 32>}, {transform_indices = @transform_3, window_bounds = array<i64: 1, 16, 32>}, {pipeline_mode = #tpu.pipeline_mode<synchronous>, transform_indices = @transform_4, window_bounds = array<i64: 32, 32>}, {pipeline_mode = #tpu.pipeline_mode<synchronous>, transform_indices = @transform_5, window_bounds = array<i64: 1, 32>}, {pipeline_mode = #tpu.pipeline_mode<synchronous>, transform_indices = @transform_6, window_bounds = array<i64: 32, 32>}, {pipeline_mode = #tpu.pipeline_mode<synchronous>, transform_indices = @transform_7, window_bounds = array<i64: 1, 32>}, {pipeline_mode = #tpu.pipeline_mode<synchronous>, transform_indices = @transform_8, window_bounds = array<i64: 32, 32>}, {pipeline_mode = #tpu.pipeline_mode<synchronous>, transform_indices = @transform_9, window_bounds = array<i64: 1, 32>}, {pipeline_mode = #tpu.pipeline_mode<synchronous>, transform_indices = @transform_10, window_bounds = array<i64: 32, 32>}, {pipeline_mode = #tpu.pipeline_mode<synchronous>, transform_indices = @transform_11, window_bounds = array<i64: 1, 32>}, {pipeline_mode = #tpu.pipeline_mode<synchronous>, transform_indices = @transform_12, window_bounds = array<i64: 1, 32>}, {pipeline_mode = #tpu.pipeline_mode<synchronous>, transform_indices = @transform_13, window_bounds = array<i64: 1, 32>}, {pipeline_mode = #tpu.pipeline_mode<synchronous>, transform_indices = @transform_14, window_bounds = array<i64: 32, 32>}, {pipeline_mode = #tpu.pipeline_mode<synchronous>, transform_indices = @transform_15, window_bounds = array<i64: 1, 32>}, {pipeline_mode = #tpu.pipeline_mode<synchronous>, transform_indices = @transform_16, window_bounds = array<i64: 32, 32>}, {pipeline_mode = #tpu.pipeline_mode<synchronous>, transform_indices = @transform_17, window_bounds = array<i64: 1, 32>}, {pipeline_mode = #tpu.pipeline_mode<synchronous>, transform_indices = @transform_18, window_bounds = array<i64: 32, 32>}, {pipeline_mode = #tpu.pipeline_mode<synchronous>, transform_indices = @transform_19, window_bounds = array<i64: 1, 32>}, {pipeline_mode = #tpu.pipeline_mode<synchronous>, transform_indices = @transform_20, window_bounds = array<i64: 32, 32>}, {pipeline_mode = #tpu.pipeline_mode<synchronous>, transform_indices = @transform_21, window_bounds = array<i64: 1, 32>}, {pipeline_mode = #tpu.pipeline_mode<synchronous>, transform_indices = @transform_22, window_bounds = array<i64: 1, 32>}, {pipeline_mode = #tpu.pipeline_mode<synchronous>, transform_indices = @transform_23, window_bounds = array<i64: 1, 32>}, {pipeline_mode = #tpu.pipeline_mode<synchronous>, transform_indices = @transform_24, window_bounds = array<i64: 32, 64>}, {pipeline_mode = #tpu.pipeline_mode<synchronous>, transform_indices = @transform_25, window_bounds = array<i64: 1, 64>}, {pipeline_mode = #tpu.pipeline_mode<synchronous>, transform_indices = @transform_26, window_bounds = array<i64: 64, 32>}, {pipeline_mode = #tpu.pipeline_mode<synchronous>, transform_indices = @transform_27, window_bounds = array<i64: 1, 32>}, {pipeline_mode = #tpu.pipeline_mode<synchronous>, transform_indices = @transform_28, window_bounds = array<i64: 1, 32>}, {pipeline_mode = #tpu.pipeline_mode<synchronous>, transform_indices = @transform_29, window_bounds = array<i64: 1, 32>}, {pipeline_mode = #tpu.pipeline_mode<synchronous>, transform_indices = @transform_30, window_bounds = array<i64: 1, 32>}, {pipeline_mode = #tpu.pipeline_mode<synchronous>, transform_indices = @transform_31, window_bounds = array<i64: 1, 32>}, {transform_indices = @transform_32, window_bounds = array<i64: 1, 8, 32>}, {transform_indices = @transform_33, window_bounds = array<i64: 1, 8, 32>}]} {
    %c0 = arith.constant 0 : index
    %c0_0 = arith.constant 0 : index
    %c0_1 = arith.constant 0 : index
    %0 = vector.load %arg1[%c0, %c0_0, %c0_1] : memref<1x8x32xf32, #tpu.memory_space<vmem>>, vector<1x8x32xf32>
    %1 = vector.shape_cast %0 : vector<1x8x32xf32> to vector<8x32xf32>
    %c0_2 = arith.constant 0 : index
    %c0_3 = arith.constant 0 : index
    %c0_4 = arith.constant 0 : index
    %2 = vector.load %arg2[%c0_2, %c0_3, %c0_4] : memref<1x8x32xf32, #tpu.memory_space<vmem>>, vector<1x8x32xf32>
    %3 = vector.shape_cast %2 : vector<1x8x32xf32> to vector<8x32xf32>
    %c0_5 = arith.constant 0 : index
    %c0_6 = arith.constant 0 : index
    %c0_7 = arith.constant 0 : index
    %4 = vector.load %arg3[%c0_5, %c0_6, %c0_7] : memref<1x16x32xbf16, #tpu.memory_space<vmem>>, vector<1x16x32xbf16>
    %5 = vector.shape_cast %4 : vector<1x16x32xbf16> to vector<16x32xbf16>
    %c0_8 = arith.constant 0 : index
    %c0_9 = arith.constant 0 : index
    %c0_10 = arith.constant 0 : index
    %6 = vector.load %arg4[%c0_8, %c0_9, %c0_10] : memref<1x16x32xbf16, #tpu.memory_space<vmem>>, vector<1x16x32xbf16>
    %7 = vector.shape_cast %6 : vector<1x16x32xbf16> to vector<16x32xbf16>
    %8 = arith.addf %1, %3 : vector<8x32xf32>
    %9 = arith.truncf %8 : vector<8x32xf32> to vector<8x32xbf16>
    %10 = arith.truncf %1 : vector<8x32xf32> to vector<8x32xbf16>
    %c0_11 = arith.constant 0 : index
    %c0_12 = arith.constant 0 : index
    %11 = vector.load %arg5[%c0_11, %c0_12] : memref<32x32xbf16, #tpu.memory_space<vmem>>, vector<32x32xbf16>
    %cst = arith.constant dense<0.000000e+00> : vector<8x32xf32>
    %12 = tpu.matmul %9, %11, %cst {dimension_numbers = #tpu.dot_dimension_numbers<[1], [0], [0], [1], [0, 0, 1, 1], [], []>} : vector<8x32xbf16>, vector<32x32xbf16>, vector<8x32xf32> -> vector<8x32xf32>
    %c0_13 = arith.constant 0 : index
    %c0_14 = arith.constant 0 : index
    %13 = vector.load %arg6[%c0_13, %c0_14] : memref<1x32xf32, #tpu.memory_space<vmem>>, vector<1x32xf32>
    %14 = vector.broadcast %13 : vector<1x32xf32> to vector<8x32xf32>
    %15 = arith.addf %12, %14 : vector<8x32xf32>
    %c0_15 = arith.constant 0 : index
    %c0_16 = arith.constant 0 : index
    %16 = vector.load %arg7[%c0_15, %c0_16] : memref<32x32xbf16, #tpu.memory_space<vmem>>, vector<32x32xbf16>
    %cst_17 = arith.constant dense<0.000000e+00> : vector<8x32xf32>
    %17 = tpu.matmul %9, %16, %cst_17 {dimension_numbers = #tpu.dot_dimension_numbers<[1], [0], [0], [1], [0, 0, 1, 1], [], []>} : vector<8x32xbf16>, vector<32x32xbf16>, vector<8x32xf32> -> vector<8x32xf32>
    %c0_18 = arith.constant 0 : index
    %c0_19 = arith.constant 0 : index
    %18 = vector.load %arg8[%c0_18, %c0_19] : memref<1x32xf32, #tpu.memory_space<vmem>>, vector<1x32xf32>
    %19 = vector.broadcast %18 : vector<1x32xf32> to vector<8x32xf32>
    %20 = arith.addf %17, %19 : vector<8x32xf32>
    %c0_20 = arith.constant 0 : index
    %c0_21 = arith.constant 0 : index
    %21 = vector.load %arg9[%c0_20, %c0_21] : memref<32x32xbf16, #tpu.memory_space<vmem>>, vector<32x32xbf16>
    %cst_22 = arith.constant dense<0.000000e+00> : vector<8x32xf32>
    %22 = tpu.matmul %10, %21, %cst_22 {dimension_numbers = #tpu.dot_dimension_numbers<[1], [0], [0], [1], [0, 0, 1, 1], [], []>} : vector<8x32xbf16>, vector<32x32xbf16>, vector<8x32xf32> -> vector<8x32xf32>
    %c0_23 = arith.constant 0 : index
    %c0_24 = arith.constant 0 : index
    %23 = vector.load %arg10[%c0_23, %c0_24] : memref<1x32xf32, #tpu.memory_space<vmem>>, vector<1x32xf32>
    %24 = vector.broadcast %23 : vector<1x32xf32> to vector<8x32xf32>
    %25 = arith.addf %22, %24 : vector<8x32xf32>
    %26 = arith.truncf %15 : vector<8x32xf32> to vector<8x32xbf16>
    %27 = arith.truncf %20 : vector<8x32xf32> to vector<8x32xbf16>
    %28 = arith.truncf %25 : vector<8x32xf32> to vector<8x32xbf16>
    %c0_25 = arith.constant 0 : index
    %c0_26 = arith.constant 0 : index
    %29 = vector.load %arg11[%c0_25, %c0_26] : memref<32x32xbf16, #tpu.memory_space<vmem>>, vector<32x32xbf16>
    %c0_27 = arith.constant 0 : index
    %c0_28 = arith.constant 0 : index
    %30 = vector.load %arg12[%c0_27, %c0_28] : memref<1x32xf32, #tpu.memory_space<vmem>>, vector<1x32xf32>
    %31 = vector.broadcast %30 : vector<1x32xf32> to vector<8x32xf32>
    %32 = arith.addf %1, %31 : vector<8x32xf32>
    %33 = vector.extract_strided_slice %26 {offsets = [0, 0], sizes = [8, 8], strides = [1, 1]} : vector<8x32xbf16> to vector<8x8xbf16>
    %34 = vector.extract_strided_slice %27 {offsets = [0, 0], sizes = [8, 8], strides = [1, 1]} : vector<8x32xbf16> to vector<8x8xbf16>
    %35 = vector.extract_strided_slice %28 {offsets = [0, 0], sizes = [8, 8], strides = [1, 1]} : vector<8x32xbf16> to vector<8x8xbf16>
    %cst_29 = arith.constant dense<0.000000e+00> : vector<8x8xf32>
    %36 = tpu.matmul %33, %34, %cst_29 {dimension_numbers = #tpu.dot_dimension_numbers<[1], [1], [0], [0], [0, 0, 1, 0], [], []>} : vector<8x8xbf16>, vector<8x8xbf16>, vector<8x8xf32> -> vector<8x8xf32>
    %cst_30 = arith.constant dense<0xFF800000> : vector<8xf32>
    %37 = vector.multi_reduction <maximumf>, %36, %cst_30 [1] : vector<8x8xf32> to vector<8xf32>
    %38 = vector.shape_cast %37 : vector<8xf32> to vector<8x1xf32>
    %39 = vector.broadcast %38 : vector<8x1xf32> to vector<8x8xf32>
    %40 = arith.subf %36, %39 : vector<8x8xf32>
    %41 = math.exp %40 : vector<8x8xf32>
    %cst_31 = arith.constant dense<0.000000e+00> : vector<8xf32>
    %42 = vector.multi_reduction <add>, %41, %cst_31 [1] : vector<8x8xf32> to vector<8xf32>
    %43 = vector.shape_cast %42 : vector<8xf32> to vector<8x1xf32>
    %44 = tpu.reciprocal %43 {approx = true} : vector<8x1xf32> -> vector<8x1xf32>
    %45 = vector.broadcast %44 : vector<8x1xf32> to vector<8x8xf32>
    %46 = arith.mulf %41, %45 : vector<8x8xf32>
    %47 = arith.truncf %46 : vector<8x8xf32> to vector<8x8xbf16>
    %cst_32 = arith.constant dense<0.000000e+00> : vector<8x8xf32>
    %48 = tpu.matmul %47, %35, %cst_32 {dimension_numbers = #tpu.dot_dimension_numbers<[1], [0], [0], [1], [0, 0, 1, 1], [], []>} : vector<8x8xbf16>, vector<8x8xbf16>, vector<8x8xf32> -> vector<8x8xf32>
    %49 = arith.truncf %48 : vector<8x8xf32> to vector<8x8xbf16>
    %50 = vector.extract_strided_slice %29 {offsets = [0, 0], sizes = [8, 32], strides = [1, 1]} : vector<32x32xbf16> to vector<8x32xbf16>
    %cst_33 = arith.constant dense<0.000000e+00> : vector<8x32xf32>
    %51 = tpu.matmul %49, %50, %cst_33 {dimension_numbers = #tpu.dot_dimension_numbers<[1], [0], [0], [1], [0, 0, 1, 1], [], []>} : vector<8x8xbf16>, vector<8x32xbf16>, vector<8x32xf32> -> vector<8x32xf32>
    %52 = arith.addf %32, %51 : vector<8x32xf32>
    %53 = vector.extract_strided_slice %26 {offsets = [0, 8], sizes = [8, 8], strides = [1, 1]} : vector<8x32xbf16> to vector<8x8xbf16>
    %54 = vector.extract_strided_slice %27 {offsets = [0, 8], sizes = [8, 8], strides = [1, 1]} : vector<8x32xbf16> to vector<8x8xbf16>
    %55 = vector.extract_strided_slice %28 {offsets = [0, 8], sizes = [8, 8], strides = [1, 1]} : vector<8x32xbf16> to vector<8x8xbf16>
    %cst_34 = arith.constant dense<0.000000e+00> : vector<8x8xf32>
    %56 = tpu.matmul %53, %54, %cst_34 {dimension_numbers = #tpu.dot_dimension_numbers<[1], [1], [0], [0], [0, 0, 1, 0], [], []>} : vector<8x8xbf16>, vector<8x8xbf16>, vector<8x8xf32> -> vector<8x8xf32>
    %cst_35 = arith.constant dense<0xFF800000> : vector<8xf32>
    %57 = vector.multi_reduction <maximumf>, %56, %cst_35 [1] : vector<8x8xf32> to vector<8xf32>
    %58 = vector.shape_cast %57 : vector<8xf32> to vector<8x1xf32>
    %59 = vector.broadcast %58 : vector<8x1xf32> to vector<8x8xf32>
    %60 = arith.subf %56, %59 : vector<8x8xf32>
    %61 = math.exp %60 : vector<8x8xf32>
    %cst_36 = arith.constant dense<0.000000e+00> : vector<8xf32>
    %62 = vector.multi_reduction <add>, %61, %cst_36 [1] : vector<8x8xf32> to vector<8xf32>
    %63 = vector.shape_cast %62 : vector<8xf32> to vector<8x1xf32>
    %64 = tpu.reciprocal %63 {approx = true} : vector<8x1xf32> -> vector<8x1xf32>
    %65 = vector.broadcast %64 : vector<8x1xf32> to vector<8x8xf32>
    %66 = arith.mulf %61, %65 : vector<8x8xf32>
    %67 = arith.truncf %66 : vector<8x8xf32> to vector<8x8xbf16>
    %cst_37 = arith.constant dense<0.000000e+00> : vector<8x8xf32>
    %68 = tpu.matmul %67, %55, %cst_37 {dimension_numbers = #tpu.dot_dimension_numbers<[1], [0], [0], [1], [0, 0, 1, 1], [], []>} : vector<8x8xbf16>, vector<8x8xbf16>, vector<8x8xf32> -> vector<8x8xf32>
    %69 = arith.truncf %68 : vector<8x8xf32> to vector<8x8xbf16>
    %70 = vector.extract_strided_slice %29 {offsets = [8, 0], sizes = [8, 32], strides = [1, 1]} : vector<32x32xbf16> to vector<8x32xbf16>
    %cst_38 = arith.constant dense<0.000000e+00> : vector<8x32xf32>
    %71 = tpu.matmul %69, %70, %cst_38 {dimension_numbers = #tpu.dot_dimension_numbers<[1], [0], [0], [1], [0, 0, 1, 1], [], []>} : vector<8x8xbf16>, vector<8x32xbf16>, vector<8x32xf32> -> vector<8x32xf32>
    %72 = arith.addf %52, %71 : vector<8x32xf32>
    %73 = vector.extract_strided_slice %26 {offsets = [0, 16], sizes = [8, 8], strides = [1, 1]} : vector<8x32xbf16> to vector<8x8xbf16>
    %74 = vector.extract_strided_slice %27 {offsets = [0, 16], sizes = [8, 8], strides = [1, 1]} : vector<8x32xbf16> to vector<8x8xbf16>
    %75 = vector.extract_strided_slice %28 {offsets = [0, 16], sizes = [8, 8], strides = [1, 1]} : vector<8x32xbf16> to vector<8x8xbf16>
    %cst_39 = arith.constant dense<0.000000e+00> : vector<8x8xf32>
    %76 = tpu.matmul %73, %74, %cst_39 {dimension_numbers = #tpu.dot_dimension_numbers<[1], [1], [0], [0], [0, 0, 1, 0], [], []>} : vector<8x8xbf16>, vector<8x8xbf16>, vector<8x8xf32> -> vector<8x8xf32>
    %cst_40 = arith.constant dense<0xFF800000> : vector<8xf32>
    %77 = vector.multi_reduction <maximumf>, %76, %cst_40 [1] : vector<8x8xf32> to vector<8xf32>
    %78 = vector.shape_cast %77 : vector<8xf32> to vector<8x1xf32>
    %79 = vector.broadcast %78 : vector<8x1xf32> to vector<8x8xf32>
    %80 = arith.subf %76, %79 : vector<8x8xf32>
    %81 = math.exp %80 : vector<8x8xf32>
    %cst_41 = arith.constant dense<0.000000e+00> : vector<8xf32>
    %82 = vector.multi_reduction <add>, %81, %cst_41 [1] : vector<8x8xf32> to vector<8xf32>
    %83 = vector.shape_cast %82 : vector<8xf32> to vector<8x1xf32>
    %84 = tpu.reciprocal %83 {approx = true} : vector<8x1xf32> -> vector<8x1xf32>
    %85 = vector.broadcast %84 : vector<8x1xf32> to vector<8x8xf32>
    %86 = arith.mulf %81, %85 : vector<8x8xf32>
    %87 = arith.truncf %86 : vector<8x8xf32> to vector<8x8xbf16>
    %cst_42 = arith.constant dense<0.000000e+00> : vector<8x8xf32>
    %88 = tpu.matmul %87, %75, %cst_42 {dimension_numbers = #tpu.dot_dimension_numbers<[1], [0], [0], [1], [0, 0, 1, 1], [], []>} : vector<8x8xbf16>, vector<8x8xbf16>, vector<8x8xf32> -> vector<8x8xf32>
    %89 = arith.truncf %88 : vector<8x8xf32> to vector<8x8xbf16>
    %90 = vector.extract_strided_slice %29 {offsets = [16, 0], sizes = [8, 32], strides = [1, 1]} : vector<32x32xbf16> to vector<8x32xbf16>
    %cst_43 = arith.constant dense<0.000000e+00> : vector<8x32xf32>
    %91 = tpu.matmul %89, %90, %cst_43 {dimension_numbers = #tpu.dot_dimension_numbers<[1], [0], [0], [1], [0, 0, 1, 1], [], []>} : vector<8x8xbf16>, vector<8x32xbf16>, vector<8x32xf32> -> vector<8x32xf32>
    %92 = arith.addf %72, %91 : vector<8x32xf32>
    %93 = vector.extract_strided_slice %26 {offsets = [0, 24], sizes = [8, 8], strides = [1, 1]} : vector<8x32xbf16> to vector<8x8xbf16>
    %94 = vector.extract_strided_slice %27 {offsets = [0, 24], sizes = [8, 8], strides = [1, 1]} : vector<8x32xbf16> to vector<8x8xbf16>
    %95 = vector.extract_strided_slice %28 {offsets = [0, 24], sizes = [8, 8], strides = [1, 1]} : vector<8x32xbf16> to vector<8x8xbf16>
    %cst_44 = arith.constant dense<0.000000e+00> : vector<8x8xf32>
    %96 = tpu.matmul %93, %94, %cst_44 {dimension_numbers = #tpu.dot_dimension_numbers<[1], [1], [0], [0], [0, 0, 1, 0], [], []>} : vector<8x8xbf16>, vector<8x8xbf16>, vector<8x8xf32> -> vector<8x8xf32>
    %cst_45 = arith.constant dense<0xFF800000> : vector<8xf32>
    %97 = vector.multi_reduction <maximumf>, %96, %cst_45 [1] : vector<8x8xf32> to vector<8xf32>
    %98 = vector.shape_cast %97 : vector<8xf32> to vector<8x1xf32>
    %99 = vector.broadcast %98 : vector<8x1xf32> to vector<8x8xf32>
    %100 = arith.subf %96, %99 : vector<8x8xf32>
    %101 = math.exp %100 : vector<8x8xf32>
    %cst_46 = arith.constant dense<0.000000e+00> : vector<8xf32>
    %102 = vector.multi_reduction <add>, %101, %cst_46 [1] : vector<8x8xf32> to vector<8xf32>
    %103 = vector.shape_cast %102 : vector<8xf32> to vector<8x1xf32>
    %104 = tpu.reciprocal %103 {approx = true} : vector<8x1xf32> -> vector<8x1xf32>
    %105 = vector.broadcast %104 : vector<8x1xf32> to vector<8x8xf32>
    %106 = arith.mulf %101, %105 : vector<8x8xf32>
    %107 = arith.truncf %106 : vector<8x8xf32> to vector<8x8xbf16>
    %cst_47 = arith.constant dense<0.000000e+00> : vector<8x8xf32>
    %108 = tpu.matmul %107, %95, %cst_47 {dimension_numbers = #tpu.dot_dimension_numbers<[1], [0], [0], [1], [0, 0, 1, 1], [], []>} : vector<8x8xbf16>, vector<8x8xbf16>, vector<8x8xf32> -> vector<8x8xf32>
    %109 = arith.truncf %108 : vector<8x8xf32> to vector<8x8xbf16>
    %110 = vector.extract_strided_slice %29 {offsets = [24, 0], sizes = [8, 32], strides = [1, 1]} : vector<32x32xbf16> to vector<8x32xbf16>
    %cst_48 = arith.constant dense<0.000000e+00> : vector<8x32xf32>
    %111 = tpu.matmul %109, %110, %cst_48 {dimension_numbers = #tpu.dot_dimension_numbers<[1], [0], [0], [1], [0, 0, 1, 1], [], []>} : vector<8x8xbf16>, vector<8x32xbf16>, vector<8x32xf32> -> vector<8x32xf32>
    %112 = arith.addf %92, %111 : vector<8x32xf32>
    %cst_49 = arith.constant dense<0.000000e+00> : vector<8xf32>
    %113 = vector.multi_reduction <add>, %112, %cst_49 [1] : vector<8x32xf32> to vector<8xf32>
    %114 = vector.shape_cast %113 : vector<8xf32> to vector<8x1xf32>
    %cst_50 = arith.constant 3.200000e+01 : f32
    %115 = vector.broadcast %cst_50 : f32 to vector<8x1xf32>
    %116 = arith.divf %114, %115 : vector<8x1xf32>
    %117 = vector.broadcast %116 : vector<8x1xf32> to vector<8x32xf32>
    %118 = arith.subf %112, %117 : vector<8x32xf32>
    %119 = arith.mulf %118, %118 : vector<8x32xf32>
    %cst_51 = arith.constant dense<0.000000e+00> : vector<8xf32>
    %120 = vector.multi_reduction <add>, %119, %cst_51 [1] : vector<8x32xf32> to vector<8xf32>
    %121 = vector.shape_cast %120 : vector<8xf32> to vector<8x1xf32>
    %cst_52 = arith.constant 3.200000e+01 : f32
    %122 = vector.broadcast %cst_52 : f32 to vector<8x1xf32>
    %123 = arith.divf %121, %122 : vector<8x1xf32>
    %124 = vector.broadcast %116 : vector<8x1xf32> to vector<8x32xf32>
    %125 = arith.subf %112, %124 : vector<8x32xf32>
    %cst_53 = arith.constant 9.99999974E-6 : f32
    %126 = vector.broadcast %cst_53 : f32 to vector<8x1xf32>
    %127 = arith.addf %123, %126 : vector<8x1xf32>
    %128 = math.rsqrt %127 : vector<8x1xf32>
    %129 = vector.broadcast %128 : vector<8x1xf32> to vector<8x32xf32>
    %130 = arith.mulf %125, %129 : vector<8x32xf32>
    %c0_54 = arith.constant 0 : index
    %c0_55 = arith.constant 0 : index
    %131 = vector.load %arg13[%c0_54, %c0_55] : memref<1x32xf32, #tpu.memory_space<vmem>>, vector<1x32xf32>
    %132 = vector.broadcast %131 : vector<1x32xf32> to vector<8x32xf32>
    %133 = arith.mulf %130, %132 : vector<8x32xf32>
    %c0_56 = arith.constant 0 : index
    %c0_57 = arith.constant 0 : index
    %134 = vector.load %arg14[%c0_56, %c0_57] : memref<1x32xf32, #tpu.memory_space<vmem>>, vector<1x32xf32>
    %135 = vector.broadcast %134 : vector<1x32xf32> to vector<8x32xf32>
    %136 = arith.addf %133, %135 : vector<8x32xf32>
    %137 = arith.addf %136, %3 : vector<8x32xf32>
    %138 = arith.truncf %137 : vector<8x32xf32> to vector<8x32xbf16>
    %c0_58 = arith.constant 0 : index
    %c0_59 = arith.constant 0 : index
    %139 = vector.load %arg15[%c0_58, %c0_59] : memref<32x32xbf16, #tpu.memory_space<vmem>>, vector<32x32xbf16>
    %cst_60 = arith.constant dense<0.000000e+00> : vector<8x32xf32>
    %140 = tpu.matmul %138, %139, %cst_60 {dimension_numbers = #tpu.dot_dimension_numbers<[1], [0], [0], [1], [0, 0, 1, 1], [], []>} : vector<8x32xbf16>, vector<32x32xbf16>, vector<8x32xf32> -> vector<8x32xf32>
    %c0_61 = arith.constant 0 : index
    %c0_62 = arith.constant 0 : index
    %141 = vector.load %arg16[%c0_61, %c0_62] : memref<1x32xf32, #tpu.memory_space<vmem>>, vector<1x32xf32>
    %142 = vector.broadcast %141 : vector<1x32xf32> to vector<8x32xf32>
    %143 = arith.addf %140, %142 : vector<8x32xf32>
    %c0_63 = arith.constant 0 : index
    %c0_64 = arith.constant 0 : index
    %144 = vector.load %arg17[%c0_63, %c0_64] : memref<32x32xbf16, #tpu.memory_space<vmem>>, vector<32x32xbf16>
    %cst_65 = arith.constant dense<0.000000e+00> : vector<16x32xf32>
    %145 = tpu.matmul %5, %144, %cst_65 {dimension_numbers = #tpu.dot_dimension_numbers<[1], [0], [0], [1], [0, 0, 1, 1], [], []>} : vector<16x32xbf16>, vector<32x32xbf16>, vector<16x32xf32> -> vector<16x32xf32>
    %c0_66 = arith.constant 0 : index
    %c0_67 = arith.constant 0 : index
    %146 = vector.load %arg18[%c0_66, %c0_67] : memref<1x32xf32, #tpu.memory_space<vmem>>, vector<1x32xf32>
    %147 = vector.broadcast %146 : vector<1x32xf32> to vector<16x32xf32>
    %148 = arith.addf %145, %147 : vector<16x32xf32>
    %c0_68 = arith.constant 0 : index
    %c0_69 = arith.constant 0 : index
    %149 = vector.load %arg19[%c0_68, %c0_69] : memref<32x32xbf16, #tpu.memory_space<vmem>>, vector<32x32xbf16>
    %cst_70 = arith.constant dense<0.000000e+00> : vector<16x32xf32>
    %150 = tpu.matmul %7, %149, %cst_70 {dimension_numbers = #tpu.dot_dimension_numbers<[1], [0], [0], [1], [0, 0, 1, 1], [], []>} : vector<16x32xbf16>, vector<32x32xbf16>, vector<16x32xf32> -> vector<16x32xf32>
    %c0_71 = arith.constant 0 : index
    %c0_72 = arith.constant 0 : index
    %151 = vector.load %arg20[%c0_71, %c0_72] : memref<1x32xf32, #tpu.memory_space<vmem>>, vector<1x32xf32>
    %152 = vector.broadcast %151 : vector<1x32xf32> to vector<16x32xf32>
    %153 = arith.addf %150, %152 : vector<16x32xf32>
    %154 = arith.truncf %143 : vector<8x32xf32> to vector<8x32xbf16>
    %155 = arith.truncf %148 : vector<16x32xf32> to vector<16x32xbf16>
    %156 = arith.truncf %153 : vector<16x32xf32> to vector<16x32xbf16>
    %c0_73 = arith.constant 0 : index
    %c0_74 = arith.constant 0 : index
    %157 = vector.load %arg21[%c0_73, %c0_74] : memref<32x32xbf16, #tpu.memory_space<vmem>>, vector<32x32xbf16>
    %c0_75 = arith.constant 0 : index
    %c0_76 = arith.constant 0 : index
    %158 = vector.load %arg22[%c0_75, %c0_76] : memref<1x32xf32, #tpu.memory_space<vmem>>, vector<1x32xf32>
    %159 = vector.broadcast %158 : vector<1x32xf32> to vector<8x32xf32>
    %160 = arith.addf %136, %159 : vector<8x32xf32>
    %161 = vector.extract_strided_slice %154 {offsets = [0, 0], sizes = [8, 8], strides = [1, 1]} : vector<8x32xbf16> to vector<8x8xbf16>
    %162 = vector.extract_strided_slice %155 {offsets = [0, 0], sizes = [16, 8], strides = [1, 1]} : vector<16x32xbf16> to vector<16x8xbf16>
    %163 = vector.extract_strided_slice %156 {offsets = [0, 0], sizes = [16, 8], strides = [1, 1]} : vector<16x32xbf16> to vector<16x8xbf16>
    %cst_77 = arith.constant dense<0.000000e+00> : vector<8x16xf32>
    %164 = tpu.matmul %161, %162, %cst_77 {dimension_numbers = #tpu.dot_dimension_numbers<[1], [1], [0], [0], [0, 0, 1, 0], [], []>} : vector<8x8xbf16>, vector<16x8xbf16>, vector<8x16xf32> -> vector<8x16xf32>
    %cst_78 = arith.constant dense<0xFF800000> : vector<8xf32>
    %165 = vector.multi_reduction <maximumf>, %164, %cst_78 [1] : vector<8x16xf32> to vector<8xf32>
    %166 = vector.shape_cast %165 : vector<8xf32> to vector<8x1xf32>
    %167 = vector.broadcast %166 : vector<8x1xf32> to vector<8x16xf32>
    %168 = arith.subf %164, %167 : vector<8x16xf32>
    %169 = math.exp %168 : vector<8x16xf32>
    %cst_79 = arith.constant dense<0.000000e+00> : vector<8xf32>
    %170 = vector.multi_reduction <add>, %169, %cst_79 [1] : vector<8x16xf32> to vector<8xf32>
    %171 = vector.shape_cast %170 : vector<8xf32> to vector<8x1xf32>
    %172 = tpu.reciprocal %171 {approx = true} : vector<8x1xf32> -> vector<8x1xf32>
    %173 = vector.broadcast %172 : vector<8x1xf32> to vector<8x16xf32>
    %174 = arith.mulf %169, %173 : vector<8x16xf32>
    %175 = arith.truncf %174 : vector<8x16xf32> to vector<8x16xbf16>
    %cst_80 = arith.constant dense<0.000000e+00> : vector<8x8xf32>
    %176 = tpu.matmul %175, %163, %cst_80 {dimension_numbers = #tpu.dot_dimension_numbers<[1], [0], [0], [1], [0, 0, 1, 1], [], []>} : vector<8x16xbf16>, vector<16x8xbf16>, vector<8x8xf32> -> vector<8x8xf32>
    %177 = arith.truncf %176 : vector<8x8xf32> to vector<8x8xbf16>
    %178 = vector.extract_strided_slice %157 {offsets = [0, 0], sizes = [8, 32], strides = [1, 1]} : vector<32x32xbf16> to vector<8x32xbf16>
    %cst_81 = arith.constant dense<0.000000e+00> : vector<8x32xf32>
    %179 = tpu.matmul %177, %178, %cst_81 {dimension_numbers = #tpu.dot_dimension_numbers<[1], [0], [0], [1], [0, 0, 1, 1], [], []>} : vector<8x8xbf16>, vector<8x32xbf16>, vector<8x32xf32> -> vector<8x32xf32>
    %180 = arith.addf %160, %179 : vector<8x32xf32>
    %181 = vector.extract_strided_slice %154 {offsets = [0, 8], sizes = [8, 8], strides = [1, 1]} : vector<8x32xbf16> to vector<8x8xbf16>
    %182 = vector.extract_strided_slice %155 {offsets = [0, 8], sizes = [16, 8], strides = [1, 1]} : vector<16x32xbf16> to vector<16x8xbf16>
    %183 = vector.extract_strided_slice %156 {offsets = [0, 8], sizes = [16, 8], strides = [1, 1]} : vector<16x32xbf16> to vector<16x8xbf16>
    %cst_82 = arith.constant dense<0.000000e+00> : vector<8x16xf32>
    %184 = tpu.matmul %181, %182, %cst_82 {dimension_numbers = #tpu.dot_dimension_numbers<[1], [1], [0], [0], [0, 0, 1, 0], [], []>} : vector<8x8xbf16>, vector<16x8xbf16>, vector<8x16xf32> -> vector<8x16xf32>
    %cst_83 = arith.constant dense<0xFF800000> : vector<8xf32>
    %185 = vector.multi_reduction <maximumf>, %184, %cst_83 [1] : vector<8x16xf32> to vector<8xf32>
    %186 = vector.shape_cast %185 : vector<8xf32> to vector<8x1xf32>
    %187 = vector.broadcast %186 : vector<8x1xf32> to vector<8x16xf32>
    %188 = arith.subf %184, %187 : vector<8x16xf32>
    %189 = math.exp %188 : vector<8x16xf32>
    %cst_84 = arith.constant dense<0.000000e+00> : vector<8xf32>
    %190 = vector.multi_reduction <add>, %189, %cst_84 [1] : vector<8x16xf32> to vector<8xf32>
    %191 = vector.shape_cast %190 : vector<8xf32> to vector<8x1xf32>
    %192 = tpu.reciprocal %191 {approx = true} : vector<8x1xf32> -> vector<8x1xf32>
    %193 = vector.broadcast %192 : vector<8x1xf32> to vector<8x16xf32>
    %194 = arith.mulf %189, %193 : vector<8x16xf32>
    %195 = arith.truncf %194 : vector<8x16xf32> to vector<8x16xbf16>
    %cst_85 = arith.constant dense<0.000000e+00> : vector<8x8xf32>
    %196 = tpu.matmul %195, %183, %cst_85 {dimension_numbers = #tpu.dot_dimension_numbers<[1], [0], [0], [1], [0, 0, 1, 1], [], []>} : vector<8x16xbf16>, vector<16x8xbf16>, vector<8x8xf32> -> vector<8x8xf32>
    %197 = arith.truncf %196 : vector<8x8xf32> to vector<8x8xbf16>
    %198 = vector.extract_strided_slice %157 {offsets = [8, 0], sizes = [8, 32], strides = [1, 1]} : vector<32x32xbf16> to vector<8x32xbf16>
    %cst_86 = arith.constant dense<0.000000e+00> : vector<8x32xf32>
    %199 = tpu.matmul %197, %198, %cst_86 {dimension_numbers = #tpu.dot_dimension_numbers<[1], [0], [0], [1], [0, 0, 1, 1], [], []>} : vector<8x8xbf16>, vector<8x32xbf16>, vector<8x32xf32> -> vector<8x32xf32>
    %200 = arith.addf %180, %199 : vector<8x32xf32>
    %201 = vector.extract_strided_slice %154 {offsets = [0, 16], sizes = [8, 8], strides = [1, 1]} : vector<8x32xbf16> to vector<8x8xbf16>
    %202 = vector.extract_strided_slice %155 {offsets = [0, 16], sizes = [16, 8], strides = [1, 1]} : vector<16x32xbf16> to vector<16x8xbf16>
    %203 = vector.extract_strided_slice %156 {offsets = [0, 16], sizes = [16, 8], strides = [1, 1]} : vector<16x32xbf16> to vector<16x8xbf16>
    %cst_87 = arith.constant dense<0.000000e+00> : vector<8x16xf32>
    %204 = tpu.matmul %201, %202, %cst_87 {dimension_numbers = #tpu.dot_dimension_numbers<[1], [1], [0], [0], [0, 0, 1, 0], [], []>} : vector<8x8xbf16>, vector<16x8xbf16>, vector<8x16xf32> -> vector<8x16xf32>
    %cst_88 = arith.constant dense<0xFF800000> : vector<8xf32>
    %205 = vector.multi_reduction <maximumf>, %204, %cst_88 [1] : vector<8x16xf32> to vector<8xf32>
    %206 = vector.shape_cast %205 : vector<8xf32> to vector<8x1xf32>
    %207 = vector.broadcast %206 : vector<8x1xf32> to vector<8x16xf32>
    %208 = arith.subf %204, %207 : vector<8x16xf32>
    %209 = math.exp %208 : vector<8x16xf32>
    %cst_89 = arith.constant dense<0.000000e+00> : vector<8xf32>
    %210 = vector.multi_reduction <add>, %209, %cst_89 [1] : vector<8x16xf32> to vector<8xf32>
    %211 = vector.shape_cast %210 : vector<8xf32> to vector<8x1xf32>
    %212 = tpu.reciprocal %211 {approx = true} : vector<8x1xf32> -> vector<8x1xf32>
    %213 = vector.broadcast %212 : vector<8x1xf32> to vector<8x16xf32>
    %214 = arith.mulf %209, %213 : vector<8x16xf32>
    %215 = arith.truncf %214 : vector<8x16xf32> to vector<8x16xbf16>
    %cst_90 = arith.constant dense<0.000000e+00> : vector<8x8xf32>
    %216 = tpu.matmul %215, %203, %cst_90 {dimension_numbers = #tpu.dot_dimension_numbers<[1], [0], [0], [1], [0, 0, 1, 1], [], []>} : vector<8x16xbf16>, vector<16x8xbf16>, vector<8x8xf32> -> vector<8x8xf32>
    %217 = arith.truncf %216 : vector<8x8xf32> to vector<8x8xbf16>
    %218 = vector.extract_strided_slice %157 {offsets = [16, 0], sizes = [8, 32], strides = [1, 1]} : vector<32x32xbf16> to vector<8x32xbf16>
    %cst_91 = arith.constant dense<0.000000e+00> : vector<8x32xf32>
    %219 = tpu.matmul %217, %218, %cst_91 {dimension_numbers = #tpu.dot_dimension_numbers<[1], [0], [0], [1], [0, 0, 1, 1], [], []>} : vector<8x8xbf16>, vector<8x32xbf16>, vector<8x32xf32> -> vector<8x32xf32>
    %220 = arith.addf %200, %219 : vector<8x32xf32>
    %221 = vector.extract_strided_slice %154 {offsets = [0, 24], sizes = [8, 8], strides = [1, 1]} : vector<8x32xbf16> to vector<8x8xbf16>
    %222 = vector.extract_strided_slice %155 {offsets = [0, 24], sizes = [16, 8], strides = [1, 1]} : vector<16x32xbf16> to vector<16x8xbf16>
    %223 = vector.extract_strided_slice %156 {offsets = [0, 24], sizes = [16, 8], strides = [1, 1]} : vector<16x32xbf16> to vector<16x8xbf16>
    %cst_92 = arith.constant dense<0.000000e+00> : vector<8x16xf32>
    %224 = tpu.matmul %221, %222, %cst_92 {dimension_numbers = #tpu.dot_dimension_numbers<[1], [1], [0], [0], [0, 0, 1, 0], [], []>} : vector<8x8xbf16>, vector<16x8xbf16>, vector<8x16xf32> -> vector<8x16xf32>
    %cst_93 = arith.constant dense<0xFF800000> : vector<8xf32>
    %225 = vector.multi_reduction <maximumf>, %224, %cst_93 [1] : vector<8x16xf32> to vector<8xf32>
    %226 = vector.shape_cast %225 : vector<8xf32> to vector<8x1xf32>
    %227 = vector.broadcast %226 : vector<8x1xf32> to vector<8x16xf32>
    %228 = arith.subf %224, %227 : vector<8x16xf32>
    %229 = math.exp %228 : vector<8x16xf32>
    %cst_94 = arith.constant dense<0.000000e+00> : vector<8xf32>
    %230 = vector.multi_reduction <add>, %229, %cst_94 [1] : vector<8x16xf32> to vector<8xf32>
    %231 = vector.shape_cast %230 : vector<8xf32> to vector<8x1xf32>
    %232 = tpu.reciprocal %231 {approx = true} : vector<8x1xf32> -> vector<8x1xf32>
    %233 = vector.broadcast %232 : vector<8x1xf32> to vector<8x16xf32>
    %234 = arith.mulf %229, %233 : vector<8x16xf32>
    %235 = arith.truncf %234 : vector<8x16xf32> to vector<8x16xbf16>
    %cst_95 = arith.constant dense<0.000000e+00> : vector<8x8xf32>
    %236 = tpu.matmul %235, %223, %cst_95 {dimension_numbers = #tpu.dot_dimension_numbers<[1], [0], [0], [1], [0, 0, 1, 1], [], []>} : vector<8x16xbf16>, vector<16x8xbf16>, vector<8x8xf32> -> vector<8x8xf32>
    %237 = arith.truncf %236 : vector<8x8xf32> to vector<8x8xbf16>
    %238 = vector.extract_strided_slice %157 {offsets = [24, 0], sizes = [8, 32], strides = [1, 1]} : vector<32x32xbf16> to vector<8x32xbf16>
    %cst_96 = arith.constant dense<0.000000e+00> : vector<8x32xf32>
    %239 = tpu.matmul %237, %238, %cst_96 {dimension_numbers = #tpu.dot_dimension_numbers<[1], [0], [0], [1], [0, 0, 1, 1], [], []>} : vector<8x8xbf16>, vector<8x32xbf16>, vector<8x32xf32> -> vector<8x32xf32>
    %240 = arith.addf %220, %239 : vector<8x32xf32>
    %cst_97 = arith.constant dense<0.000000e+00> : vector<8xf32>
    %241 = vector.multi_reduction <add>, %240, %cst_97 [1] : vector<8x32xf32> to vector<8xf32>
    %242 = vector.shape_cast %241 : vector<8xf32> to vector<8x1xf32>
    %cst_98 = arith.constant 3.200000e+01 : f32
    %243 = vector.broadcast %cst_98 : f32 to vector<8x1xf32>
    %244 = arith.divf %242, %243 : vector<8x1xf32>
    %245 = vector.broadcast %244 : vector<8x1xf32> to vector<8x32xf32>
    %246 = arith.subf %240, %245 : vector<8x32xf32>
    %247 = arith.mulf %246, %246 : vector<8x32xf32>
    %cst_99 = arith.constant dense<0.000000e+00> : vector<8xf32>
    %248 = vector.multi_reduction <add>, %247, %cst_99 [1] : vector<8x32xf32> to vector<8xf32>
    %249 = vector.shape_cast %248 : vector<8xf32> to vector<8x1xf32>
    %cst_100 = arith.constant 3.200000e+01 : f32
    %250 = vector.broadcast %cst_100 : f32 to vector<8x1xf32>
    %251 = arith.divf %249, %250 : vector<8x1xf32>
    %252 = vector.broadcast %244 : vector<8x1xf32> to vector<8x32xf32>
    %253 = arith.subf %240, %252 : vector<8x32xf32>
    %cst_101 = arith.constant 9.99999974E-6 : f32
    %254 = vector.broadcast %cst_101 : f32 to vector<8x1xf32>
    %255 = arith.addf %251, %254 : vector<8x1xf32>
    %256 = math.rsqrt %255 : vector<8x1xf32>
    %257 = vector.broadcast %256 : vector<8x1xf32> to vector<8x32xf32>
    %258 = arith.mulf %253, %257 : vector<8x32xf32>
    %c0_102 = arith.constant 0 : index
    %c0_103 = arith.constant 0 : index
    %259 = vector.load %arg23[%c0_102, %c0_103] : memref<1x32xf32, #tpu.memory_space<vmem>>, vector<1x32xf32>
    %260 = vector.broadcast %259 : vector<1x32xf32> to vector<8x32xf32>
    %261 = arith.mulf %258, %260 : vector<8x32xf32>
    %c0_104 = arith.constant 0 : index
    %c0_105 = arith.constant 0 : index
    %262 = vector.load %arg24[%c0_104, %c0_105] : memref<1x32xf32, #tpu.memory_space<vmem>>, vector<1x32xf32>
    %263 = vector.broadcast %262 : vector<1x32xf32> to vector<8x32xf32>
    %264 = arith.addf %261, %263 : vector<8x32xf32>
    %265 = arith.truncf %264 : vector<8x32xf32> to vector<8x32xbf16>
    %c0_106 = arith.constant 0 : index
    %c0_107 = arith.constant 0 : index
    %266 = vector.load %arg25[%c0_106, %c0_107] : memref<32x64xbf16, #tpu.memory_space<vmem>>, vector<32x64xbf16>
    %cst_108 = arith.constant dense<0.000000e+00> : vector<8x64xf32>
    %267 = tpu.matmul %265, %266, %cst_108 {dimension_numbers = #tpu.dot_dimension_numbers<[1], [0], [0], [1], [0, 0, 1, 1], [], []>} : vector<8x32xbf16>, vector<32x64xbf16>, vector<8x64xf32> -> vector<8x64xf32>
    %c0_109 = arith.constant 0 : index
    %c0_110 = arith.constant 0 : index
    %268 = vector.load %arg26[%c0_109, %c0_110] : memref<1x64xf32, #tpu.memory_space<vmem>>, vector<1x64xf32>
    %269 = vector.broadcast %268 : vector<1x64xf32> to vector<8x64xf32>
    %270 = arith.addf %267, %269 : vector<8x64xf32>
    %cst_111 = arith.constant 0.000000e+00 : f32
    %271 = vector.broadcast %cst_111 : f32 to vector<8x64xf32>
    %272 = arith.maximumf %270, %271 : vector<8x64xf32>
    %273 = arith.truncf %272 : vector<8x64xf32> to vector<8x64xbf16>
    %c0_112 = arith.constant 0 : index
    %c0_113 = arith.constant 0 : index
    %274 = vector.load %arg27[%c0_112, %c0_113] : memref<64x32xbf16, #tpu.memory_space<vmem>>, vector<64x32xbf16>
    %cst_114 = arith.constant dense<0.000000e+00> : vector<8x32xf32>
    %275 = tpu.matmul %273, %274, %cst_114 {dimension_numbers = #tpu.dot_dimension_numbers<[1], [0], [0], [1], [0, 0, 1, 1], [], []>} : vector<8x64xbf16>, vector<64x32xbf16>, vector<8x32xf32> -> vector<8x32xf32>
    %c0_115 = arith.constant 0 : index
    %c0_116 = arith.constant 0 : index
    %276 = vector.load %arg28[%c0_115, %c0_116] : memref<1x32xf32, #tpu.memory_space<vmem>>, vector<1x32xf32>
    %277 = vector.broadcast %276 : vector<1x32xf32> to vector<8x32xf32>
    %278 = arith.addf %275, %277 : vector<8x32xf32>
    %279 = arith.addf %264, %278 : vector<8x32xf32>
    %cst_117 = arith.constant dense<0.000000e+00> : vector<8xf32>
    %280 = vector.multi_reduction <add>, %279, %cst_117 [1] : vector<8x32xf32> to vector<8xf32>
    %281 = vector.shape_cast %280 : vector<8xf32> to vector<8x1xf32>
    %cst_118 = arith.constant 3.200000e+01 : f32
    %282 = vector.broadcast %cst_118 : f32 to vector<8x1xf32>
    %283 = arith.divf %281, %282 : vector<8x1xf32>
    %284 = vector.broadcast %283 : vector<8x1xf32> to vector<8x32xf32>
    %285 = arith.subf %279, %284 : vector<8x32xf32>
    %286 = arith.mulf %285, %285 : vector<8x32xf32>
    %cst_119 = arith.constant dense<0.000000e+00> : vector<8xf32>
    %287 = vector.multi_reduction <add>, %286, %cst_119 [1] : vector<8x32xf32> to vector<8xf32>
    %288 = vector.shape_cast %287 : vector<8xf32> to vector<8x1xf32>
    %cst_120 = arith.constant 3.200000e+01 : f32
    %289 = vector.broadcast %cst_120 : f32 to vector<8x1xf32>
    %290 = arith.divf %288, %289 : vector<8x1xf32>
    %291 = vector.broadcast %283 : vector<8x1xf32> to vector<8x32xf32>
    %292 = arith.subf %279, %291 : vector<8x32xf32>
    %cst_121 = arith.constant 9.99999974E-6 : f32
    %293 = vector.broadcast %cst_121 : f32 to vector<8x1xf32>
    %294 = arith.addf %290, %293 : vector<8x1xf32>
    %295 = math.rsqrt %294 : vector<8x1xf32>
    %296 = vector.broadcast %295 : vector<8x1xf32> to vector<8x32xf32>
    %297 = arith.mulf %292, %296 : vector<8x32xf32>
    %c0_122 = arith.constant 0 : index
    %c0_123 = arith.constant 0 : index
    %298 = vector.load %arg29[%c0_122, %c0_123] : memref<1x32xf32, #tpu.memory_space<vmem>>, vector<1x32xf32>
    %299 = vector.broadcast %298 : vector<1x32xf32> to vector<8x32xf32>
    %300 = arith.mulf %297, %299 : vector<8x32xf32>
    %c0_124 = arith.constant 0 : index
    %c0_125 = arith.constant 0 : index
    %301 = vector.load %arg30[%c0_124, %c0_125] : memref<1x32xf32, #tpu.memory_space<vmem>>, vector<1x32xf32>
    %302 = vector.broadcast %301 : vector<1x32xf32> to vector<8x32xf32>
    %303 = arith.addf %300, %302 : vector<8x32xf32>
    %c0_126 = arith.constant 0 : index
    %c0_127 = arith.constant 0 : index
    %c0_128 = arith.constant 0 : index
    %304 = vector.load %arg33[%c0_126, %c0_127, %c0_128] : memref<1x8x32xf32, #tpu.memory_space<vmem>>, vector<1x8x32xf32>
    %305 = vector.shape_cast %304 : vector<1x8x32xf32> to vector<8x32xf32>
    %306 = vector.shape_cast %303 : vector<8x32xf32> to vector<1x8x32xf32>
    tpu.vector_store %arg33[%c0_126, %c0_127, %c0_128], %306 {strides = array<i32>} : memref<1x8x32xf32, #tpu.memory_space<vmem>>, vector<1x8x32xf32>,
    %cst_129 = arith.constant dense<0.000000e+00> : vector<8xf32>
    %307 = vector.multi_reduction <add>, %303, %cst_129 [1] : vector<8x32xf32> to vector<8xf32>
    %308 = vector.shape_cast %307 : vector<8xf32> to vector<8x1xf32>
    %cst_130 = arith.constant 3.200000e+01 : f32
    %309 = vector.broadcast %cst_130 : f32 to vector<8x1xf32>
    %310 = arith.divf %308, %309 : vector<8x1xf32>
    %311 = vector.broadcast %310 : vector<8x1xf32> to vector<8x32xf32>
    %312 = arith.subf %303, %311 : vector<8x32xf32>
    %313 = arith.mulf %312, %312 : vector<8x32xf32>
    %cst_131 = arith.constant dense<0.000000e+00> : vector<8xf32>
    %314 = vector.multi_reduction <add>, %313, %cst_131 [1] : vector<8x32xf32> to vector<8xf32>
    %315 = vector.shape_cast %314 : vector<8xf32> to vector<8x1xf32>
    %cst_132 = arith.constant 3.200000e+01 : f32
    %316 = vector.broadcast %cst_132 : f32 to vector<8x1xf32>
    %317 = arith.divf %315, %316 : vector<8x1xf32>
    %318 = vector.broadcast %310 : vector<8x1xf32> to vector<8x32xf32>
    %319 = arith.subf %303, %318 : vector<8x32xf32>
    %cst_133 = arith.constant 9.99999974E-6 : f32
    %320 = vector.broadcast %cst_133 : f32 to vector<8x1xf32>
    %321 = arith.addf %317, %320 : vector<8x1xf32>
    %322 = math.rsqrt %321 : vector<8x1xf32>
    %323 = vector.broadcast %322 : vector<8x1xf32> to vector<8x32xf32>
    %324 = arith.mulf %319, %323 : vector<8x32xf32>
    %c0_134 = arith.constant 0 : index
    %c0_135 = arith.constant 0 : index
    %325 = vector.load %arg31[%c0_134, %c0_135] : memref<1x32xf32, #tpu.memory_space<vmem>>, vector<1x32xf32>
    %326 = vector.broadcast %325 : vector<1x32xf32> to vector<8x32xf32>
    %327 = arith.mulf %324, %326 : vector<8x32xf32>
    %c0_136 = arith.constant 0 : index
    %c0_137 = arith.constant 0 : index
    %328 = vector.load %arg32[%c0_136, %c0_137] : memref<1x32xf32, #tpu.memory_space<vmem>>, vector<1x32xf32>
    %329 = vector.broadcast %328 : vector<1x32xf32> to vector<8x32xf32>
    %330 = arith.addf %327, %329 : vector<8x32xf32>
    %c0_138 = arith.constant 0 : index
    %c0_139 = arith.constant 0 : index
    %c0_140 = arith.constant 0 : index
    %331 = vector.load %arg34[%c0_138, %c0_139, %c0_140] : memref<1x8x32xf32, #tpu.memory_space<vmem>>, vector<1x8x32xf32>
    %332 = vector.shape_cast %331 : vector<1x8x32xf32> to vector<8x32xf32>
    %333 = vector.shape_cast %330 : vector<8x32xf32> to vector<1x8x32xf32>
    tpu.vector_store %arg34[%c0_138, %c0_139, %c0_140], %333 {strides = array<i32>} : memref<1x8x32xf32, #tpu.memory_space<vmem>>, vector<1x8x32xf32>,
    return
  }
  func.func @transform_0(%arg0: i32) -> (i32, i32, i32) {
    %c0_i32 = arith.constant 0 : i32
    %c0_i32_0 = arith.constant 0 : i32
    %c0_i32_1 = arith.constant 0 : i32
    return %arg0, %c0_i32, %c0_i32_0 : i32, i32, i32
  }
  func.func @transform_1(%arg0: i32) -> (i32, i32, i32) {
    %c0_i32 = arith.constant 0 : i32
    %c0_i32_0 = arith.constant 0 : i32
    %c0_i32_1 = arith.constant 0 : i32
    return %arg0, %c0_i32, %c0_i32_0 : i32, i32, i32
  }
  func.func @transform_2(%arg0: i32) -> (i32, i32, i32) {
    %c0_i32 = arith.constant 0 : i32
    %c0_i32_0 = arith.constant 0 : i32
    %c0_i32_1 = arith.constant 0 : i32
    return %arg0, %c0_i32, %c0_i32_0 : i32, i32, i32
  }
  func.func @transform_3(%arg0: i32) -> (i32, i32, i32) {
    %c0_i32 = arith.constant 0 : i32
    %c0_i32_0 = arith.constant 0 : i32
    %c0_i32_1 = arith.constant 0 : i32
    return %arg0, %c0_i32, %c0_i32_0 : i32, i32, i32
  }
  func.func @transform_4(%arg0: i32) -> (i32, i32) {
    %c0_i32 = arith.constant 0 : i32
    %c0_i32_0 = arith.constant 0 : i32
    %c0_i32_1 = arith.constant 0 : i32
    return %c0_i32, %c0_i32_0 : i32, i32
  }
  func.func @transform_5(%arg0: i32) -> (i32, i32) {
    %c0_i32 = arith.constant 0 : i32
    %c0_i32_0 = arith.constant 0 : i32
    %c0_i32_1 = arith.constant 0 : i32
    return %c0_i32, %c0_i32_0 : i32, i32
  }
  func.func @transform_6(%arg0: i32) -> (i32, i32) {
    %c0_i32 = arith.constant 0 : i32
    %c0_i32_0 = arith.constant 0 : i32
    %c0_i32_1 = arith.constant 0 : i32
    return %c0_i32, %c0_i32_0 : i32, i32
  }
  func.func @transform_7(%arg0: i32) -> (i32, i32) {
    %c0_i32 = arith.constant 0 : i32
    %c0_i32_0 = arith.constant 0 : i32
    %c0_i32_1 = arith.constant 0 : i32
    return %c0_i32, %c0_i32_0 : i32, i32
  }
  func.func @transform_8(%arg0: i32) -> (i32, i32) {
    %c0_i32 = arith.constant 0 : i32
    %c0_i32_0 = arith.constant 0 : i32
    %c0_i32_1 = arith.constant 0 : i32
    return %c0_i32, %c0_i32_0 : i32, i32
  }
  func.func @transform_9(%arg0: i32) -> (i32, i32) {
    %c0_i32 = arith.constant 0 : i32
    %c0_i32_0 = arith.constant 0 : i32
    %c0_i32_1 = arith.constant 0 : i32
    return %c0_i32, %c0_i32_0 : i32, i32
  }
  func.func @transform_10(%arg0: i32) -> (i32, i32) {
    %c0_i32 = arith.constant 0 : i32
    %c0_i32_0 = arith.constant 0 : i32
    %c0_i32_1 = arith.constant 0 : i32
    return %c0_i32, %c0_i32_0 : i32, i32
  }
  func.func @transform_11(%arg0: i32) -> (i32, i32) {
    %c0_i32 = arith.constant 0 : i32
    %c0_i32_0 = arith.constant 0 : i32
    %c0_i32_1 = arith.constant 0 : i32
    return %c0_i32, %c0_i32_0 : i32, i32
  }
  func.func @transform_12(%arg0: i32) -> (i32, i32) {
    %c0_i32 = arith.constant 0 : i32
    %c0_i32_0 = arith.constant 0 : i32
    %c0_i32_1 = arith.constant 0 : i32
    return %c0_i32, %c0_i32_0 : i32, i32
  }
  func.func @transform_13(%arg0: i32) -> (i32, i32) {
    %c0_i32 = arith.constant 0 : i32
    %c0_i32_0 = arith.constant 0 : i32
    %c0_i32_1 = arith.constant 0 : i32
    return %c0_i32, %c0_i32_0 : i32, i32
  }
  func.func @transform_14(%arg0: i32) -> (i32, i32) {
    %c0_i32 = arith.constant 0 : i32
    %c0_i32_0 = arith.constant 0 : i32
    %c0_i32_1 = arith.constant 0 : i32
    return %c0_i32, %c0_i32_0 : i32, i32
  }
  func.func @transform_15(%arg0: i32) -> (i32, i32) {
    %c0_i32 = arith.constant 0 : i32
    %c0_i32_0 = arith.constant 0 : i32
    %c0_i32_1 = arith.constant 0 : i32
    return %c0_i32, %c0_i32_0 : i32, i32
  }
  func.func @transform_16(%arg0: i32) -> (i32, i32) {
    %c0_i32 = arith.constant 0 : i32
    %c0_i32_0 = arith.constant 0 : i32
    %c0_i32_1 = arith.constant 0 : i32
    return %c0_i32, %c0_i32_0 : i32, i32
  }
  func.func @transform_17(%arg0: i32) -> (i32, i32) {
    %c0_i32 = arith.constant 0 : i32
    %c0_i32_0 = arith.constant 0 : i32
    %c0_i32_1 = arith.constant 0 : i32
    return %c0_i32, %c0_i32_0 : i32, i32
  }
  func.func @transform_18(%arg0: i32) -> (i32, i32) {
    %c0_i32 = arith.constant 0 : i32
    %c0_i32_0 = arith.constant 0 : i32
    %c0_i32_1 = arith.constant 0 : i32
    return %c0_i32, %c0_i32_0 : i32, i32
  }
  func.func @transform_19(%arg0: i32) -> (i32, i32) {
    %c0_i32 = arith.constant 0 : i32
    %c0_i32_0 = arith.constant 0 : i32
    %c0_i32_1 = arith.constant 0 : i32
    return %c0_i32, %c0_i32_0 : i32, i32
  }
  func.func @transform_20(%arg0: i32) -> (i32, i32) {
    %c0_i32 = arith.constant 0 : i32
    %c0_i32_0 = arith.constant 0 : i32
    %c0_i32_1 = arith.constant 0 : i32
    return %c0_i32, %c0_i32_0 : i32, i32
  }
  func.func @transform_21(%arg0: i32) -> (i32, i32) {
    %c0_i32 = arith.constant 0 : i32
    %c0_i32_0 = arith.constant 0 : i32
    %c0_i32_1 = arith.constant 0 : i32
    return %c0_i32, %c0_i32_0 : i32, i32
  }
  func.func @transform_22(%arg0: i32) -> (i32, i32) {
    %c0_i32 = arith.constant 0 : i32
    %c0_i32_0 = arith.constant 0 : i32
    %c0_i32_1 = arith.constant 0 : i32
    return %c0_i32, %c0_i32_0 : i32, i32
  }
  func.func @transform_23(%arg0: i32) -> (i32, i32) {
    %c0_i32 = arith.constant 0 : i32
    %c0_i32_0 = arith.constant 0 : i32
    %c0_i32_1 = arith.constant 0 : i32
    return %c0_i32, %c0_i32_0 : i32, i32
  }
  func.func @transform_24(%arg0: i32) -> (i32, i32) {
    %c0_i32 = arith.constant 0 : i32
    %c0_i32_0 = arith.constant 0 : i32
    %c0_i32_1 = arith.constant 0 : i32
    return %c0_i32, %c0_i32_0 : i32, i32
  }
  func.func @transform_25(%arg0: i32) -> (i32, i32) {
    %c0_i32 = arith.constant 0 : i32
    %c0_i32_0 = arith.constant 0 : i32
    %c0_i32_1 = arith.constant 0 : i32
    return %c0_i32, %c0_i32_0 : i32, i32
  }
  func.func @transform_26(%arg0: i32) -> (i32, i32) {
    %c0_i32 = arith.constant 0 : i32
    %c0_i32_0 = arith.constant 0 : i32
    %c0_i32_1 = arith.constant 0 : i32
    return %c0_i32, %c0_i32_0 : i32, i32
  }
  func.func @transform_27(%arg0: i32) -> (i32, i32) {
    %c0_i32 = arith.constant 0 : i32
    %c0_i32_0 = arith.constant 0 : i32
    %c0_i32_1 = arith.constant 0 : i32
    return %c0_i32, %c0_i32_0 : i32, i32
  }
  func.func @transform_28(%arg0: i32) -> (i32, i32) {
    %c0_i32 = arith.constant 0 : i32
    %c0_i32_0 = arith.constant 0 : i32
    %c0_i32_1 = arith.constant 0 : i32
    return %c0_i32, %c0_i32_0 : i32, i32
  }
  func.func @transform_29(%arg0: i32) -> (i32, i32) {
    %c0_i32 = arith.constant 0 : i32
    %c0_i32_0 = arith.constant 0 : i32
    %c0_i32_1 = arith.constant 0 : i32
    return %c0_i32, %c0_i32_0 : i32, i32
  }
  func.func @transform_30(%arg0: i32) -> (i32, i32) {
    %c0_i32 = arith.constant 0 : i32
    %c0_i32_0 = arith.constant 0 : i32
    %c0_i32_1 = arith.constant 0 : i32
    return %c0_i32, %c0_i32_0 : i32, i32
  }
  func.func @transform_31(%arg0: i32) -> (i32, i32) {
    %c0_i32 = arith.constant 0 : i32
    %c0_i32_0 = arith.constant 0 : i32
    %c0_i32_1 = arith.constant 0 : i32
    return %c0_i32, %c0_i32_0 : i32, i32
  }
  func.func @transform_32(%arg0: i32) -> (i32, i32, i32) {
    %c0_i32 = arith.constant 0 : i32
    %c0_i32_0 = arith.constant 0 : i32
    %c0_i32_1 = arith.constant 0 : i32
    return %arg0, %c0_i32, %c0_i32_0 : i32, i32, i32
  }
  func.func @transform_33(%arg0: i32) -> (i32, i32, i32) {
    %c0_i32 = arith.constant 0 : i32
    %c0_i32_0 = arith.constant 0 : i32
    %c0_i32_1 = arith.constant 0 : i32
    return %arg0, %c0_i32, %c0_i32_0 : i32, i32, i32
  }
}

module attributes {stable_mosaic.version = 11 : i64} {
  func.func @_decoder_layer_kernel(%arg0: i32, %arg1: memref<1x8x32xf32, #tpu.memory_space<vmem>>, %arg2: memref<1x8x32xf32, #tpu.memory_space<vmem>>, %arg3: memref<1x16x32xbf16, #tpu.memory_space<vmem>>, %arg4: memref<1x16x32xbf16, #tpu.memory_space<vmem>>, %arg5: memref<32x32xbf16, #tpu.memory_space<vmem>>, %arg6: memref<1x32xf32, #tpu.memory_space<vmem>>, %arg7: memref<32x32xbf16, #tpu.memory_space<vmem>>, %arg8: memref<1x32xf32, #tpu.memory_space<vmem>>, %arg9: memref<32x32xbf16, #tpu.memory_space<vmem>>, %arg10: memref<1x32xf32, #tpu.memory_space<vmem>>, %arg11: memref<32x32xbf16, #tpu.memory_space<vmem>>, %arg12: memref<1x32xf32, #tpu.memory_space<vmem>>, %arg13: memref<1x32xf32, #tpu.memory_space<vmem>>, %arg14: memref<1x32xf32, #tpu.memory_space<vmem>>, %arg15: memref<32x32xbf16, #tpu.memory_space<vmem>>, %arg16: memref<1x32xf32, #tpu.memory_space<vmem>>, %arg17: memref<32x32xbf16, #tpu.memory_space<vmem>>, %arg18: memref<1x32xf32, #tpu.memory_space<vmem>>, %arg19: memref<32x32xbf16, #tpu.memory_space<vmem>>, %arg20: memref<1x32xf32, #tpu.memory_space<vmem>>, %arg21: memref<32x32xbf16, #tpu.memory_space<vmem>>, %arg22: memref<1x32xf32, #tpu.memory_space<vmem>>, %arg23: memref<1x32xf32, #tpu.memory_space<vmem>>, %arg24: memref<1x32xf32, #tpu.memory_space<vmem>>, %arg25: memref<32x64xbf16, #tpu.memory_space<vmem>>, %arg26: memref<1x64xf32, #tpu.memory_space<vmem>>, %arg27: memref<64x32xbf16, #tpu.memory_space<vmem>>, %arg28: memref<1x32xf32, #tpu.memory_space<vmem>>, %arg29: memref<1x32xf32, #tpu.memory_space<vmem>>, %arg30: memref<1x32xf32, #tpu.memory_space<vmem>>, %arg31: memref<1x32xf32, #tpu.memory_space<vmem>>, %arg32: memref<1x32xf32, #tpu.memory_space<vmem>>, %arg33: memref<1x8x32xf32, #tpu.memory_space<vmem>>, %arg34: memref<1x8x32xf32, #tpu.memory_space<vmem>>) attributes {dimension_semantics = [#tpu.dimension_semantics<parallel>], iteration_bounds = array<i64: 2>, scalar_prefetch = 0 : i64, scratch_operands = 0 : i64, tpu.core_type = #tpu.core_type<tc>, window_params = [{transform_indices = @transform_0, window_bounds = array<i64: 1, 8, 32>}, {transform_indices = @transform_1, window_bounds = array<i64: 1, 8, 32>}, {transform_indices = @transform_2, window_bounds = array<i64: 1, 16, 32>}, {transform_indices = @transform_3, window_bounds = array<i64: 1, 16, 32>}, {pipeline_mode = #tpu.pipeline_mode<synchronous>, transform_indices = @transform_4, window_bounds = array<i64: 32, 32>}, {pipeline_mode = #tpu.pipeline_mode<synchronous>, transform_indices = @transform_5, window_bounds = array<i64: 1, 32>}, {pipeline_mode = #tpu.pipeline_mode<synchronous>, transform_indices = @transform_6, window_bounds = array<i64: 32, 32>}, {pipeline_mode = #tpu.pipeline_mode<synchronous>, transform_indices = @transform_7, window_bounds = array<i64: 1, 32>}, {pipeline_mode = #tpu.pipeline_mode<synchronous>, transform_indices = @transform_8, window_bounds = array<i64: 32, 32>}, {pipeline_mode = #tpu.pipeline_mode<synchronous>, transform_indices = @transform_9, window_bounds = array<i64: 1, 32>}, {pipeline_mode = #tpu.pipeline_mode<synchronous>, transform_indices = @transform_10, window_bounds = array<i64: 32, 32>}, {pipeline_mode = #tpu.pipeline_mode<synchronous>, transform_indices = @transform_11, window_bounds = array<i64: 1, 32>}, {pipeline_mode = #tpu.pipeline_mode<synchronous>, transform_indices = @transform_12, window_bounds = array<i64: 1, 32>}, {pipeline_mode = #tpu.pipeline_mode<synchronous>, transform_indices = @transform_13, window_bounds = array<i64: 1, 32>}, {pipeline_mode = #tpu.pipeline_mode<synchronous>, transform_indices = @transform_14, window_bounds = array<i64: 32, 32>}, {pipeline_mode = #tpu.pipeline_mode<synchronous>, transform_indices = @transform_15, window_bounds = array<i64: 1, 32>}, {pipeline_mode = #tpu.pipeline_mode<synchronous>, transform_indices = @transform_16, window_bounds = array<i64: 32, 32>}, {pipeline_mode = #tpu.pipeline_mode<synchronous>, transform_indices = @transform_17, window_bounds = array<i64: 1, 32>}, {pipeline_mode = #tpu.pipeline_mode<synchronous>, transform_indices = @transform_18, window_bounds = array<i64: 32, 32>}, {pipeline_mode = #tpu.pipeline_mode<synchronous>, transform_indices = @transform_19, window_bounds = array<i64: 1, 32>}, {pipeline_mode = #tpu.pipeline_mode<synchronous>, transform_indices = @transform_20, window_bounds = array<i64: 32, 32>}, {pipeline_mode = #tpu.pipeline_mode<synchronous>, transform_indices = @transform_21, window_bounds = array<i64: 1, 32>}, {pipeline_mode = #tpu.pipeline_mode<synchronous>, transform_indices = @transform_22, window_bounds = array<i64: 1, 32>}, {pipeline_mode = #tpu.pipeline_mode<synchronous>, transform_indices = @transform_23, window_bounds = array<i64: 1, 32>}, {pipeline_mode = #tpu.pipeline_mode<synchronous>, transform_indices = @transform_24, window_bounds = array<i64: 32, 64>}, {pipeline_mode = #tpu.pipeline_mode<synchronous>, transform_indices = @transform_25, window_bounds = array<i64: 1, 64>}, {pipeline_mode = #tpu.pipeline_mode<synchronous>, transform_indices = @transform_26, window_bounds = array<i64: 64, 32>}, {pipeline_mode = #tpu.pipeline_mode<synchronous>, transform_indices = @transform_27, window_bounds = array<i64: 1, 32>}, {pipeline_mode = #tpu.pipeline_mode<synchronous>, transform_indices = @transform_28, window_bounds = array<i64: 1, 32>}, {pipeline_mode = #tpu.pipeline_mode<synchronous>, transform_indices = @transform_29, window_bounds = array<i64: 1, 32>}, {pipeline_mode = #tpu.pipeline_mode<synchronous>, transform_indices = @transform_30, window_bounds = array<i64: 1, 32>}, {pipeline_mode = #tpu.pipeline_mode<synchronous>, transform_indices = @transform_31, window_bounds = array<i64: 1, 32>}, {transform_indices = @transform_32, window_bounds = array<i64: 1, 8, 32>}, {transform_indices = @transform_33, window_bounds = array<i64: 1, 8, 32>}]} {
    %c0 = arith.constant 0 : index
    %c0_0 = arith.constant 0 : index
    %c0_1 = arith.constant 0 : index
    %0 = vector.load %arg1[%c0, %c0_0, %c0_1] : memref<1x8x32xf32, #tpu.memory_space<vmem>>, vector<1x8x32xf32>
    %1 = vector.shape_cast %0 : vector<1x8x32xf32> to vector<8x32xf32>
    %c0_2 = arith.constant 0 : index
    %c0_3 = arith.constant 0 : index
    %c0_4 = arith.constant 0 : index
    %2 = vector.load %arg2[%c0_2, %c0_3, %c0_4] : memref<1x8x32xf32, #tpu.memory_space<vmem>>, vector<1x8x32xf32>
    %3 = vector.shape_cast %2 : vector<1x8x32xf32> to vector<8x32xf32>
    %c0_5 = arith.constant 0 : index
    %c0_6 = arith.constant 0 : index
    %c0_7 = arith.constant 0 : index
    %4 = vector.load %arg3[%c0_5, %c0_6, %c0_7] : memref<1x16x32xbf16, #tpu.memory_space<vmem>>, vector<1x16x32xbf16>
    %5 = vector.shape_cast %4 : vector<1x16x32xbf16> to vector<16x32xbf16>
    %c0_8 = arith.constant 0 : index
    %c0_9 = arith.constant 0 : index
    %c0_10 = arith.constant 0 : index
    %6 = vector.load %arg4[%c0_8, %c0_9, %c0_10] : memref<1x16x32xbf16, #tpu.memory_space<vmem>>, vector<1x16x32xbf16>
    %7 = vector.shape_cast %6 : vector<1x16x32xbf16> to vector<16x32xbf16>
    %8 = arith.addf %1, %3 : vector<8x32xf32>
    %9 = arith.truncf %8 : vector<8x32xf32> to vector<8x32xbf16>
    %10 = arith.truncf %1 : vector<8x32xf32> to vector<8x32xbf16>
    %c0_11 = arith.constant 0 : index
    %c0_12 = arith.constant 0 : index
    %11 = vector.load %arg5[%c0_11, %c0_12] : memref<32x32xbf16, #tpu.memory_space<vmem>>, vector<32x32xbf16>
    %cst = arith.constant dense<0.000000e+00> : vector<8x32xf32>
    %12 = tpu.matmul %9, %11, %cst {dimension_numbers = #tpu.dot_dimension_numbers<[1], [0], [0], [1], [0, 0, 1, 1], [], []>} : vector<8x32xbf16>, vector<32x32xbf16>, vector<8x32xf32> -> vector<8x32xf32>
    %c0_13 = arith.constant 0 : index
    %c0_14 = arith.constant 0 : index
    %13 = vector.load %arg6[%c0_13, %c0_14] : memref<1x32xf32, #tpu.memory_space<vmem>>, vector<1x32xf32>
    %14 = vector.broadcast %13 : vector<1x32xf32> to vector<8x32xf32>
    %15 = arith.addf %12, %14 : vector<8x32xf32>
    %c0_15 = arith.constant 0 : index
    %c0_16 = arith.constant 0 : index
    %16 = vector.load %arg7[%c0_15, %c0_16] : memref<32x32xbf16, #tpu.memory_space<vmem>>, vector<32x32xbf16>
    %cst_17 = arith.constant dense<0.000000e+00> : vector<8x32xf32>
    %17 = tpu.matmul %9, %16, %cst_17 {dimension_numbers = #tpu.dot_dimension_numbers<[1], [0], [0], [1], [0, 0, 1, 1], [], []>} : vector<8x32xbf16>, vector<32x32xbf16>, vector<8x32xf32> -> vector<8x32xf32>
    %c0_18 = arith.constant 0 : index
    %c0_19 = arith.constant 0 : index
    %18 = vector.load %arg8[%c0_18, %c0_19] : memref<1x32xf32, #tpu.memory_space<vmem>>, vector<1x32xf32>
    %19 = vector.broadcast %18 : vector<1x32xf32> to vector<8x32xf32>
    %20 = arith.addf %17, %19 : vector<8x32xf32>
    %c0_20 = arith.constant 0 : index
    %c0_21 = arith.constant 0 : index
    %21 = vector.load %arg9[%c0_20, %c0_21] : memref<32x32xbf16, #tpu.memory_space<vmem>>, vector<32x32xbf16>
    %cst_22 = arith.constant dense<0.000000e+00> : vector<8x32xf32>
    %22 = tpu.matmul %10, %21, %cst_22 {dimension_numbers = #tpu.dot_dimension_numbers<[1], [0], [0], [1], [0, 0, 1, 1], [], []>} : vector<8x32xbf16>, vector<32x32xbf16>, vector<8x32xf32> -> vector<8x32xf32>
    %c0_23 = arith.constant 0 : index
    %c0_24 = arith.constant 0 : index
    %23 = vector.load %arg10[%c0_23, %c0_24] : memref<1x32xf32, #tpu.memory_space<vmem>>, vector<1x32xf32>
    %24 = vector.broadcast %23 : vector<1x32xf32> to vector<8x32xf32>
    %25 = arith.addf %22, %24 : vector<8x32xf32>
    %26 = arith.truncf %15 : vector<8x32xf32> to vector<8x32xbf16>
    %27 = arith.truncf %20 : vector<8x32xf32> to vector<8x32xbf16>
    %28 = arith.truncf %25 : vector<8x32xf32> to vector<8x32xbf16>
    %c0_25 = arith.constant 0 : index
    %c0_26 = arith.constant 0 : index
    %29 = vector.load %arg11[%c0_25, %c0_26] : memref<32x32xbf16, #tpu.memory_space<vmem>>, vector<32x32xbf16>
    %c0_27 = arith.constant 0 : index
    %c0_28 = arith.constant 0 : index
    %30 = vector.load %arg12[%c0_27, %c0_28] : memref<1x32xf32, #tpu.memory_space<vmem>>, vector<1x32xf32>
    %31 = vector.broadcast %30 : vector<1x32xf32> to vector<8x32xf32>
    %32 = arith.addf %1, %31 : vector<8x32xf32>
    %33 = vector.extract_strided_slice %26 {offsets = [0, 0], sizes = [8, 8], strides = [1, 1]} : vector<8x32xbf16> to vector<8x8xbf16>
    %34 = vector.extract_strided_slice %27 {offsets = [0, 0], sizes = [8, 8], strides = [1, 1]} : vector<8x32xbf16> to vector<8x8xbf16>
    %35 = vector.extract_strided_slice %28 {offsets = [0, 0], sizes = [8, 8], strides = [1, 1]} : vector<8x32xbf16> to vector<8x8xbf16>
    %cst_29 = arith.constant dense<0.000000e+00> : vector<8x8xf32>
    %36 = tpu.matmul %33, %34, %cst_29 {dimension_numbers = #tpu.dot_dimension_numbers<[1], [1], [0], [0], [0, 0, 1, 0], [], []>} : vector<8x8xbf16>, vector<8x8xbf16>, vector<8x8xf32> -> vector<8x8xf32>
    %cst_30 = arith.constant dense<0xFF800000> : vector<8xf32>
    %37 = vector.multi_reduction <maximumf>, %36, %cst_30 [1] : vector<8x8xf32> to vector<8xf32>
    %38 = vector.shape_cast %37 : vector<8xf32> to vector<8x1xf32>
    %39 = vector.broadcast %38 : vector<8x1xf32> to vector<8x8xf32>
    %40 = arith.subf %36, %39 : vector<8x8xf32>
    %41 = math.exp %40 : vector<8x8xf32>
    %cst_31 = arith.constant dense<0.000000e+00> : vector<8xf32>
    %42 = vector.multi_reduction <add>, %41, %cst_31 [1] : vector<8x8xf32> to vector<8xf32>
    %43 = vector.shape_cast %42 : vector<8xf32> to vector<8x1xf32>
    %44 = tpu.reciprocal %43 {approx = true} : vector<8x1xf32> -> vector<8x1xf32>
    %45 = vector.broadcast %44 : vector<8x1xf32> to vector<8x8xf32>
    %46 = arith.mulf %41, %45 : vector<8x8xf32>
    %47 = arith.truncf %46 : vector<8x8xf32> to vector<8x8xbf16>
    %cst_32 = arith.constant dense<0.000000e+00> : vector<8x8xf32>
    %48 = tpu.matmul %47, %35, %cst_32 {dimension_numbers = #tpu.dot_dimension_numbers<[1], [0], [0], [1], [0, 0, 1, 1], [], []>} : vector<8x8xbf16>, vector<8x8xbf16>, vector<8x8xf32> -> vector<8x8xf32>
    %49 = arith.truncf %48 : vector<8x8xf32> to vector<8x8xbf16>
    %50 = vector.extract_strided_slice %29 {offsets = [0, 0], sizes = [8, 32], strides = [1, 1]} : vector<32x32xbf16> to vector<8x32xbf16>
    %cst_33 = arith.constant dense<0.000000e+00> : vector<8x32xf32>
    %51 = tpu.matmul %49, %50, %cst_33 {dimension_numbers = #tpu.dot_dimension_numbers<[1], [0], [0], [1], [0, 0, 1, 1], [], []>} : vector<8x8xbf16>, vector<8x32xbf16>, vector<8x32xf32> -> vector<8x32xf32>
    %52 = arith.addf %32, %51 : vector<8x32xf32>
    %53 = vector.extract_strided_slice %26 {offsets = [0, 8], sizes = [8, 8], strides = [1, 1]} : vector<8x32xbf16> to vector<8x8xbf16>
    %54 = vector.extract_strided_slice %27 {offsets = [0, 8], sizes = [8, 8], strides = [1, 1]} : vector<8x32xbf16> to vector<8x8xbf16>
    %55 = vector.extract_strided_slice %28 {offsets = [0, 8], sizes = [8, 8], strides = [1, 1]} : vector<8x32xbf16> to vector<8x8xbf16>
    %cst_34 = arith.constant dense<0.000000e+00> : vector<8x8xf32>
    %56 = tpu.matmul %53, %54, %cst_34 {dimension_numbers = #tpu.dot_dimension_numbers<[1], [1], [0], [0], [0, 0, 1, 0], [], []>} : vector<8x8xbf16>, vector<8x8xbf16>, vector<8x8xf32> -> vector<8x8xf32>
    %cst_35 = arith.constant dense<0xFF800000> : vector<8xf32>
    %57 = vector.multi_reduction <maximumf>, %56, %cst_35 [1] : vector<8x8xf32> to vector<8xf32>
    %58 = vector.shape_cast %57 : vector<8xf32> to vector<8x1xf32>
    %59 = vector.broadcast %58 : vector<8x1xf32> to vector<8x8xf32>
    %60 = arith.subf %56, %59 : vector<8x8xf32>
    %61 = math.exp %60 : vector<8x8xf32>
    %cst_36 = arith.constant dense<0.000000e+00> : vector<8xf32>
    %62 = vector.multi_reduction <add>, %61, %cst_36 [1] : vector<8x8xf32> to vector<8xf32>
    %63 = vector.shape_cast %62 : vector<8xf32> to vector<8x1xf32>
    %64 = tpu.reciprocal %63 {approx = true} : vector<8x1xf32> -> vector<8x1xf32>
    %65 = vector.broadcast %64 : vector<8x1xf32> to vector<8x8xf32>
    %66 = arith.mulf %61, %65 : vector<8x8xf32>
    %67 = arith.truncf %66 : vector<8x8xf32> to vector<8x8xbf16>
    %cst_37 = arith.constant dense<0.000000e+00> : vector<8x8xf32>
    %68 = tpu.matmul %67, %55, %cst_37 {dimension_numbers = #tpu.dot_dimension_numbers<[1], [0], [0], [1], [0, 0, 1, 1], [], []>} : vector<8x8xbf16>, vector<8x8xbf16>, vector<8x8xf32> -> vector<8x8xf32>
    %69 = arith.truncf %68 : vector<8x8xf32> to vector<8x8xbf16>
    %70 = vector.extract_strided_slice %29 {offsets = [8, 0], sizes = [8, 32], strides = [1, 1]} : vector<32x32xbf16> to vector<8x32xbf16>
    %cst_38 = arith.constant dense<0.000000e+00> : vector<8x32xf32>
    %71 = tpu.matmul %69, %70, %cst_38 {dimension_numbers = #tpu.dot_dimension_numbers<[1], [0], [0], [1], [0, 0, 1, 1], [], []>} : vector<8x8xbf16>, vector<8x32xbf16>, vector<8x32xf32> -> vector<8x32xf32>
    %72 = arith.addf %52, %71 : vector<8x32xf32>
    %73 = vector.extract_strided_slice %26 {offsets = [0, 16], sizes = [8, 8], strides = [1, 1]} : vector<8x32xbf16> to vector<8x8xbf16>
    %74 = vector.extract_strided_slice %27 {offsets = [0, 16], sizes = [8, 8], strides = [1, 1]} : vector<8x32xbf16> to vector<8x8xbf16>
    %75 = vector.extract_strided_slice %28 {offsets = [0, 16], sizes = [8, 8], strides = [1, 1]} : vector<8x32xbf16> to vector<8x8xbf16>
    %cst_39 = arith.constant dense<0.000000e+00> : vector<8x8xf32>
    %76 = tpu.matmul %73, %74, %cst_39 {dimension_numbers = #tpu.dot_dimension_numbers<[1], [1], [0], [0], [0, 0, 1, 0], [], []>} : vector<8x8xbf16>, vector<8x8xbf16>, vector<8x8xf32> -> vector<8x8xf32>
    %cst_40 = arith.constant dense<0xFF800000> : vector<8xf32>
    %77 = vector.multi_reduction <maximumf>, %76, %cst_40 [1] : vector<8x8xf32> to vector<8xf32>
    %78 = vector.shape_cast %77 : vector<8xf32> to vector<8x1xf32>
    %79 = vector.broadcast %78 : vector<8x1xf32> to vector<8x8xf32>
    %80 = arith.subf %76, %79 : vector<8x8xf32>
    %81 = math.exp %80 : vector<8x8xf32>
    %cst_41 = arith.constant dense<0.000000e+00> : vector<8xf32>
    %82 = vector.multi_reduction <add>, %81, %cst_41 [1] : vector<8x8xf32> to vector<8xf32>
    %83 = vector.shape_cast %82 : vector<8xf32> to vector<8x1xf32>
    %84 = tpu.reciprocal %83 {approx = true} : vector<8x1xf32> -> vector<8x1xf32>
    %85 = vector.broadcast %84 : vector<8x1xf32> to vector<8x8xf32>
    %86 = arith.mulf %81, %85 : vector<8x8xf32>
    %87 = arith.truncf %86 : vector<8x8xf32> to vector<8x8xbf16>
    %cst_42 = arith.constant dense<0.000000e+00> : vector<8x8xf32>
    %88 = tpu.matmul %87, %75, %cst_42 {dimension_numbers = #tpu.dot_dimension_numbers<[1], [0], [0], [1], [0, 0, 1, 1], [], []>} : vector<8x8xbf16>, vector<8x8xbf16>, vector<8x8xf32> -> vector<8x8xf32>
    %89 = arith.truncf %88 : vector<8x8xf32> to vector<8x8xbf16>
    %90 = vector.extract_strided_slice %29 {offsets = [16, 0], sizes = [8, 32], strides = [1, 1]} : vector<32x32xbf16> to vector<8x32xbf16>
    %cst_43 = arith.constant dense<0.000000e+00> : vector<8x32xf32>
    %91 = tpu.matmul %89, %90, %cst_43 {dimension_numbers = #tpu.dot_dimension_numbers<[1], [0], [0], [1], [0, 0, 1, 1], [], []>} : vector<8x8xbf16>, vector<8x32xbf16>, vector<8x32xf32> -> vector<8x32xf32>
    %92 = arith.addf %72, %91 : vector<8x32xf32>
    %93 = vector.extract_strided_slice %26 {offsets = [0, 24], sizes = [8, 8], strides = [1, 1]} : vector<8x32xbf16> to vector<8x8xbf16>
    %94 = vector.extract_strided_slice %27 {offsets = [0, 24], sizes = [8, 8], strides = [1, 1]} : vector<8x32xbf16> to vector<8x8xbf16>
    %95 = vector.extract_strided_slice %28 {offsets = [0, 24], sizes = [8, 8], strides = [1, 1]} : vector<8x32xbf16> to vector<8x8xbf16>
    %cst_44 = arith.constant dense<0.000000e+00> : vector<8x8xf32>
    %96 = tpu.matmul %93, %94, %cst_44 {dimension_numbers = #tpu.dot_dimension_numbers<[1], [1], [0], [0], [0, 0, 1, 0], [], []>} : vector<8x8xbf16>, vector<8x8xbf16>, vector<8x8xf32> -> vector<8x8xf32>
    %cst_45 = arith.constant dense<0xFF800000> : vector<8xf32>
    %97 = vector.multi_reduction <maximumf>, %96, %cst_45 [1] : vector<8x8xf32> to vector<8xf32>
    %98 = vector.shape_cast %97 : vector<8xf32> to vector<8x1xf32>
    %99 = vector.broadcast %98 : vector<8x1xf32> to vector<8x8xf32>
    %100 = arith.subf %96, %99 : vector<8x8xf32>
    %101 = math.exp %100 : vector<8x8xf32>
    %cst_46 = arith.constant dense<0.000000e+00> : vector<8xf32>
    %102 = vector.multi_reduction <add>, %101, %cst_46 [1] : vector<8x8xf32> to vector<8xf32>
    %103 = vector.shape_cast %102 : vector<8xf32> to vector<8x1xf32>
    %104 = tpu.reciprocal %103 {approx = true} : vector<8x1xf32> -> vector<8x1xf32>
    %105 = vector.broadcast %104 : vector<8x1xf32> to vector<8x8xf32>
    %106 = arith.mulf %101, %105 : vector<8x8xf32>
    %107 = arith.truncf %106 : vector<8x8xf32> to vector<8x8xbf16>
    %cst_47 = arith.constant dense<0.000000e+00> : vector<8x8xf32>
    %108 = tpu.matmul %107, %95, %cst_47 {dimension_numbers = #tpu.dot_dimension_numbers<[1], [0], [0], [1], [0, 0, 1, 1], [], []>} : vector<8x8xbf16>, vector<8x8xbf16>, vector<8x8xf32> -> vector<8x8xf32>
    %109 = arith.truncf %108 : vector<8x8xf32> to vector<8x8xbf16>
    %110 = vector.extract_strided_slice %29 {offsets = [24, 0], sizes = [8, 32], strides = [1, 1]} : vector<32x32xbf16> to vector<8x32xbf16>
    %cst_48 = arith.constant dense<0.000000e+00> : vector<8x32xf32>
    %111 = tpu.matmul %109, %110, %cst_48 {dimension_numbers = #tpu.dot_dimension_numbers<[1], [0], [0], [1], [0, 0, 1, 1], [], []>} : vector<8x8xbf16>, vector<8x32xbf16>, vector<8x32xf32> -> vector<8x32xf32>
    %112 = arith.addf %92, %111 : vector<8x32xf32>
    %cst_49 = arith.constant dense<0.000000e+00> : vector<8xf32>
    %113 = vector.multi_reduction <add>, %112, %cst_49 [1] : vector<8x32xf32> to vector<8xf32>
    %114 = vector.shape_cast %113 : vector<8xf32> to vector<8x1xf32>
    %cst_50 = arith.constant 3.200000e+01 : f32
    %115 = vector.broadcast %cst_50 : f32 to vector<8x1xf32>
    %116 = arith.divf %114, %115 : vector<8x1xf32>
    %117 = vector.broadcast %116 : vector<8x1xf32> to vector<8x32xf32>
    %118 = arith.subf %112, %117 : vector<8x32xf32>
    %119 = arith.mulf %118, %118 : vector<8x32xf32>
    %cst_51 = arith.constant dense<0.000000e+00> : vector<8xf32>
    %120 = vector.multi_reduction <add>, %119, %cst_51 [1] : vector<8x32xf32> to vector<8xf32>
    %121 = vector.shape_cast %120 : vector<8xf32> to vector<8x1xf32>
    %cst_52 = arith.constant 3.200000e+01 : f32
    %122 = vector.broadcast %cst_52 : f32 to vector<8x1xf32>
    %123 = arith.divf %121, %122 : vector<8x1xf32>
    %124 = vector.broadcast %116 : vector<8x1xf32> to vector<8x32xf32>
    %125 = arith.subf %112, %124 : vector<8x32xf32>
    %cst_53 = arith.constant 9.99999974E-6 : f32
    %126 = vector.broadcast %cst_53 : f32 to vector<8x1xf32>
    %127 = arith.addf %123, %126 : vector<8x1xf32>
    %128 = math.rsqrt %127 : vector<8x1xf32>
    %129 = vector.broadcast %128 : vector<8x1xf32> to vector<8x32xf32>
    %130 = arith.mulf %125, %129 : vector<8x32xf32>
    %c0_54 = arith.constant 0 : index
    %c0_55 = arith.constant 0 : index
    %131 = vector.load %arg13[%c0_54, %c0_55] : memref<1x32xf32, #tpu.memory_space<vmem>>, vector<1x32xf32>
    %132 = vector.broadcast %131 : vector<1x32xf32> to vector<8x32xf32>
    %133 = arith.mulf %130, %132 : vector<8x32xf32>
    %c0_56 = arith.constant 0 : index
    %c0_57 = arith.constant 0 : index
    %134 = vector.load %arg14[%c0_56, %c0_57] : memref<1x32xf32, #tpu.memory_space<vmem>>, vector<1x32xf32>
    %135 = vector.broadcast %134 : vector<1x32xf32> to vector<8x32xf32>
    %136 = arith.addf %133, %135 : vector<8x32xf32>
    %137 = arith.addf %136, %3 : vector<8x32xf32>
    %138 = arith.truncf %137 : vector<8x32xf32> to vector<8x32xbf16>
    %c0_58 = arith.constant 0 : index
    %c0_59 = arith.constant 0 : index
    %139 = vector.load %arg15[%c0_58, %c0_59] : memref<32x32xbf16, #tpu.memory_space<vmem>>, vector<32x32xbf16>
    %cst_60 = arith.constant dense<0.000000e+00> : vector<8x32xf32>
    %140 = tpu.matmul %138, %139, %cst_60 {dimension_numbers = #tpu.dot_dimension_numbers<[1], [0], [0], [1], [0, 0, 1, 1], [], []>} : vector<8x32xbf16>, vector<32x32xbf16>, vector<8x32xf32> -> vector<8x32xf32>
    %c0_61 = arith.constant 0 : index
    %c0_62 = arith.constant 0 : index
    %141 = vector.load %arg16[%c0_61, %c0_62] : memref<1x32xf32, #tpu.memory_space<vmem>>, vector<1x32xf32>
    %142 = vector.broadcast %141 : vector<1x32xf32> to vector<8x32xf32>
    %143 = arith.addf %140, %142 : vector<8x32xf32>
    %c0_63 = arith.constant 0 : index
    %c0_64 = arith.constant 0 : index
    %144 = vector.load %arg17[%c0_63, %c0_64] : memref<32x32xbf16, #tpu.memory_space<vmem>>, vector<32x32xbf16>
    %cst_65 = arith.constant dense<0.000000e+00> : vector<16x32xf32>
    %145 = tpu.matmul %5, %144, %cst_65 {dimension_numbers = #tpu.dot_dimension_numbers<[1], [0], [0], [1], [0, 0, 1, 1], [], []>} : vector<16x32xbf16>, vector<32x32xbf16>, vector<16x32xf32> -> vector<16x32xf32>
    %c0_66 = arith.constant 0 : index
    %c0_67 = arith.constant 0 : index
    %146 = vector.load %arg18[%c0_66, %c0_67] : memref<1x32xf32, #tpu.memory_space<vmem>>, vector<1x32xf32>
    %147 = vector.broadcast %146 : vector<1x32xf32> to vector<16x32xf32>
    %148 = arith.addf %145, %147 : vector<16x32xf32>
    %c0_68 = arith.constant 0 : index
    %c0_69 = arith.constant 0 : index
    %149 = vector.load %arg19[%c0_68, %c0_69] : memref<32x32xbf16, #tpu.memory_space<vmem>>, vector<32x32xbf16>
    %cst_70 = arith.constant dense<0.000000e+00> : vector<16x32xf32>
    %150 = tpu.matmul %7, %149, %cst_70 {dimension_numbers = #tpu.dot_dimension_numbers<[1], [0], [0], [1], [0, 0, 1, 1], [], []>} : vector<16x32xbf16>, vector<32x32xbf16>, vector<16x32xf32> -> vector<16x32xf32>
    %c0_71 = arith.constant 0 : index
    %c0_72 = arith.constant 0 : index
    %151 = vector.load %arg20[%c0_71, %c0_72] : memref<1x32xf32, #tpu.memory_space<vmem>>, vector<1x32xf32>
    %152 = vector.broadcast %151 : vector<1x32xf32> to vector<16x32xf32>
    %153 = arith.addf %150, %152 : vector<16x32xf32>
    %154 = arith.truncf %143 : vector<8x32xf32> to vector<8x32xbf16>
    %155 = arith.truncf %148 : vector<16x32xf32> to vector<16x32xbf16>
    %156 = arith.truncf %153 : vector<16x32xf32> to vector<16x32xbf16>
    %c0_73 = arith.constant 0 : index
    %c0_74 = arith.constant 0 : index
    %157 = vector.load %arg21[%c0_73, %c0_74] : memref<32x32xbf16, #tpu.memory_space<vmem>>, vector<32x32xbf16>
    %c0_75 = arith.constant 0 : index
    %c0_76 = arith.constant 0 : index
    %158 = vector.load %arg22[%c0_75, %c0_76] : memref<1x32xf32, #tpu.memory_space<vmem>>, vector<1x32xf32>
    %159 = vector.broadcast %158 : vector<1x32xf32> to vector<8x32xf32>
    %160 = arith.addf %136, %159 : vector<8x32xf32>
    %161 = vector.extract_strided_slice %154 {offsets = [0, 0], sizes = [8, 8], strides = [1, 1]} : vector<8x32xbf16> to vector<8x8xbf16>
    %162 = vector.extract_strided_slice %155 {offsets = [0, 0], sizes = [16, 8], strides = [1, 1]} : vector<16x32xbf16> to vector<16x8xbf16>
    %163 = vector.extract_strided_slice %156 {offsets = [0, 0], sizes = [16, 8], strides = [1, 1]} : vector<16x32xbf16> to vector<16x8xbf16>
    %cst_77 = arith.constant dense<0.000000e+00> : vector<8x16xf32>
    %164 = tpu.matmul %161, %162, %cst_77 {dimension_numbers = #tpu.dot_dimension_numbers<[1], [1], [0], [0], [0, 0, 1, 0], [], []>} : vector<8x8xbf16>, vector<16x8xbf16>, vector<8x16xf32> -> vector<8x16xf32>
    %cst_78 = arith.constant dense<0xFF800000> : vector<8xf32>
    %165 = vector.multi_reduction <maximumf>, %164, %cst_78 [1] : vector<8x16xf32> to vector<8xf32>
    %166 = vector.shape_cast %165 : vector<8xf32> to vector<8x1xf32>
    %167 = vector.broadcast %166 : vector<8x1xf32> to vector<8x16xf32>
    %168 = arith.subf %164, %167 : vector<8x16xf32>
    %169 = math.exp %168 : vector<8x16xf32>
    %cst_79 = arith.constant dense<0.000000e+00> : vector<8xf32>
    %170 = vector.multi_reduction <add>, %169, %cst_79 [1] : vector<8x16xf32> to vector<8xf32>
    %171 = vector.shape_cast %170 : vector<8xf32> to vector<8x1xf32>
    %172 = tpu.reciprocal %171 {approx = true} : vector<8x1xf32> -> vector<8x1xf32>
    %173 = vector.broadcast %172 : vector<8x1xf32> to vector<8x16xf32>
    %174 = arith.mulf %169, %173 : vector<8x16xf32>
    %175 = arith.truncf %174 : vector<8x16xf32> to vector<8x16xbf16>
    %cst_80 = arith.constant dense<0.000000e+00> : vector<8x8xf32>
    %176 = tpu.matmul %175, %163, %cst_80 {dimension_numbers = #tpu.dot_dimension_numbers<[1], [0], [0], [1], [0, 0, 1, 1], [], []>} : vector<8x16xbf16>, vector<16x8xbf16>, vector<8x8xf32> -> vector<8x8xf32>
    %177 = arith.truncf %176 : vector<8x8xf32> to vector<8x8xbf16>
    %178 = vector.extract_strided_slice %157 {offsets = [0, 0], sizes = [8, 32], strides = [1, 1]} : vector<32x32xbf16> to vector<8x32xbf16>
    %cst_81 = arith.constant dense<0.000000e+00> : vector<8x32xf32>
    %179 = tpu.matmul %177, %178, %cst_81 {dimension_numbers = #tpu.dot_dimension_numbers<[1], [0], [0], [1], [0, 0, 1, 1], [], []>} : vector<8x8xbf16>, vector<8x32xbf16>, vector<8x32xf32> -> vector<8x32xf32>
    %180 = arith.addf %160, %179 : vector<8x32xf32>
    %181 = vector.extract_strided_slice %154 {offsets = [0, 8], sizes = [8, 8], strides = [1, 1]} : vector<8x32xbf16> to vector<8x8xbf16>
    %182 = vector.extract_strided_slice %155 {offsets = [0, 8], sizes = [16, 8], strides = [1, 1]} : vector<16x32xbf16> to vector<16x8xbf16>
    %183 = vector.extract_strided_slice %156 {offsets = [0, 8], sizes = [16, 8], strides = [1, 1]} : vector<16x32xbf16> to vector<16x8xbf16>
    %cst_82 = arith.constant dense<0.000000e+00> : vector<8x16xf32>
    %184 = tpu.matmul %181, %182, %cst_82 {dimension_numbers = #tpu.dot_dimension_numbers<[1], [1], [0], [0], [0, 0, 1, 0], [], []>} : vector<8x8xbf16>, vector<16x8xbf16>, vector<8x16xf32> -> vector<8x16xf32>
    %cst_83 = arith.constant dense<0xFF800000> : vector<8xf32>
    %185 = vector.multi_reduction <maximumf>, %184, %cst_83 [1] : vector<8x16xf32> to vector<8xf32>
    %186 = vector.shape_cast %185 : vector<8xf32> to vector<8x1xf32>
    %187 = vector.broadcast %186 : vector<8x1xf32> to vector<8x16xf32>
    %188 = arith.subf %184, %187 : vector<8x16xf32>
    %189 = math.exp %188 : vector<8x16xf32>
    %cst_84 = arith.constant dense<0.000000e+00> : vector<8xf32>
    %190 = vector.multi_reduction <add>, %189, %cst_84 [1] : vector<8x16xf32> to vector<8xf32>
    %191 = vector.shape_cast %190 : vector<8xf32> to vector<8x1xf32>
    %192 = tpu.reciprocal %191 {approx = true} : vector<8x1xf32> -> vector<8x1xf32>
    %193 = vector.broadcast %192 : vector<8x1xf32> to vector<8x16xf32>
    %194 = arith.mulf %189, %193 : vector<8x16xf32>
    %195 = arith.truncf %194 : vector<8x16xf32> to vector<8x16xbf16>
    %cst_85 = arith.constant dense<0.000000e+00> : vector<8x8xf32>
    %196 = tpu.matmul %195, %183, %cst_85 {dimension_numbers = #tpu.dot_dimension_numbers<[1], [0], [0], [1], [0, 0, 1, 1], [], []>} : vector<8x16xbf16>, vector<16x8xbf16>, vector<8x8xf32> -> vector<8x8xf32>
    %197 = arith.truncf %196 : vector<8x8xf32> to vector<8x8xbf16>
    %198 = vector.extract_strided_slice %157 {offsets = [8, 0], sizes = [8, 32], strides = [1, 1]} : vector<32x32xbf16> to vector<8x32xbf16>
    %cst_86 = arith.constant dense<0.000000e+00> : vector<8x32xf32>
    %199 = tpu.matmul %197, %198, %cst_86 {dimension_numbers = #tpu.dot_dimension_numbers<[1], [0], [0], [1], [0, 0, 1, 1], [], []>} : vector<8x8xbf16>, vector<8x32xbf16>, vector<8x32xf32> -> vector<8x32xf32>
    %200 = arith.addf %180, %199 : vector<8x32xf32>
    %201 = vector.extract_strided_slice %154 {offsets = [0, 16], sizes = [8, 8], strides = [1, 1]} : vector<8x32xbf16> to vector<8x8xbf16>
    %202 = vector.extract_strided_slice %155 {offsets = [0, 16], sizes = [16, 8], strides = [1, 1]} : vector<16x32xbf16> to vector<16x8xbf16>
    %203 = vector.extract_strided_slice %156 {offsets = [0, 16], sizes = [16, 8], strides = [1, 1]} : vector<16x32xbf16> to vector<16x8xbf16>
    %cst_87 = arith.constant dense<0.000000e+00> : vector<8x16xf32>
    %204 = tpu.matmul %201, %202, %cst_87 {dimension_numbers = #tpu.dot_dimension_numbers<[1], [1], [0], [0], [0, 0, 1, 0], [], []>} : vector<8x8xbf16>, vector<16x8xbf16>, vector<8x16xf32> -> vector<8x16xf32>
    %cst_88 = arith.constant dense<0xFF800000> : vector<8xf32>
    %205 = vector.multi_reduction <maximumf>, %204, %cst_88 [1] : vector<8x16xf32> to vector<8xf32>
    %206 = vector.shape_cast %205 : vector<8xf32> to vector<8x1xf32>
    %207 = vector.broadcast %206 : vector<8x1xf32> to vector<8x16xf32>
    %208 = arith.subf %204, %207 : vector<8x16xf32>
    %209 = math.exp %208 : vector<8x16xf32>
    %cst_89 = arith.constant dense<0.000000e+00> : vector<8xf32>
    %210 = vector.multi_reduction <add>, %209, %cst_89 [1] : vector<8x16xf32> to vector<8xf32>
    %211 = vector.shape_cast %210 : vector<8xf32> to vector<8x1xf32>
    %212 = tpu.reciprocal %211 {approx = true} : vector<8x1xf32> -> vector<8x1xf32>
    %213 = vector.broadcast %212 : vector<8x1xf32> to vector<8x16xf32>
    %214 = arith.mulf %209, %213 : vector<8x16xf32>
    %215 = arith.truncf %214 : vector<8x16xf32> to vector<8x16xbf16>
    %cst_90 = arith.constant dense<0.000000e+00> : vector<8x8xf32>
    %216 = tpu.matmul %215, %203, %cst_90 {dimension_numbers = #tpu.dot_dimension_numbers<[1], [0], [0], [1], [0, 0, 1, 1], [], []>} : vector<8x16xbf16>, vector<16x8xbf16>, vector<8x8xf32> -> vector<8x8xf32>
    %217 = arith.truncf %216 : vector<8x8xf32> to vector<8x8xbf16>
    %218 = vector.extract_strided_slice %157 {offsets = [16, 0], sizes = [8, 32], strides = [1, 1]} : vector<32x32xbf16> to vector<8x32xbf16>
    %cst_91 = arith.constant dense<0.000000e+00> : vector<8x32xf32>
    %219 = tpu.matmul %217, %218, %cst_91 {dimension_numbers = #tpu.dot_dimension_numbers<[1], [0], [0], [1], [0, 0, 1, 1], [], []>} : vector<8x8xbf16>, vector<8x32xbf16>, vector<8x32xf32> -> vector<8x32xf32>
    %220 = arith.addf %200, %219 : vector<8x32xf32>
    %221 = vector.extract_strided_slice %154 {offsets = [0, 24], sizes = [8, 8], strides = [1, 1]} : vector<8x32xbf16> to vector<8x8xbf16>
    %222 = vector.extract_strided_slice %155 {offsets = [0, 24], sizes = [16, 8], strides = [1, 1]} : vector<16x32xbf16> to vector<16x8xbf16>
    %223 = vector.extract_strided_slice %156 {offsets = [0, 24], sizes = [16, 8], strides = [1, 1]} : vector<16x32xbf16> to vector<16x8xbf16>
    %cst_92 = arith.constant dense<0.000000e+00> : vector<8x16xf32>
    %224 = tpu.matmul %221, %222, %cst_92 {dimension_numbers = #tpu.dot_dimension_numbers<[1], [1], [0], [0], [0, 0, 1, 0], [], []>} : vector<8x8xbf16>, vector<16x8xbf16>, vector<8x16xf32> -> vector<8x16xf32>
    %cst_93 = arith.constant dense<0xFF800000> : vector<8xf32>
    %225 = vector.multi_reduction <maximumf>, %224, %cst_93 [1] : vector<8x16xf32> to vector<8xf32>
    %226 = vector.shape_cast %225 : vector<8xf32> to vector<8x1xf32>
    %227 = vector.broadcast %226 : vector<8x1xf32> to vector<8x16xf32>
    %228 = arith.subf %224, %227 : vector<8x16xf32>
    %229 = math.exp %228 : vector<8x16xf32>
    %cst_94 = arith.constant dense<0.000000e+00> : vector<8xf32>
    %230 = vector.multi_reduction <add>, %229, %cst_94 [1] : vector<8x16xf32> to vector<8xf32>
    %231 = vector.shape_cast %230 : vector<8xf32> to vector<8x1xf32>
    %232 = tpu.reciprocal %231 {approx = true} : vector<8x1xf32> -> vector<8x1xf32>
    %233 = vector.broadcast %232 : vector<8x1xf32> to vector<8x16xf32>
    %234 = arith.mulf %229, %233 : vector<8x16xf32>
    %235 = arith.truncf %234 : vector<8x16xf32> to vector<8x16xbf16>
    %cst_95 = arith.constant dense<0.000000e+00> : vector<8x8xf32>
    %236 = tpu.matmul %235, %223, %cst_95 {dimension_numbers = #tpu.dot_dimension_numbers<[1], [0], [0], [1], [0, 0, 1, 1], [], []>} : vector<8x16xbf16>, vector<16x8xbf16>, vector<8x8xf32> -> vector<8x8xf32>
    %237 = arith.truncf %236 : vector<8x8xf32> to vector<8x8xbf16>
    %238 = vector.extract_strided_slice %157 {offsets = [24, 0], sizes = [8, 32], strides = [1, 1]} : vector<32x32xbf16> to vector<8x32xbf16>
    %cst_96 = arith.constant dense<0.000000e+00> : vector<8x32xf32>
    %239 = tpu.matmul %237, %238, %cst_96 {dimension_numbers = #tpu.dot_dimension_numbers<[1], [0], [0], [1], [0, 0, 1, 1], [], []>} : vector<8x8xbf16>, vector<8x32xbf16>, vector<8x32xf32> -> vector<8x32xf32>
    %240 = arith.addf %220, %239 : vector<8x32xf32>
    %cst_97 = arith.constant dense<0.000000e+00> : vector<8xf32>
    %241 = vector.multi_reduction <add>, %240, %cst_97 [1] : vector<8x32xf32> to vector<8xf32>
    %242 = vector.shape_cast %241 : vector<8xf32> to vector<8x1xf32>
    %cst_98 = arith.constant 3.200000e+01 : f32
    %243 = vector.broadcast %cst_98 : f32 to vector<8x1xf32>
    %244 = arith.divf %242, %243 : vector<8x1xf32>
    %245 = vector.broadcast %244 : vector<8x1xf32> to vector<8x32xf32>
    %246 = arith.subf %240, %245 : vector<8x32xf32>
    %247 = arith.mulf %246, %246 : vector<8x32xf32>
    %cst_99 = arith.constant dense<0.000000e+00> : vector<8xf32>
    %248 = vector.multi_reduction <add>, %247, %cst_99 [1] : vector<8x32xf32> to vector<8xf32>
    %249 = vector.shape_cast %248 : vector<8xf32> to vector<8x1xf32>
    %cst_100 = arith.constant 3.200000e+01 : f32
    %250 = vector.broadcast %cst_100 : f32 to vector<8x1xf32>
    %251 = arith.divf %249, %250 : vector<8x1xf32>
    %252 = vector.broadcast %244 : vector<8x1xf32> to vector<8x32xf32>
    %253 = arith.subf %240, %252 : vector<8x32xf32>
    %cst_101 = arith.constant 9.99999974E-6 : f32
    %254 = vector.broadcast %cst_101 : f32 to vector<8x1xf32>
    %255 = arith.addf %251, %254 : vector<8x1xf32>
    %256 = math.rsqrt %255 : vector<8x1xf32>
    %257 = vector.broadcast %256 : vector<8x1xf32> to vector<8x32xf32>
    %258 = arith.mulf %253, %257 : vector<8x32xf32>
    %c0_102 = arith.constant 0 : index
    %c0_103 = arith.constant 0 : index
    %259 = vector.load %arg23[%c0_102, %c0_103] : memref<1x32xf32, #tpu.memory_space<vmem>>, vector<1x32xf32>
    %260 = vector.broadcast %259 : vector<1x32xf32> to vector<8x32xf32>
    %261 = arith.mulf %258, %260 : vector<8x32xf32>
    %c0_104 = arith.constant 0 : index
    %c0_105 = arith.constant 0 : index
    %262 = vector.load %arg24[%c0_104, %c0_105] : memref<1x32xf32, #tpu.memory_space<vmem>>, vector<1x32xf32>
    %263 = vector.broadcast %262 : vector<1x32xf32> to vector<8x32xf32>
    %264 = arith.addf %261, %263 : vector<8x32xf32>
    %265 = arith.truncf %264 : vector<8x32xf32> to vector<8x32xbf16>
    %c0_106 = arith.constant 0 : index
    %c0_107 = arith.constant 0 : index
    %266 = vector.load %arg25[%c0_106, %c0_107] : memref<32x64xbf16, #tpu.memory_space<vmem>>, vector<32x64xbf16>
    %cst_108 = arith.constant dense<0.000000e+00> : vector<8x64xf32>
    %267 = tpu.matmul %265, %266, %cst_108 {dimension_numbers = #tpu.dot_dimension_numbers<[1], [0], [0], [1], [0, 0, 1, 1], [], []>} : vector<8x32xbf16>, vector<32x64xbf16>, vector<8x64xf32> -> vector<8x64xf32>
    %c0_109 = arith.constant 0 : index
    %c0_110 = arith.constant 0 : index
    %268 = vector.load %arg26[%c0_109, %c0_110] : memref<1x64xf32, #tpu.memory_space<vmem>>, vector<1x64xf32>
    %269 = vector.broadcast %268 : vector<1x64xf32> to vector<8x64xf32>
    %270 = arith.addf %267, %269 : vector<8x64xf32>
    %cst_111 = arith.constant 0.000000e+00 : f32
    %271 = vector.broadcast %cst_111 : f32 to vector<8x64xf32>
    %272 = arith.maximumf %270, %271 : vector<8x64xf32>
    %273 = arith.truncf %272 : vector<8x64xf32> to vector<8x64xbf16>
    %c0_112 = arith.constant 0 : index
    %c0_113 = arith.constant 0 : index
    %274 = vector.load %arg27[%c0_112, %c0_113] : memref<64x32xbf16, #tpu.memory_space<vmem>>, vector<64x32xbf16>
    %cst_114 = arith.constant dense<0.000000e+00> : vector<8x32xf32>
    %275 = tpu.matmul %273, %274, %cst_114 {dimension_numbers = #tpu.dot_dimension_numbers<[1], [0], [0], [1], [0, 0, 1, 1], [], []>} : vector<8x64xbf16>, vector<64x32xbf16>, vector<8x32xf32> -> vector<8x32xf32>
    %c0_115 = arith.constant 0 : index
    %c0_116 = arith.constant 0 : index
    %276 = vector.load %arg28[%c0_115, %c0_116] : memref<1x32xf32, #tpu.memory_space<vmem>>, vector<1x32xf32>
    %277 = vector.broadcast %276 : vector<1x32xf32> to vector<8x32xf32>
    %278 = arith.addf %275, %277 : vector<8x32xf32>
    %279 = arith.addf %264, %278 : vector<8x32xf32>
    %cst_117 = arith.constant dense<0.000000e+00> : vector<8xf32>
    %280 = vector.multi_reduction <add>, %279, %cst_117 [1] : vector<8x32xf32> to vector<8xf32>
    %281 = vector.shape_cast %280 : vector<8xf32> to vector<8x1xf32>
    %cst_118 = arith.constant 3.200000e+01 : f32
    %282 = vector.broadcast %cst_118 : f32 to vector<8x1xf32>
    %283 = arith.divf %281, %282 : vector<8x1xf32>
    %284 = vector.broadcast %283 : vector<8x1xf32> to vector<8x32xf32>
    %285 = arith.subf %279, %284 : vector<8x32xf32>
    %286 = arith.mulf %285, %285 : vector<8x32xf32>
    %cst_119 = arith.constant dense<0.000000e+00> : vector<8xf32>
    %287 = vector.multi_reduction <add>, %286, %cst_119 [1] : vector<8x32xf32> to vector<8xf32>
    %288 = vector.shape_cast %287 : vector<8xf32> to vector<8x1xf32>
    %cst_120 = arith.constant 3.200000e+01 : f32
    %289 = vector.broadcast %cst_120 : f32 to vector<8x1xf32>
    %290 = arith.divf %288, %289 : vector<8x1xf32>
    %291 = vector.broadcast %283 : vector<8x1xf32> to vector<8x32xf32>
    %292 = arith.subf %279, %291 : vector<8x32xf32>
    %cst_121 = arith.constant 9.99999974E-6 : f32
    %293 = vector.broadcast %cst_121 : f32 to vector<8x1xf32>
    %294 = arith.addf %290, %293 : vector<8x1xf32>
    %295 = math.rsqrt %294 : vector<8x1xf32>
    %296 = vector.broadcast %295 : vector<8x1xf32> to vector<8x32xf32>
    %297 = arith.mulf %292, %296 : vector<8x32xf32>
    %c0_122 = arith.constant 0 : index
    %c0_123 = arith.constant 0 : index
    %298 = vector.load %arg29[%c0_122, %c0_123] : memref<1x32xf32, #tpu.memory_space<vmem>>, vector<1x32xf32>
    %299 = vector.broadcast %298 : vector<1x32xf32> to vector<8x32xf32>
    %300 = arith.mulf %297, %299 : vector<8x32xf32>
    %c0_124 = arith.constant 0 : index
    %c0_125 = arith.constant 0 : index
    %301 = vector.load %arg30[%c0_124, %c0_125] : memref<1x32xf32, #tpu.memory_space<vmem>>, vector<1x32xf32>
    %302 = vector.broadcast %301 : vector<1x32xf32> to vector<8x32xf32>
    %303 = arith.addf %300, %302 : vector<8x32xf32>
    %c0_126 = arith.constant 0 : index
    %c0_127 = arith.constant 0 : index
    %c0_128 = arith.constant 0 : index
    %304 = vector.load %arg33[%c0_126, %c0_127, %c0_128] : memref<1x8x32xf32, #tpu.memory_space<vmem>>, vector<1x8x32xf32>
    %305 = vector.shape_cast %304 : vector<1x8x32xf32> to vector<8x32xf32>
    %306 = vector.shape_cast %303 : vector<8x32xf32> to vector<1x8x32xf32>
    tpu.vector_store %arg33[%c0_126, %c0_127, %c0_128], %306 {strides = array<i32>} : memref<1x8x32xf32, #tpu.memory_space<vmem>>, vector<1x8x32xf32>,
    %cst_129 = arith.constant dense<0.000000e+00> : vector<8xf32>
    %307 = vector.multi_reduction <add>, %303, %cst_129 [1] : vector<8x32xf32> to vector<8xf32>
    %308 = vector.shape_cast %307 : vector<8xf32> to vector<8x1xf32>
    %cst_130 = arith.constant 3.200000e+01 : f32
    %309 = vector.broadcast %cst_130 : f32 to vector<8x1xf32>
    %310 = arith.divf %308, %309 : vector<8x1xf32>
    %311 = vector.broadcast %310 : vector<8x1xf32> to vector<8x32xf32>
    %312 = arith.subf %303, %311 : vector<8x32xf32>
    %313 = arith.mulf %312, %312 : vector<8x32xf32>
    %cst_131 = arith.constant dense<0.000000e+00> : vector<8xf32>
    %314 = vector.multi_reduction <add>, %313, %cst_131 [1] : vector<8x32xf32> to vector<8xf32>
    %315 = vector.shape_cast %314 : vector<8xf32> to vector<8x1xf32>
    %cst_132 = arith.constant 3.200000e+01 : f32
    %316 = vector.broadcast %cst_132 : f32 to vector<8x1xf32>
    %317 = arith.divf %315, %316 : vector<8x1xf32>
    %318 = vector.broadcast %310 : vector<8x1xf32> to vector<8x32xf32>
    %319 = arith.subf %303, %318 : vector<8x32xf32>
    %cst_133 = arith.constant 9.99999974E-6 : f32
    %320 = vector.broadcast %cst_133 : f32 to vector<8x1xf32>
    %321 = arith.addf %317, %320 : vector<8x1xf32>
    %322 = math.rsqrt %321 : vector<8x1xf32>
    %323 = vector.broadcast %322 : vector<8x1xf32> to vector<8x32xf32>
    %324 = arith.mulf %319, %323 : vector<8x32xf32>
    %c0_134 = arith.constant 0 : index
    %c0_135 = arith.constant 0 : index
    %325 = vector.load %arg31[%c0_134, %c0_135] : memref<1x32xf32, #tpu.memory_space<vmem>>, vector<1x32xf32>
    %326 = vector.broadcast %325 : vector<1x32xf32> to vector<8x32xf32>
    %327 = arith.mulf %324, %326 : vector<8x32xf32>
    %c0_136 = arith.constant 0 : index
    %c0_137 = arith.constant 0 : index
    %328 = vector.load %arg32[%c0_136, %c0_137] : memref<1x32xf32, #tpu.memory_space<vmem>>, vector<1x32xf32>
    %329 = vector.broadcast %328 : vector<1x32xf32> to vector<8x32xf32>
    %330 = arith.addf %327, %329 : vector<8x32xf32>
    %c0_138 = arith.constant 0 : index
    %c0_139 = arith.constant 0 : index
    %c0_140 = arith.constant 0 : index
    %331 = vector.load %arg34[%c0_138, %c0_139, %c0_140] : memref<1x8x32xf32, #tpu.memory_space<vmem>>, vector<1x8x32xf32>
    %332 = vector.shape_cast %331 : vector<1x8x32xf32> to vector<8x32xf32>
    %333 = vector.shape_cast %330 : vector<8x32xf32> to vector<1x8x32xf32>
    tpu.vector_store %arg34[%c0_138, %c0_139, %c0_140], %333 {strides = array<i32>} : memref<1x8x32xf32, #tpu.memory_space<vmem>>, vector<1x8x32xf32>,
    return
  }
  func.func @transform_0(%arg0: i32) -> (i32, i32, i32) {
    %c0_i32 = arith.constant 0 : i32
    %c0_i32_0 = arith.constant 0 : i32
    %c0_i32_1 = arith.constant 0 : i32
    return %arg0, %c0_i32, %c0_i32_0 : i32, i32, i32
  }
  func.func @transform_1(%arg0: i32) -> (i32, i32, i32) {
    %c0_i32 = arith.constant 0 : i32
    %c0_i32_0 = arith.constant 0 : i32
    %c0_i32_1 = arith.constant 0 : i32
    return %arg0, %c0_i32, %c0_i32_0 : i32, i32, i32
  }
  func.func @transform_2(%arg0: i32) -> (i32, i32, i32) {
    %c0_i32 = arith.constant 0 : i32
    %c0_i32_0 = arith.constant 0 : i32
    %c0_i32_1 = arith.constant 0 : i32
    return %arg0, %c0_i32, %c0_i32_0 : i32, i32, i32
  }
  func.func @transform_3(%arg0: i32) -> (i32, i32, i32) {
    %c0_i32 = arith.constant 0 : i32
    %c0_i32_0 = arith.constant 0 : i32
    %c0_i32_1 = arith.constant 0 : i32
    return %arg0, %c0_i32, %c0_i32_0 : i32, i32, i32
  }
  func.func @transform_4(%arg0: i32) -> (i32, i32) {
    %c0_i32 = arith.constant 0 : i32
    %c0_i32_0 = arith.constant 0 : i32
    %c0_i32_1 = arith.constant 0 : i32
    return %c0_i32, %c0_i32_0 : i32, i32
  }
  func.func @transform_5(%arg0: i32) -> (i32, i32) {
    %c0_i32 = arith.constant 0 : i32
    %c0_i32_0 = arith.constant 0 : i32
    %c0_i32_1 = arith.constant 0 : i32
    return %c0_i32, %c0_i32_0 : i32, i32
  }
  func.func @transform_6(%arg0: i32) -> (i32, i32) {
    %c0_i32 = arith.constant 0 : i32
    %c0_i32_0 = arith.constant 0 : i32
    %c0_i32_1 = arith.constant 0 : i32
    return %c0_i32, %c0_i32_0 : i32, i32
  }
  func.func @transform_7(%arg0: i32) -> (i32, i32) {
    %c0_i32 = arith.constant 0 : i32
    %c0_i32_0 = arith.constant 0 : i32
    %c0_i32_1 = arith.constant 0 : i32
    return %c0_i32, %c0_i32_0 : i32, i32
  }
  func.func @transform_8(%arg0: i32) -> (i32, i32) {
    %c0_i32 = arith.constant 0 : i32
    %c0_i32_0 = arith.constant 0 : i32
    %c0_i32_1 = arith.constant 0 : i32
    return %c0_i32, %c0_i32_0 : i32, i32
  }
  func.func @transform_9(%arg0: i32) -> (i32, i32) {
    %c0_i32 = arith.constant 0 : i32
    %c0_i32_0 = arith.constant 0 : i32
    %c0_i32_1 = arith.constant 0 : i32
    return %c0_i32, %c0_i32_0 : i32, i32
  }
  func.func @transform_10(%arg0: i32) -> (i32, i32) {
    %c0_i32 = arith.constant 0 : i32
    %c0_i32_0 = arith.constant 0 : i32
    %c0_i32_1 = arith.constant 0 : i32
    return %c0_i32, %c0_i32_0 : i32, i32
  }
  func.func @transform_11(%arg0: i32) -> (i32, i32) {
    %c0_i32 = arith.constant 0 : i32
    %c0_i32_0 = arith.constant 0 : i32
    %c0_i32_1 = arith.constant 0 : i32
    return %c0_i32, %c0_i32_0 : i32, i32
  }
  func.func @transform_12(%arg0: i32) -> (i32, i32) {
    %c0_i32 = arith.constant 0 : i32
    %c0_i32_0 = arith.constant 0 : i32
    %c0_i32_1 = arith.constant 0 : i32
    return %c0_i32, %c0_i32_0 : i32, i32
  }
  func.func @transform_13(%arg0: i32) -> (i32, i32) {
    %c0_i32 = arith.constant 0 : i32
    %c0_i32_0 = arith.constant 0 : i32
    %c0_i32_1 = arith.constant 0 : i32
    return %c0_i32, %c0_i32_0 : i32, i32
  }
  func.func @transform_14(%arg0: i32) -> (i32, i32) {
    %c0_i32 = arith.constant 0 : i32
    %c0_i32_0 = arith.constant 0 : i32
    %c0_i32_1 = arith.constant 0 : i32
    return %c0_i32, %c0_i32_0 : i32, i32
  }
  func.func @transform_15(%arg0: i32) -> (i32, i32) {
    %c0_i32 = arith.constant 0 : i32
    %c0_i32_0 = arith.constant 0 : i32
    %c0_i32_1 = arith.constant 0 : i32
    return %c0_i32, %c0_i32_0 : i32, i32
  }
  func.func @transform_16(%arg0: i32) -> (i32, i32) {
    %c0_i32 = arith.constant 0 : i32
    %c0_i32_0 = arith.constant 0 : i32
    %c0_i32_1 = arith.constant 0 : i32
    return %c0_i32, %c0_i32_0 : i32, i32
  }
  func.func @transform_17(%arg0: i32) -> (i32, i32) {
    %c0_i32 = arith.constant 0 : i32
    %c0_i32_0 = arith.constant 0 : i32
    %c0_i32_1 = arith.constant 0 : i32
    return %c0_i32, %c0_i32_0 : i32, i32
  }
  func.func @transform_18(%arg0: i32) -> (i32, i32) {
    %c0_i32 = arith.constant 0 : i32
    %c0_i32_0 = arith.constant 0 : i32
    %c0_i32_1 = arith.constant 0 : i32
    return %c0_i32, %c0_i32_0 : i32, i32
  }
  func.func @transform_19(%arg0: i32) -> (i32, i32) {
    %c0_i32 = arith.constant 0 : i32
    %c0_i32_0 = arith.constant 0 : i32
    %c0_i32_1 = arith.constant 0 : i32
    return %c0_i32, %c0_i32_0 : i32, i32
  }
  func.func @transform_20(%arg0: i32) -> (i32, i32) {
    %c0_i32 = arith.constant 0 : i32
    %c0_i32_0 = arith.constant 0 : i32
    %c0_i32_1 = arith.constant 0 : i32
    return %c0_i32, %c0_i32_0 : i32, i32
  }
  func.func @transform_21(%arg0: i32) -> (i32, i32) {
    %c0_i32 = arith.constant 0 : i32
    %c0_i32_0 = arith.constant 0 : i32
    %c0_i32_1 = arith.constant 0 : i32
    return %c0_i32, %c0_i32_0 : i32, i32
  }
  func.func @transform_22(%arg0: i32) -> (i32, i32) {
    %c0_i32 = arith.constant 0 : i32
    %c0_i32_0 = arith.constant 0 : i32
    %c0_i32_1 = arith.constant 0 : i32
    return %c0_i32, %c0_i32_0 : i32, i32
  }
  func.func @transform_23(%arg0: i32) -> (i32, i32) {
    %c0_i32 = arith.constant 0 : i32
    %c0_i32_0 = arith.constant 0 : i32
    %c0_i32_1 = arith.constant 0 : i32
    return %c0_i32, %c0_i32_0 : i32, i32
  }
  func.func @transform_24(%arg0: i32) -> (i32, i32) {
    %c0_i32 = arith.constant 0 : i32
    %c0_i32_0 = arith.constant 0 : i32
    %c0_i32_1 = arith.constant 0 : i32
    return %c0_i32, %c0_i32_0 : i32, i32
  }
  func.func @transform_25(%arg0: i32) -> (i32, i32) {
    %c0_i32 = arith.constant 0 : i32
    %c0_i32_0 = arith.constant 0 : i32
    %c0_i32_1 = arith.constant 0 : i32
    return %c0_i32, %c0_i32_0 : i32, i32
  }
  func.func @transform_26(%arg0: i32) -> (i32, i32) {
    %c0_i32 = arith.constant 0 : i32
    %c0_i32_0 = arith.constant 0 : i32
    %c0_i32_1 = arith.constant 0 : i32
    return %c0_i32, %c0_i32_0 : i32, i32
  }
  func.func @transform_27(%arg0: i32) -> (i32, i32) {
    %c0_i32 = arith.constant 0 : i32
    %c0_i32_0 = arith.constant 0 : i32
    %c0_i32_1 = arith.constant 0 : i32
    return %c0_i32, %c0_i32_0 : i32, i32
  }
  func.func @transform_28(%arg0: i32) -> (i32, i32) {
    %c0_i32 = arith.constant 0 : i32
    %c0_i32_0 = arith.constant 0 : i32
    %c0_i32_1 = arith.constant 0 : i32
    return %c0_i32, %c0_i32_0 : i32, i32
  }
  func.func @transform_29(%arg0: i32) -> (i32, i32) {
    %c0_i32 = arith.constant 0 : i32
    %c0_i32_0 = arith.constant 0 : i32
    %c0_i32_1 = arith.constant 0 : i32
    return %c0_i32, %c0_i32_0 : i32, i32
  }
  func.func @transform_30(%arg0: i32) -> (i32, i32) {
    %c0_i32 = arith.constant 0 : i32
    %c0_i32_0 = arith.constant 0 : i32
    %c0_i32_1 = arith.constant 0 : i32
    return %c0_i32, %c0_i32_0 : i32, i32
  }
  func.func @transform_31(%arg0: i32) -> (i32, i32) {
    %c0_i32 = arith.constant 0 : i32
    %c0_i32_0 = arith.constant 0 : i32
    %c0_i32_1 = arith.constant 0 : i32
    return %c0_i32, %c0_i32_0 : i32, i32
  }
  func.func @transform_32(%arg0: i32) -> (i32, i32, i32) {
    %c0_i32 = arith.constant 0 : i32
    %c0_i32_0 = arith.constant 0 : i32
    %c0_i32_1 = arith.constant 0 : i32
    return %arg0, %c0_i32, %c0_i32_0 : i32, i32, i32
  }
  func.func @transform_33(%arg0: i32) -> (i32, i32, i32) {
    %c0_i32 = arith.constant 0 : i32
    %c0_i32_0 = arith.constant 0 : i32
    %c0_i32_1 = arith.constant 0 : i32
    return %arg0, %c0_i32, %c0_i32_0 : i32, i32, i32
  }
}

</mosaic_0001>

<bundles_post_ra>
// kernel: transformer_decoder.2
= control target key start
LH: loop header
LB: loop body
LE: loop exit
PB: predicated region body
PF: predicated region fallthrough
CT: control target
= control target key end

     0   :  { %s3498_s6 = smov 1   ;;  %s3499_s10 = smov 2   ;;  %s4119_s0 = inlined_call_operand.smem [shape: u32[34], index: -1, kind: input, shape index: {}] }
   0x1   :  { %s3556_s5 = sld [smem:[%s4119_s0]]   ;;  %s3500_s14 = smov 3  }
   0x2   :  { %s3561_s9 = sld [smem:[%s4119_s0 + %s3498_s6]]   ;;  %s3501_s18 = smov 4  }
   0x3   :  { %s3566_s13 = sld [smem:[%s4119_s0 + %s3499_s10]]   ;;  %s3502_s22 = smov 5  }
   0x4   :  { %s3571_s17 = sld [smem:[%s4119_s0 + %s3500_s14]]   ;;  %s3503_s26 = smov 6  }
   0x5   :  { %s3576_s21 = sld [smem:[%s4119_s0 + %s3501_s18]]   ;;  %s3504_s30 = smov 7  }
   0x6   :  { %s3581_s25 = sld [smem:[%s4119_s0 + %s3502_s22]]   ;;  %s3505_s4 = smov 8  }
   0x7   :  { %s3586_s29 = sld [smem:[%s4119_s0 + %s3503_s26]]   ;;  %s3506_s10 = smov 9  }
   0x8   :  { %4131 = sst [smem:[#allocation29_spill]] %s3561_s9  ;;  %s3507_s15 = smov 10  }
   0x9   :  { %4132 = sst [smem:[#allocation30_spill]] %s3566_s13  ;;  %s3508_s20 = smov 11  }
   0xa   :  { %4133 = sst [smem:[#allocation31_spill]] %s3571_s17  ;;  %s3509_s26 = smov 12  }
   0xb   :  { %4134 = sst [smem:[#allocation32_spill]] %s3576_s21  ;;  %s3510_s1 = smov 13  }
   0xc   :  { %4135 = sst [smem:[#allocation33_spill]] %s3581_s25  ;;  %s3511_s7 = smov 14  }
   0xd   :  { %4136 = sst [smem:[#allocation34_spill]] %s3586_s29  ;;  %s3513_s22 = smov 16  }
   0xe   :  { %s3591_s3 = sld [smem:[%s4119_s0 + %s3504_s30]]   ;;  %s3514_s28 = smov 17  }
   0xf   :  { %s3596_s8 = sld [smem:[%s4119_s0 + %s3505_s4]]  }
  0x10   :  { %s3601_s14 = sld [smem:[%s4119_s0 + %s3506_s10]]  }
  0x11   :  { %s3606_s19 = sld [smem:[%s4119_s0 + %s3507_s15]]   ;;  %s3512_s15 = smov 15  }
  0x12   :  { %s3611_s24 = sld [smem:[%s4119_s0 + %s3508_s20]]  }
  0x13   :  { %s3616_s30 = sld [smem:[%s4119_s0 + %s3509_s26]]  }
  0x14   :  { %4137 = sst [smem:[#allocation35_spill]] %s3591_s3 }
  0x15   :  { %4138 = sst [smem:[#allocation36_spill]] %s3596_s8 }
  0x16   :  { %4139 = sst [smem:[#allocation37_spill]] %s3601_s14 }
  0x17   :  { %4140 = sst [smem:[#allocation38_spill]] %s3606_s19 }
  0x18   :  { %s3621_s6 = sld [smem:[%s4119_s0 + %s3510_s1]]  }
  0x19   :  { %s3626_s12 = sld [smem:[%s4119_s0 + %s3511_s7]]   ;;  %s3515_s7 = smov 18  }
  0x1a   :  { %s3631_s20 = sld [smem:[%s4119_s0 + %s3512_s15]]   ;;  %s3516_s15 = smov 19  }
  0x1b   :  { %s3636_s27 = sld [smem:[%s4119_s0 + %s3513_s22]]   ;;  %s3517_s22 = smov 20  }
  0x1c   :  { %s3641_s4 = sld [smem:[%s4119_s0 + %s3514_s28]]   ;;  %s3518_s28 = smov 21  }
  0x1d   :  { %s3646_s17 = sld [smem:[%s4119_s0 + %s3515_s7]]   ;;  %s3519_s7 = smov 22  }
  0x1e   :  { %s3656_s13 = sld [smem:[%s4119_s0 + %s3517_s22]]   ;;  %s3521_s22 = smov 24  }
  0x1f   :  { %4141 = sst [smem:[#allocation39_spill]] %s3626_s12 }
  0x20   :  { %s3651_s12 = sld [smem:[%s4119_s0 + %s3516_s15]]   ;;  %s3520_s15 = smov 23  }
  0x21   :  { %4142 = sst [smem:[#allocation40_spill]] %s3636_s27 }
  0x22   :  { %s3661_s27 = sld [smem:[%s4119_s0 + %s3518_s28]]   ;;  %s3522_s28 = smov 25  }
  0x23   :  { %4143 = sst [smem:[#allocation41_spill]] %s3646_s17 }
  0x24   :  { %4144 = sst [smem:[#allocation42_spill]] %s3656_s13 }
  0x25   :  { %s3666_s17 = sld [smem:[%s4119_s0 + %s3519_s7]]   ;;  %s3523_s7 = smov 26  }
  0x26   :  { %s3671_s19 = sld [smem:[%s4119_s0 + %s3520_s15]]   ;;  %s3524_s15 = smov 27  }
  0x27   :  { %s3676_s13 = sld [smem:[%s4119_s0 + %s3521_s22]]   ;;  %s3525_s22 = smov 28  }
  0x28   :  { %s3681_s14 = sld [smem:[%s4119_s0 + %s3522_s28]]   ;;  %s3526_s28 = smov 29  }
  0x29   :  { %s3686_s25 = sld [smem:[%s4119_s0 + %s3523_s7]]   ;;  %s3527_s7 = smov 30  }
  0x2a   :  { %s3691_s3 = sld [smem:[%s4119_s0 + %s3524_s15]]   ;;  %s3528_s15 = smov 31  }
  0x2b   :  { %s3701_s8 = sld [smem:[%s4119_s0 + %s3526_s28]]   ;;  %s3530_s28 = smov 33  }
  0x2c   :  { %s3711_s21 = sld [smem:[%s4119_s0 + %s3528_s15]]  }
  0x2d   :  { %4145 = sst [smem:[#allocation43_spill]] %s3676_s13 }
  0x2e   :  { %s3696_s13 = sld [smem:[%s4119_s0 + %s3525_s22]]   ;;  %s3529_s22 = smov 32  }
  0x2f   :  { %4146 = sst [smem:[#allocation44_spill]] %s3686_s25 }
  0x30   :  { %s3706_s25 = sld [smem:[%s4119_s0 + %s3527_s7]]  }
  0x31   :  { %s3716_s29 = sld [smem:[%s4119_s0 + %s3529_s22]]  }
  0x32   :  { %s3721_s9 = sld [smem:[%s4119_s0 + %s3530_s28]]  }
  0x38   :  { %4147 = sst [smem:[#allocation45_spill]] %s3721_s9 }
  0x39   :  { %73 = vsyncpa [#allocation3], 0 }
  0x3a   :  { %74 = vsyncpa [#allocation5], 0 }
  0x3b   :  { %75 = vsyncpa [#allocation8], 0 }
  0x3c   :  { %76 = vsyncpa [#allocation11], 0 }
  0x3d   :  { %77 = vsyncpa [#allocation14], 0 }
  0x3e   :  { %78 = vsyncpa [#allocation17], 0 }
  0x3f   :  { %79 = vsyncpa [#allocation20], 0  ;;  %s3723_s7 = smov 0  }
  0x40 LB: > { %4148 = sst [smem:[#allocation46_spill]] %s3496_s7  ;;  %s879_s0 = sshll.u32 %s3616_s30, 4  ;;  %s3496_s7 = sphi %s3723_s7, %s85_s7   ;;  %s3729_s0 = int_to_ptr.hbm [resolvable:$true] %s879_s0 }
  0x41   : > { %s3732_s10 = sadd.s32 4294967295, %s3496_s7   ;;  %p2663_p0 = scmp.ge.s32.totalorder %s3496_s7, 1 }
  0x42   : > { %p834_p1 = scmp.lt.s32.totalorder %s3496_s7, 3  ;;  %p2928_p2 = scmp.eq.s32.totalorder %s3732_s10, 0 }
  0x43   : > { %s3531_s15 = smov [#allocation4]   ;;  %s906_s18 = sshll.u32 %s3631_s20, 4  ;;  %s3744_s18 = int_to_ptr.hbm [resolvable:$true] %s906_s18 }
  0x44   : > { %p3737_p3 = pnand %p2663_p0, %p834_p1  ;;  %s881_s16 = sshll.u32 %s3531_s15, 4  ;;  %s882_s16 = int_to_ptr.vmem [resolvable:$true] %s881_s16 }
  0x45   : > { %s936_s22 = sshll.u32 %s3651_s12, 4  ;;  %s3532_s26 = smov [#allocation7]   ;;  %s3756_s22 = int_to_ptr.hbm [resolvable:$true] %s936_s22 }
  0x46   : > { %p2888_p4 = pneg %p3737_p3  ;;  %s3753_s28 = sshll.u32 %s3532_s26, 4  ;;  %s909_s28 = int_to_ptr.vmem [resolvable:$true] %s3753_s28 }
  0x47   : > { %s3072_s1 = sshra.s32 %s3729_s0, 4  ;;  %s3079_s7 = scalar_lea.hbm %s3616_s30, 1  ;;  %s3073_s1 = int_to_ptr.hbm [resolvable:$true] %s3072_s1 }
  0x48   : > { %p3749_p5 = pnand %p2928_p2, %p2888_p4  ;;  %s3074_s2 = scalar_lea.hbm %s3073_s1, 1 }
  0x49   : > { %p3075_p6 = scmp.ne.s32.totalorder %s3073_s1, %s3074_s2  ;;  %p3080_p10 = scmp.lt.s32.totalorder %s3073_s1, %s3616_s30 }
  0x4a   : > { %p3761_p7 = pneg %p3749_p5  ;;  %p3081_p11 = scmp.lt.s32.totalorder %s3079_s7, %s3074_s2 }
  0x4c   : > { %p3077_p8 = pnand %p3761_p7, %p3075_p6  ;;  %p3082_p12 = por %p3081_p11, %p3080_p10 }
  0x4e   : > { %p3078_p9 = pneg %p3077_p8 }
  0x50   : > { %p3083_p13 = pnand %p3082_p12, %p3078_p9 }
  0x52   : > { %3086 = shalt.err (!%p3083_p13)
}
  0x53   : > { %2894 = dma.hbm_to_vmem [thread:$0]  (!%p3749_p5), %s3729_s0, 16, %s882_s16, [#allocation5]  }
  0x54   : > { %s3102_s26 = sshra.s32 %s3744_s18, 4  ;;  %s3109_s1 = scalar_lea.hbm %s3631_s20, 1  ;;  %s3103_s26 = int_to_ptr.hbm [resolvable:$true] %s3102_s26 }
  0x55   : > { %s3104_s9 = scalar_lea.hbm %s3103_s26, 1  ;;  %p3110_p6 = scmp.lt.s32.totalorder %s3103_s26, %s3631_s20 }
  0x56   : > { %p3105_p0 = scmp.ne.s32.totalorder %s3103_s26, %s3104_s9  ;;  %p3111_p8 = scmp.lt.s32.totalorder %s3109_s1, %s3104_s9 }
  0x58   : > { %p3107_p1 = pnand %p3105_p0, %p3761_p7  ;;  %p3112_p9 = por %p3111_p8, %p3110_p6 }
  0x5a   : > { %p3108_p4 = pneg %p3107_p1 }
  0x5c   : > { %p3113_p10 = pnand %p3112_p9, %p3108_p4 }
  0x5e   : > { %3116 = shalt.err (!%p3113_p10)
}
  0x5f   : > { %2900 = dma.hbm_to_vmem [thread:$0]  (!%p3749_p5), %s3744_s18, 16, %s909_s28, [#allocation8]  }
  0x60   : > { %s3533_s7 = smov [#allocation10]   ;;  %s963_s16 = sshll.u32 %s3666_s17, 4  ;;  %s3781_s16 = int_to_ptr.hbm [resolvable:$true] %s963_s16 }
  0x61   : > { %s938_s0 = sshll.u32 %s3533_s7, 4  ;;  %s3132_s2 = sshra.s32 %s3756_s22, 4  ;;  %s939_s0 = int_to_ptr.vmem [resolvable:$true] %s938_s0  ;;  %s3133_s2 = int_to_ptr.hbm [resolvable:$true] %s3132_s2 }
  0x62   : > { %s3134_s9 = scalar_lea.hbm %s3133_s2, 1  ;;  %s3139_s26 = scalar_lea.hbm %s3651_s12, 1 }
  0x63   : > { %p3135_p11 = scmp.ne.s32.totalorder %s3133_s2, %s3134_s9  ;;  %p3140_p0 = scmp.lt.s32.totalorder %s3133_s2, %s3651_s12 }
  0x64   : > { %p3141_p1 = scmp.lt.s32.totalorder %s3139_s26, %s3134_s9 }
  0x65   : > { %p3137_p12 = pnand %p3135_p11, %p3761_p7 }
  0x66   : > { %p3142_p4 = por %p3141_p1, %p3140_p0 }
  0x67   : > { %p3138_p13 = pneg %p3137_p12 }
  0x69   : > { %p3143_p6 = pnand %p3142_p4, %p3138_p13 }
  0x6b   : > { %3146 = shalt.err (!%p3143_p6)
}
  0x6c   : > { %2906 = dma.hbm_to_vmem [thread:$0]  (!%p3749_p5), %s3756_s22, 16, %s939_s0, [#allocation11]  }
  0x6d   : > { %s990_s18 = sshll.u32 %s3681_s14, 4  ;;  %s3534_s28 = smov [#allocation13]   ;;  %s3792_s18 = int_to_ptr.hbm [resolvable:$true] %s990_s18 }
  0x6e   : > { %s965_s1 = sshll.u32 %s3534_s28, 4  ;;  %s3162_s7 = sshra.s32 %s3781_s16, 4  ;;  %s966_s1 = int_to_ptr.vmem [resolvable:$true] %s965_s1  ;;  %s3163_s7 = int_to_ptr.hbm [resolvable:$true] %s3162_s7 }
  0x6f   : > { %s3164_s2 = scalar_lea.hbm %s3163_s7, 1  ;;  %s3169_s9 = scalar_lea.hbm %s3666_s17, 1 }
  0x70   : > { %p3165_p8 = scmp.ne.s32.totalorder %s3163_s7, %s3164_s2  ;;  %p3170_p11 = scmp.lt.s32.totalorder %s3163_s7, %s3666_s17 }
  0x71   : > { %p3171_p12 = scmp.lt.s32.totalorder %s3169_s9, %s3164_s2 }
  0x72   : > { %p3167_p9 = pnand %p3165_p8, %p3761_p7 }
  0x73   : > { %p3172_p13 = por %p3171_p12, %p3170_p11 }
  0x74   : > { %p3168_p10 = pneg %p3167_p9 }
  0x76   : > { %p3173_p0 = pnand %p3172_p13, %p3168_p10 }
  0x78   : > { %3176 = shalt.err (!%p3173_p0)
}
  0x79   : > { %2912 = dma.hbm_to_vmem [thread:$0]  (!%p3749_p5), %s3781_s16, 16, %s966_s1, [#allocation14]  }
  0x7a   : > { %s3535_s22 = smov [#allocation16]   ;;  %s1017_s26 = sshll.u32 %s3696_s13, 4  ;;  %s3803_s26 = int_to_ptr.hbm [resolvable:$true] %s1017_s26 }
  0x7b   : > { %s992_s0 = sshll.u32 %s3535_s22, 4  ;;  %s3192_s28 = sshra.s32 %s3792_s18, 4  ;;  %s993_s0 = int_to_ptr.vmem [resolvable:$true] %s992_s0  ;;  %s3193_s28 = int_to_ptr.hbm [resolvable:$true] %s3192_s28 }
  0x7c   : > { %s3194_s7 = scalar_lea.hbm %s3193_s28, 1  ;;  %s3199_s2 = scalar_lea.hbm %s3681_s14, 1 }
  0x7d   : > { %p3195_p1 = scmp.ne.s32.totalorder %s3193_s28, %s3194_s7  ;;  %p3200_p8 = scmp.lt.s32.totalorder %s3193_s28, %s3681_s14 }
  0x7e   : > { %p3201_p9 = scmp.lt.s32.totalorder %s3199_s2, %s3194_s7 }
  0x7f   : > { %p3197_p4 = pnand %p3195_p1, %p3761_p7 }
  0x80   : > { %p3202_p10 = por %p3201_p9, %p3200_p8 }
  0x81   : > { %p3198_p6 = pneg %p3197_p4 }
  0x83   : > { %p3203_p11 = pnand %p3202_p10, %p3198_p6 }
  0x85   : > { %3206 = shalt.err (!%p3203_p11)
}
  0x86   : > { %2918 = dma.hbm_to_vmem [thread:$0]  (!%p3749_p5), %s3792_s18, 16, %s993_s0, [#allocation17]  }
  0x87   : > { %s867_s16 = sshll.u32 %s3611_s24, 4  ;;  %s3536_s1 = smov [#allocation19]   ;;  %s3814_s16 = int_to_ptr.hbm [resolvable:$true] %s867_s16 }
  0x88   : > { %s1019_s9 = sshll.u32 %s3536_s1, 4  ;;  %s3222_s22 = sshra.s32 %s3803_s26, 4  ;;  %s1020_s9 = int_to_ptr.vmem [resolvable:$true] %s1019_s9  ;;  %s3223_s22 = int_to_ptr.hbm [resolvable:$true] %s3222_s22 }
  0x89   : > { %s3224_s28 = scalar_lea.hbm %s3223_s22, 1  ;;  %s3229_s7 = scalar_lea.hbm %s3696_s13, 1 }
  0x8a   : > { %p3225_p12 = scmp.ne.s32.totalorder %s3223_s22, %s3224_s28  ;;  %p3230_p1 = scmp.lt.s32.totalorder %s3223_s22, %s3696_s13 }
  0x8b   : > { %p3231_p4 = scmp.lt.s32.totalorder %s3229_s7, %s3224_s28 }
  0x8c   : > { %p3227_p13 = pnand %p3225_p12, %p3761_p7 }
  0x8d   : > { %p3232_p6 = por %p3231_p4, %p3230_p1 }
  0x8e   : > { %p3228_p0 = pneg %p3227_p13 }
  0x90   : > { %p3233_p8 = pnand %p3232_p6, %p3228_p0 }
  0x92   : > { %3236 = shalt.err (!%p3233_p8)
}
  0x93   : > { %2924 = dma.hbm_to_vmem [thread:$0]  (!%p3749_p5), %s3803_s26, 16, %s1020_s9, [#allocation20]  }
  0x94   : > { %s3537_s18 = smov [#allocation2]   ;;  %s891_s2 = sshll.u32 %s3621_s6, 4  ;;  %s3825_s2 = int_to_ptr.hbm [resolvable:$true] %s891_s2 }
  0x95   : > { %s869_s0 = sshll.u32 %s3537_s18, 4  ;;  %s3252_s1 = sshra.s32 %s3814_s16, 4  ;;  %s870_s0 = int_to_ptr.vmem [resolvable:$true] %s869_s0  ;;  %s3253_s1 = int_to_ptr.hbm [resolvable:$true] %s3252_s1 }
  0x96   : > { %s3254_s22 = scalar_lea.hbm %s3253_s1, 1  ;;  %s3259_s28 = scalar_lea.hbm %s3611_s24, 1 }
  0x97   : > { %p3255_p9 = scmp.ne.s32.totalorder %s3253_s1, %s3254_s22  ;;  %p3260_p12 = scmp.lt.s32.totalorder %s3253_s1, %s3611_s24 }
  0x98   : > { %p3261_p13 = scmp.lt.s32.totalorder %s3259_s28, %s3254_s22 }
  0x99   : > { %p3257_p10 = pnand %p3255_p9, %p3761_p7 }
  0x9a   : > { %p3262_p0 = por %p3261_p13, %p3260_p12 }
  0x9b   : > { %p3258_p11 = pneg %p3257_p10 }
  0x9d   : > { %p3263_p1 = pnand %p3262_p0, %p3258_p11 }
  0x9f   : > { %3266 = shalt.err (!%p3263_p1)
}
  0xa0   : > { %2891 = dma.hbm_to_vmem [thread:$0]  (!%p3749_p5), %s3814_s16, 16, %s870_s0, [#allocation3]  }
  0xa1   : > { %s921_s26 = sshll.u32 %s3641_s4, 4  ;;  %s3538_s9 = smov [#allocation6]   ;;  %s3836_s26 = int_to_ptr.hbm [resolvable:$true] %s921_s26 }
  0xa2   : > { %s893_s7 = sshll.u32 %s3538_s9, 4  ;;  %s3282_s18 = sshra.s32 %s3825_s2, 4  ;;  %s894_s7 = int_to_ptr.vmem [resolvable:$true] %s893_s7  ;;  %s3283_s18 = int_to_ptr.hbm [resolvable:$true] %s3282_s18 }
  0xa3   : > { %s3284_s1 = scalar_lea.hbm %s3283_s18, 1  ;;  %s3289_s22 = scalar_lea.hbm %s3621_s6, 1 }
  0xa4   : > { %p3285_p4 = scmp.ne.s32.totalorder %s3283_s18, %s3284_s1  ;;  %p3290_p9 = scmp.lt.s32.totalorder %s3283_s18, %s3621_s6 }
  0xa5   : > { %p3291_p10 = scmp.lt.s32.totalorder %s3289_s22, %s3284_s1 }
  0xa6   : > { %p3287_p6 = pnand %p3285_p4, %p3761_p7 }
  0xa7   : > { %p3292_p11 = por %p3291_p10, %p3290_p9 }
  0xa8   : > { %p3288_p8 = pneg %p3287_p6 }
  0xaa   : > { %p3293_p12 = pnand %p3292_p11, %p3288_p8 }
  0xac   : > { %3296 = shalt.err (!%p3293_p12)
}
  0xad   : > { %2897 = dma.hbm_to_vmem [thread:$0]  (!%p3749_p5), %s3825_s2, 16, %s894_s7, [#allocation5]  }
  0xae   : > { %s3539_s16 = smov [#allocation9]   ;;  %s951_s28 = sshll.u32 %s3661_s27, 4  ;;  %s3847_s28 = int_to_ptr.hbm [resolvable:$true] %s951_s28 }
  0xaf   : > { %s923_s0 = sshll.u32 %s3539_s16, 4  ;;  %s3312_s9 = sshra.s32 %s3836_s26, 4  ;;  %s924_s0 = int_to_ptr.vmem [resolvable:$true] %s923_s0  ;;  %s3313_s9 = int_to_ptr.hbm [resolvable:$true] %s3312_s9 }
  0xb0   : > { %s3314_s18 = scalar_lea.hbm %s3313_s9, 1  ;;  %s3319_s1 = scalar_lea.hbm %s3641_s4, 1 }
  0xb1   : > { %p3315_p13 = scmp.ne.s32.totalorder %s3313_s9, %s3314_s18  ;;  %p3320_p4 = scmp.lt.s32.totalorder %s3313_s9, %s3641_s4 }
  0xb2   : > { %p3321_p6 = scmp.lt.s32.totalorder %s3319_s1, %s3314_s18 }
  0xb3   : > { %p3317_p0 = pnand %p3315_p13, %p3761_p7 }
  0xb4   : > { %p3322_p8 = por %p3321_p6, %p3320_p4 }
  0xb5   : > { %p3318_p1 = pneg %p3317_p0 }
  0xb7   : > { %p3323_p9 = pnand %p3322_p8, %p3318_p1 }
  0xb9   : > { %3326 = shalt.err (!%p3323_p9)
}
  0xba   : > { %2903 = dma.hbm_to_vmem [thread:$0]  (!%p3749_p5), %s3836_s26, 16, %s924_s0, [#allocation8]  }
  0xbb   : > { %s975_s2 = sshll.u32 %s3671_s19, 4  ;;  %s3540_s7 = smov [#allocation12]   ;;  %s3858_s2 = int_to_ptr.hbm [resolvable:$true] %s975_s2 }
  0xbc   : > { %s953_s22 = sshll.u32 %s3540_s7, 4  ;;  %s3342_s16 = sshra.s32 %s3847_s28, 4  ;;  %s954_s22 = int_to_ptr.vmem [resolvable:$true] %s953_s22  ;;  %s3343_s16 = int_to_ptr.hbm [resolvable:$true] %s3342_s16 }
  0xbd   : > { %s3344_s9 = scalar_lea.hbm %s3343_s16, 1  ;;  %s3349_s18 = scalar_lea.hbm %s3661_s27, 1 }
  0xbe   : > { %p3345_p10 = scmp.ne.s32.totalorder %s3343_s16, %s3344_s9  ;;  %p3350_p13 = scmp.lt.s32.totalorder %s3343_s16, %s3661_s27 }
  0xbf   : > { %p3351_p0 = scmp.lt.s32.totalorder %s3349_s18, %s3344_s9 }
  0xc0   : > { %p3347_p11 = pnand %p3345_p10, %p3761_p7 }
  0xc1   : > { %p3352_p1 = por %p3351_p0, %p3350_p13 }
  0xc2   : > { %p3348_p12 = pneg %p3347_p11 }
  0xc4   : > { %p3353_p4 = pnand %p3352_p1, %p3348_p12 }
  0xc6   : > { %3356 = shalt.err (!%p3353_p4)
}
  0xc7   : > { %2909 = dma.hbm_to_vmem [thread:$0]  (!%p3749_p5), %s3847_s28, 16, %s954_s22, [#allocation11]  }
  0xc8   : > { %s3541_s26 = smov [#allocation15]   ;;  %s1005_s1 = sshll.u32 %s3691_s3, 4  ;;  %s3869_s1 = int_to_ptr.hbm [resolvable:$true] %s1005_s1 }
  0xc9   : > { %s977_s0 = sshll.u32 %s3541_s26, 4  ;;  %s3372_s7 = sshra.s32 %s3858_s2, 4  ;;  %s978_s0 = int_to_ptr.vmem [resolvable:$true] %s977_s0  ;;  %s3373_s7 = int_to_ptr.hbm [resolvable:$true] %s3372_s7 }
  0xca   : > { %s3374_s16 = scalar_lea.hbm %s3373_s7, 1  ;;  %s3379_s9 = scalar_lea.hbm %s3671_s19, 1 }
  0xcb   : > { %p3375_p6 = scmp.ne.s32.totalorder %s3373_s7, %s3374_s16  ;;  %p3380_p10 = scmp.lt.s32.totalorder %s3373_s7, %s3671_s19 }
  0xcc   : > { %p3381_p11 = scmp.lt.s32.totalorder %s3379_s9, %s3374_s16 }
  0xcd   : > { %p3377_p8 = pnand %p3375_p6, %p3761_p7 }
  0xce   : > { %p3382_p12 = por %p3381_p11, %p3380_p10 }
  0xcf   : > { %p3378_p9 = pneg %p3377_p8 }
  0xd1   : > { %p3383_p13 = pnand %p3382_p12, %p3378_p9 }
  0xd3   : > { %3386 = shalt.err (!%p3383_p13)
}
  0xd4   : > { %2915 = dma.hbm_to_vmem [thread:$0]  (!%p3749_p5), %s3858_s2, 16, %s978_s0, [#allocation14]  }
  0xd5   : > { %s1029_s28 = sshll.u32 %s3701_s8, 4  ;;  %s3542_s22 = smov [#allocation18]   ;;  %s3880_s28 = int_to_ptr.hbm [resolvable:$true] %s1029_s28 }
  0xd6   : > { %s1007_s18 = sshll.u32 %s3542_s22, 4  ;;  %s3402_s26 = sshra.s32 %s3869_s1, 4  ;;  %s1008_s18 = int_to_ptr.vmem [resolvable:$true] %s1007_s18  ;;  %s3403_s26 = int_to_ptr.hbm [resolvable:$true] %s3402_s26 }
  0xd7   : > { %s3404_s7 = scalar_lea.hbm %s3403_s26, 1  ;;  %s3409_s16 = scalar_lea.hbm %s3691_s3, 1 }
  0xd8   : > { %p3405_p0 = scmp.ne.s32.totalorder %s3403_s26, %s3404_s7  ;;  %p3410_p6 = scmp.lt.s32.totalorder %s3403_s26, %s3691_s3 }
  0xd9   : > { %p3411_p8 = scmp.lt.s32.totalorder %s3409_s16, %s3404_s7 }
  0xda   : > { %p3407_p1 = pnand %p3405_p0, %p3761_p7 }
  0xdb   : > { %p3412_p9 = por %p3411_p8, %p3410_p6 }
  0xdc   : > { %p3408_p4 = pneg %p3407_p1 }
  0xde   : > { %p3413_p10 = pnand %p3412_p9, %p3408_p4 }
  0xe0   : > { %3416 = shalt.err (!%p3413_p10)
}
  0xe1   : > { %2921 = dma.hbm_to_vmem [thread:$0]  (!%p3749_p5), %s3869_s1, 16, %s1008_s18, [#allocation17]  }
  0xe2   : > { %s3543_s2 = smov [#allocation21]   ;;  %s3432_s9 = sshra.s32 %s3880_s28, 4  ;;  %s3433_s9 = int_to_ptr.hbm [resolvable:$true] %s3432_s9 }
  0xe3   : > { %s1031_s0 = sshll.u32 %s3543_s2, 4  ;;  %s3434_s22 = scalar_lea.hbm %s3433_s9, 1  ;;  %s1032_s0 = int_to_ptr.vmem [resolvable:$true] %s1031_s0 }
  0xe4   : > { %p3435_p11 = scmp.ne.s32.totalorder %s3433_s9, %s3434_s22  ;;  %s3439_s26 = scalar_lea.hbm %s3701_s8, 1 }
  0xe5   : > { %p3440_p0 = scmp.lt.s32.totalorder %s3433_s9, %s3701_s8  ;;  %p3441_p1 = scmp.lt.s32.totalorder %s3439_s26, %s3434_s22 }
  0xe6   : > { %p3437_p12 = pnand %p3435_p11, %p3761_p7 }
  0xe7   : > { %p3442_p4 = por %p3441_p1, %p3440_p0 }
  0xe8   : > { %p3438_p13 = pneg %p3437_p12 }
  0xea   : > { %p3443_p6 = pnand %p3442_p4, %p3438_p13 }
  0xec   : > { %3446 = shalt.err (!%p3443_p6)
}
  0xed   : > { %2927 = dma.hbm_to_vmem [thread:$0]  (!%p3749_p5), %s3880_s28, 16, %s1032_s0, [#allocation20]  }
  0xee   : > { %1080 = sbr.rel (%p3737_p3) target bundleno = 4494 (0x118e), region = 148 }
  0xf3   : > { %3467 = dma.done.wait (%p2928_p2), [#allocation3], 16  }
  0xf4   : > { %3469 = vsyncadd (%p2928_p2), [#allocation3], 4294967280 }
  0xf5   : > { %3471 = dma.done.wait (%p2928_p2), [#allocation5], 32  }
  0xf6   : > { %3473 = vsyncadd (%p2928_p2), [#allocation5], 4294967264 }
  0xf7   : > { %3475 = dma.done.wait (%p2928_p2), [#allocation8], 32  }
  0xf8   : > { %3477 = vsyncadd (%p2928_p2), [#allocation8], 4294967264 }
  0xf9   : > { %3479 = dma.done.wait (%p2928_p2), [#allocation11], 32  }
  0xfa   : > { %3481 = vsyncadd (%p2928_p2), [#allocation11], 4294967264 }
  0xfb   : > { %3483 = dma.done.wait (%p2928_p2), [#allocation14], 32  }
  0xfc   : > { %3485 = vsyncadd (%p2928_p2), [#allocation14], 4294967264 }
  0xfd   : > { %3487 = dma.done.wait (%p2928_p2), [#allocation17], 32  }
  0xfe   : > { %3489 = vsyncadd (%p2928_p2), [#allocation17], 4294967264 }
  0xff   : > { %3491 = dma.done.wait (%p2928_p2), [#allocation20], 32  }
 0x100   : > { %3493 = vsyncadd (%p2928_p2), [#allocation20], 4294967264  ;;  %s4152_s11 = sld [smem:[#allocation29_spill]]  ;;  %p1241_p3 = scmp.lt.s32.totalorder %s3732_s10, 1  ;;  %vm1297_vm0 = vcmask 261120   ;;  %vm1395_vm1 = vcmask 64512  }
 0x101   : > { %s4153_s23 = sld [smem:[#allocation34_spill]]  ;;  %s3544_s0 = smov 120   ;;  %vm1430_vm2 = vcmask 1043456   ;;  %vm1907_vm7 = vcmask 130048   ;;  %vm2298_vm11 = vcmask 523264  }
 0x102   : > { %s4154_s15 = sld [smem:[#allocation32_spill]]  ;;  %s4172_s10 = smov (!%p1241_p3, %s3732_s10), 1 }
 0x103   : > { %s4155_s1 = sld [smem:[#allocation36_spill]]  ;;  %s3930_s28 = sshll.u32 %s4172_s10, 3 }
 0x104   : > { %s1244_s18 = scalar_lea.vmem %s3556_s5, %s3930_s28  ;;  %s4156_s16 = sld [smem:[#allocation35_spill]] }
 0x105   : > { %v3937_v1 = vld [vmem:[%s1244_s18] sm:$0xff]  ;;  %s4157_s2 = sld [smem:[#allocation33_spill]]  ;;  %s3545_s9 = smov 104  }
 0x106   : > { %s1248_s7 = scalar_lea.vmem %s4152_s11, %s3930_s28  ;;  %v1276_v10 = vpack.c.bf16 %v3937_v1, %v3937_v1  ;;  %s4158_s10 = sld [smem:[#allocation37_spill]] }
 0x107   : > { %v2821_v0 = vld [vmem:[%s4153_s23 + $0x8] sm:$0xff]  ;;  %v3939_v2 = vld [vmem:[%s1248_s7] sm:$0xff]  ;;  %s4159_s22 = sld [smem:[#allocation38_spill]]  ;;  %s3546_s26 = smov 112  }
 0x108   : > { %v2819_v3 = vld [vmem:[%s4154_s15 + $0x8] sm:$0xff]  ;;  %1340 = vmatpush.bf16.msra.mxu1 %v2821_v0  ;;  %v2820_v5 = vld [vmem:[%s4153_s23] sm:$0xff]  ;;  %v1274_v6 = vadd.f32 %v3939_v2, %v3937_v1  ;;  %s4160_s11 = sld [smem:[#allocation40_spill]] }
 0x109   : > { %v2823_v4 = vld [vmem:[%s4155_s1 + $0x8] sm:$0xff]  ;;  %v2818_v7 = vld [vmem:[%s4154_s15] sm:$0xff]  ;;  %1307 = vmatpush.bf16.msra.mxu0 %v2819_v3  ;;  %s4161_s18 = sld [smem:[#allocation30_spill]] }
 0x10a   : > { %1376 = vmatpush.bf16.msra.mxu2 %v2823_v4  ;;  %v2822_v8 = vld [vmem:[%s4155_s1] sm:$0xff]  ;;  %v1275_v9 = vpack.c.bf16 %v1274_v6, %v1274_v6  ;;  %s4162_s7 = sld [smem:[#allocation39_spill]] }
 0x10b   : > { %v3012_v11 = vld [vmem:[%s4156_s16] ss:$0 sm:$0xff] }
 0x10c   : > { %1341 = vmatpush.bf16.msra.mxu1 %v2820_v5  ;;  %v3013_v12 = vld [vmem:[%s4157_s2] ss:$0 sm:$0xff] }
 0x10d   : > { %1308 = vmatpush.bf16.msra.mxu0 %v2818_v7  ;;  %v3014_v21 = vld [vmem:[%s4158_s10] ss:$0 sm:$0xff]  ;;  %v1387_v50 = vld [vmem:[%s4159_s22 + $0x4] sm:$0xf]  ;;  %s4164_s10 = sld [smem:[#allocation41_spill]] }
 0x10e   : > { %1377 = vmatpush.bf16.msra.mxu2 %v2822_v8  ;;  %v1538_v51 = vsel %vm1430_vm2, %v1387_v50, 0  ;;  %v1386_v52 = vld [vmem:[%s4159_s22] sm:$0xf]  ;;  %v1389_v50 = vld [vmem:[%s4159_s22 + $0xc] sm:$0xf] }
 0x10f   : > { %2717 = vmatmul.msk.bf16.vlgmr.msra.gmra.mxu1 %vm1297_vm0, %v1275_v9  ;;  %v1452_v53 = vsel %vm1430_vm2, %v1386_v52, 0  ;;  %s1253_s2 = scalar_lea.vmem %s4161_s18, %s3930_s28  ;;  %s4165_s18 = sld [smem:[#allocation31_spill]] }
 0x110   : > { %2708 = vmatmul.msk.bf16.vlgmr.msra.gmra.mxu0 %vm1297_vm0, %v1275_v9  ;;  %1461 = vmatpush.bf16.msrb.mxu1 %v1452_v53  ;;  %s4163_s16 = smov %s4162_s7 }
 0x111   : > { %2726 = vmatmul.msk.bf16.vlgmr.msra.gmra.mxu2 %vm1297_vm0, %v1276_v10 }
 0x18c   : > { %v1343_v13 = vpop.f32.mrf.mxu1 }
 0x18d   : > { %v1344_v14 = vadd.f32 %v3012_v11, %v1343_v13  ;;  %v1310_v15 = vpop.f32.mrf.mxu0 }
 0x18e   : > { %v1311_v16 = vadd.f32 %v3013_v12, %v1310_v15 }
 0x18f   : > { %v1384_v17 = vpack.c.bf16 %v1344_v14, %v1344_v14 }
 0x190   : > { %v1383_v20 = vpack.c.bf16 %v1311_v16, %v1311_v16 }
 0x191   : > { %v1474_v18 = vunpack.c.l.b16 %v1384_v17  ;;  %v1400_v19 = vsel %vm1395_vm1, %v1384_v17, 0 }
 0x192   : > { %1409 = vmatpush.bf16.xpose.msra.mxu3 %v1400_v19  ;;  %v1469_v25 = vunpack.c.l.b16 %v1383_v20 }
 0x193   : > { %v1475_v22 = vpack.c.b16 %v1474_v18, %v1474_v18 }
 0x194   : > { %v1379_v23 = vpop.f32.mrf.mxu2  ;;  %v1345_v24 = vpop.f32.mrf.mxu1  ;;  %v3958_v28 = vpack.c.b16 %v1469_v25, %v1469_v25 }
 0x195   : > { %1476 = vrot.lane.b32.xlu0 %v1475_v22, %s3544_s0  ;;  %v1380_v26 = vadd.f32 %v3014_v21, %v1379_v23  ;;  %v1312_v27 = vpop.f32.mrf.mxu0 }
 0x197   : > { %v1385_v29 = vpack.c.bf16 %v1380_v26, %v1380_v26 }
 0x199   : > { %2727 = vmatmul.msk.bf16.vlgmr.msra.gmra.mxu3 %vm1395_vm1, %v1383_v20  ;;  %v1510_v31 = vunpack.c.l.b16 %v1385_v29  ;;  %v1432_v39 = vsel %vm1430_vm2, %v1385_v29, 0 }
 0x19a   : > { %1441 = vmatpush.bf16.msrb.mxu0 %v1432_v39 }
 0x19b   : > { %v3963_v32 = vpack.c.b16 %v1510_v31, %v1510_v31 }
 0x19c   : > { %v1381_v30 = vpop.f32.mrf.mxu2 }
 0x19d   : > { %1471 = vrot.lane.b32.xlu0 %v3958_v28, %s3544_s0 }
 0x19e   : > { %1547 = vmatpush.bf16.msra.mxu0 %v1538_v51  ;;  %v1692_v51 = vsel %vm1430_vm2, %v1389_v50, 0 }
 0x1a5   : > { %1512 = vrot.lane.b32.xlu0 %v3963_v32, %s3544_s0 }
 0x1ad   : > { %1633 = vrot.lane.b32.xlu0 %v1475_v22, %s3545_s9 }
 0x1b5   : > { %1631 = vrot.lane.b32.xlu0 %v3958_v28, %s3545_s9 }
 0x207   : > { %v1477_v33 = vpop.permute.xlu0 %1476 }
 0x208   : > { %v1482_v34 = vsel %vm1395_vm1, %v1477_v33, 0 }
 0x209   : > { %1491 = vmatpush.bf16.xpose.msrb.mxu2 %v1482_v34 }
 0x20f   : > { %v1472_v35 = vpop.permute.xlu0 %1471 }
 0x210   : > { %2730 = vmatmul.msk.bf16.vlgmr.msrb.gmra.mxu2 %vm1395_vm1, %v1472_v35 }
 0x217   : > { %v1513_v48 = vpop.permute.xlu0 %1512 }
 0x218   : > { %v1518_v49 = vsel %vm1430_vm2, %v1513_v48, 0  ;;  %v1388_v48 = vld [vmem:[%s4159_s22 + $0x8] sm:$0xf] }
 0x219   : > { %1527 = vmatpush.bf16.msrb.mxu3 %v1518_v49  ;;  %v1615_v49 = vsel %vm1430_vm2, %v1388_v48, 0 }
 0x21c   : > { %v1411_v36 = vpop.f32.mrf.mxu3 }
 0x21d   : > { %v1415_v37 = vsel %vm1395_vm1, %v1411_v36, -inf  ;;  %1624 = vmatpush.bf16.msra.mxu3 %v1615_v49 }
 0x21e   : > { %1416 = vmax.xlane.f32.xlu1 %v1415_v37 }
 0x21f   : > { %v1634_v62 = vpop.permute.xlu0 %1633 }
 0x220   : > { %v1639_v0 = vsel %vm1395_vm1, %v1634_v62, 0 }
 0x224   : > { %v1413_v38 = vpop.f32.mrf.mxu3 }
 0x227   : > { %v1632_v18 = vpop.permute.xlu0 %1631 }
 0x291   : > { %v1417_v40 = vpop.xlane.xlu1 %1416 }
 0x292   : > { %v1418_v41 = vsub.f32 %v1411_v36, %v1417_v40 }
 0x293   : > { %v1493_v42 = vpop.f32.mrf.mxu2 }
 0x294   : > { %v1419_v43 = vmul.f32 1.442695, %v1418_v41  ;;  %v1497_v44 = vsel %vm1395_vm1, %v1493_v42, -inf }
 0x295   : > { %1498 = vmax.xlane.f32.xlu1 %v1497_v44 }
 0x296   : > { %3030 = vpow2.f32 %v1419_v43 }
 0x29b   : > { %v1495_v45 = vpop.f32.mrf.mxu2 }
 0x29c   : > { %v3031_v46 = vpop.eup %3030 }
 0x29d   : > { %v1421_v47 = vsel %vm1395_vm1, %v3031_v46, 0.0 }
 0x29e   : > { %1422 = vadd.xlane.f32.xlu2 %v1421_v47 }
 0x2ae   : > { %1556 = vrot.lane.b32.xlu1 %v1475_v22, %s3546_s26  ;;  %v3015_v22 = vld [vmem:[#allocation2] ss:$0 sm:$0xff] }
 0x2af   : > { %v1394_v23 = vadd.f32 %v3015_v22, %v3937_v1  ;;  %v2825_v22 = vld [vmem:[%s4162_s7 + $0x8] sm:$0xff]  ;;  %s1258_s7 = scalar_lea.vmem %s4165_s18, %s3930_s28  ;;  %s4169_s18 = sld [smem:[#allocation45_spill]] }
 0x308   : > { %v1499_v54 = vpop.xlane.xlu1 %1498 }
 0x309   : > { %v1500_v55 = vsub.f32 %v1493_v42, %v1499_v54 }
 0x30b   : > { %v1501_v56 = vmul.f32 1.442695, %v1500_v55 }
 0x30d   : > { %3032 = vpow2.f32 %v1501_v56 }
 0x311   : > { %v1423_v57 = vpop.xlane.xlu2 %1422 }
 0x312   : > { %3034 = vrcp.f32 %v1423_v57 }
 0x313   : > { %v3033_v58 = vpop.eup %3032 }
 0x314   : > { %v1503_v59 = vsel %vm1395_vm1, %v3033_v58, 0.0 }
 0x315   : > { %1504 = vadd.xlane.f32.xlu2 %v1503_v59 }
 0x318   : > { %v3035_v60 = vpop.eup %3034 }
 0x319   : > { %v1425_v61 = vmul.f32 %v3035_v60, %v3031_v46 }
 0x31b   : > { %v1426_v63 = vpack.c.bf16 %v1425_v61, %v1425_v61 }
 0x31d   : > { %2728 = vmatmul.msk.bf16.vlgmr.msrb.gmra.mxu0 %vm1395_vm1, %v1426_v63 }
 0x31e   : > { %1648 = vmatpush.bf16.xpose.msrb.mxu0 %v1639_v0 }
 0x320   : > { %v1557_v3 = vpop.permute.xlu1 %1556 }
 0x321   : > { %v1562_v4 = vsel %vm1395_vm1, %v1557_v3, 0 }
 0x322   : > { %1571 = vmatpush.bf16.xpose.msra.mxu1 %v1562_v4 }
 0x32d   : > { %1554 = vrot.lane.b32.xlu2 %v3958_v28, %s3546_s26 }
 0x388   : > { %v1505_v5 = vpop.xlane.xlu2 %1504 }
 0x389   : > { %3036 = vrcp.f32 %v1505_v5 }
 0x38f   : > { %v3037_v6 = vpop.eup %3036 }
 0x390   : > { %v1507_v7 = vmul.f32 %v3037_v6, %v3033_v58  ;;  %v1555_v12 = vpop.permute.xlu2 %1554 }
 0x392   : > { %v1508_v8 = vpack.c.bf16 %v1507_v7, %v1507_v7  ;;  %v3547_v7 = vmov 32.0  }
 0x394   : > { %2731 = vmatmul.msk.bf16.vlgmr.msrb.gmra.mxu3 %vm1395_vm1, %v1508_v8 }
 0x395   : > { %1778 = vmatpush.bf16.msrb.mxu3 %v2825_v22 }
 0x39a   : > { %v1443_v9 = vpop.f32.mrf.mxu0 }
 0x39b   : > { %v1447_v10 = vpack.c.bf16 %v1443_v9, %v1443_v9 }
 0x39d   : > { %2729 = vmatmul.msk.bf16.vlgmr.msrb.gmra.mxu1 %vm1395_vm1, %v1447_v10 }
 0x3a2   : > { %v1445_v11 = vpop.f32.mrf.mxu0 }
 0x3ad   : > { %2733 = vmatmul.msk.bf16.vlgmr.msra.gmra.mxu1 %vm1395_vm1, %v1555_v12 }
 0x417   : > { %v1529_v13 = vpop.f32.mrf.mxu3 }
 0x418   : > { %v1533_v14 = vpack.c.bf16 %v1529_v13, %v1529_v13 }
 0x41a   : > { %v1463_v15 = vpop.f32.mrf.mxu1  ;;  %2732 = vmatmul.msk.bf16.vlgmr.msra.gmra.mxu0 %vm1395_vm1, %v1533_v14 }
 0x41b   : > { %v1467_v24 = vadd.f32 %v1463_v15, %v1394_v23  ;;  %v2824_v23 = vld [vmem:[%s4163_s16] sm:$0xff] }
 0x41c   : > { %1779 = vmatpush.bf16.msrb.mxu3 %v2824_v23 }
 0x41f   : > { %v1531_v16 = vpop.f32.mrf.mxu3 }
 0x422   : > { %v1465_v17 = vpop.f32.mrf.mxu1 }
 0x42a   : > { %v1573_v19 = vpop.f32.mrf.mxu1  ;;  %2736 = vmatmul.msk.bf16.vlgmr.msrb.gmra.mxu0 %vm1395_vm1, %v1632_v18 }
 0x42b   : > { %v1577_v20 = vsel %vm1395_vm1, %v1573_v19, -inf }
 0x42c   : > { %1578 = vmax.xlane.f32.xlu0 %v1577_v20  ;;  %v2826_v20 = vld [vmem:[%s4160_s11] sm:$0xff] }
 0x432   : > { %v1575_v21 = vpop.f32.mrf.mxu1 }
 0x433   : > { %v2816_v21 = vld [vmem:[%s1253_s2] sm:$0xff]  ;;  %s4166_s2 = sld [smem:[#allocation42_spill]] }
 0x497   : > { %v1549_v25 = vpop.f32.mrf.mxu0 }
 0x498   : > { %v1553_v26 = vadd.f32 %v1549_v25, %v1467_v24 }
 0x49f   : > { %v1579_v27 = vpop.xlane.xlu0 %1578  ;;  %v1551_v28 = vpop.f32.mrf.mxu0 }
 0x4a0   : > { %v1580_v29 = vsub.f32 %v1573_v19, %v1579_v27  ;;  %v2827_v19 = vld [vmem:[%s4160_s11 + $0x8] sm:$0xff] }
 0x4a1   : > { %1819 = vmatpush.bf16.msra.mxu0 %v2827_v19 }
 0x4a2   : > { %v1581_v30 = vmul.f32 1.442695, %v1580_v29 }
 0x4a4   : > { %3038 = vpow2.f32 %v1581_v30 }
 0x4a5   : > { %1820 = vmatpush.bf16.msra.mxu0 %v2826_v20 }
 0x4a7   : > { %v1650_v31 = vpop.f32.mrf.mxu0 }
 0x4a8   : > { %v1654_v33 = vsel %vm1395_vm1, %v1650_v31, -inf  ;;  %2760 = vmatmul.msk.bf16.vlgmr.msra.gmra.mxu0 %vm1297_vm0, %v2816_v21 }
 0x4a9   : > { %1655 = vmax.xlane.f32.xlu2 %v1654_v33 }
 0x4aa   : > { %v3039_v34 = vpop.eup %3038 }
 0x4ab   : > { %v1583_v35 = vsel %vm1395_vm1, %v3039_v34, 0.0 }
 0x4ac   : > { %1584 = vadd.xlane.f32.xlu1 %v1583_v35 }
 0x4af   : > { %v1652_v36 = vpop.f32.mrf.mxu0 }
 0x4b0   : > { %v3017_v36 = vld [vmem:[#allocation6] ss:$0 sm:$0xff] }
 0x4c1   : > { %1589 = vrot.lane.b32.xlu2 %v3963_v32, %s3546_s26 }
 0x4c5   : > { %1666 = vrot.lane.b32.xlu1 %v3963_v32, %s3545_s9 }
 0x51c   : > { %v1656_v1 = vpop.xlane.xlu2 %1655 }
 0x51d   : > { %v1657_v37 = vsub.f32 %v1650_v31, %v1656_v1 }
 0x51f   : > { %v1658_v38 = vmul.f32 1.442695, %v1657_v37  ;;  %v1585_v39 = vpop.xlane.xlu1 %1584 }
 0x520   : > { %3040 = vrcp.f32 %v1585_v39 }
 0x521   : > { %3042 = vpow2.f32 %v1658_v38 }
 0x524   : > { %v1590_v40 = vpop.permute.xlu2 %1589 }
 0x525   : > { %v1595_v41 = vsel %vm1430_vm2, %v1590_v40, 0 }
 0x526   : > { %v3041_v42 = vpop.eup %3040  ;;  %1604 = vmatpush.bf16.msra.mxu2 %v1595_v41  ;;  %v3018_v41 = vld [vmem:[#allocation9] ss:$0 sm:$0xff] }
 0x527   : > { %v3043_v43 = vpop.eup %3042  ;;  %v1587_v44 = vmul.f32 %v3041_v42, %v3039_v34  ;;  %v3016_v34 = vld [vmem:[#allocation4] ss:$0 sm:$0xff]  ;;  %v1822_v42 = vpop.f32.mrf.mxu0 }
 0x528   : > { %v1660_v45 = vsel %vm1395_vm1, %v3043_v43, 0.0 }
 0x529   : > { %v1588_v46 = vpack.c.bf16 %v1587_v44, %v1587_v44  ;;  %1661 = vadd.xlane.f32.xlu0 %v1660_v45 }
 0x52a   : > { %1701 = vmatpush.bf16.msrb.mxu2 %v1692_v51  ;;  %v2828_v51 = vld [vmem:[%s4164_s10] sm:$0xff] }
 0x52b   : > { %2734 = vmatmul.msk.bf16.vlgmr.msra.gmra.mxu2 %vm1395_vm1, %v1588_v46 }
 0x52f   : > { %v1824_v45 = vpop.f32.mrf.mxu0 }
 0x530   : > { %v1825_v46 = vadd.f32 %v3018_v41, %v1824_v45 }
 0x537   : > { %v1667_v32 = vpop.permute.xlu1 %1666 }
 0x538   : > { %v1672_v47 = vsel %vm1430_vm2, %v1667_v32, 0 }
 0x539   : > { %1681 = vmatpush.bf16.msrb.mxu1 %v1672_v47  ;;  %v1871_v47 = vpack.c.bf16 %v1825_v46, %v1825_v46 }
 0x53b   : > { %v1886_v48 = vunpack.c.l.b16 %v1871_v47 }
 0x59c   : > { %v1662_v52 = vpop.xlane.xlu0 %1661 }
 0x59d   : > { %3044 = vrcp.f32 %v1662_v52  ;;  %v3019_v52 = vld [vmem:[#allocation7] ss:$0 sm:$0xff] }
 0x59e   : > { %3046 = vrcp.f32 %v3547_v7 }
 0x5a3   : > { %v3045_v53 = vpop.eup %3044 }
 0x5a4   : > { %v1664_v54 = vmul.f32 %v3045_v53, %v3043_v43  ;;  %v3047_v8 = vpop.eup %3046  ;;  %v1823_v43 = vadd.f32 %v3018_v41, %v1822_v42 }
 0x5a5   : > { %v1712_v9 = vmul.f32 32.0, %v3047_v8  ;;  %vm1716_vm3 = vweird.f32 %v3047_v8 }
 0x5a6   : > { %v1665_v55 = vpack.c.bf16 %v1664_v54, %v1664_v54  ;;  %v1870_v44 = vpack.c.bf16 %v1823_v43, %v1823_v43 }
 0x5a7   : > { %v1713_v10 = vsub.f32 1.0, %v1712_v9 }
 0x5a8   : > { %2737 = vmatmul.msk.bf16.vlgmr.msrb.gmra.mxu1 %vm1395_vm1, %v1665_v55  ;;  %v1885_v32 = vunpack.c.l.b16 %v1870_v44 }
 0x5a9   : > { %v1714_v11 = vmul.f32 %v3047_v8, %v1713_v10 }
 0x5aa   : > { %v4030_v49 = vpack.c.b16 %v1886_v48, %v1885_v32 }
 0x5ab   : > { %v1715_v12 = vadd.f32 %v3047_v8, %v1714_v11 }
 0x5ac   : > { %v1892_v50 = vsel %vm1395_vm1, %v4030_v49, 0  ;;  %1968 = vrot.lane.b32.xlu2 %v4030_v49, %s3544_s0 }
 0x5ad   : > { %v4013_v13 = vsel %vm1716_vm3, %v3047_v8, %v1715_v12  ;;  %1901 = vmatpush.bf16.xpose.msra.mxu2 %v1892_v50 }
 0x5ae   : > { %v1606_v56 = vpop.f32.mrf.mxu2 }
 0x5af   : > { %v1610_v57 = vpack.c.bf16 %v1606_v56, %v1606_v56 }
 0x5b1   : > { %2735 = vmatmul.msk.bf16.vlgmr.msra.gmra.mxu3 %vm1395_vm1, %v1610_v57 }
 0x5b6   : > { %v1608_v58 = vpop.f32.mrf.mxu2 }
 0x625   : > { %v1683_v59 = vpop.f32.mrf.mxu1 }
 0x626   : > { %v1687_v60 = vpack.c.bf16 %v1683_v59, %v1683_v59  ;;  %v2817_v59 = vld [vmem:[%s1258_s7] sm:$0xff]  ;;  %s1266_s7 = scalar_lea.vmem %s4169_s18, %s3930_s28 }
 0x628   : > { %2738 = vmatmul.msk.bf16.vlgmr.msrb.gmra.mxu2 %vm1395_vm1, %v1687_v60  ;;  %v1969_v60 = vpop.permute.xlu2 %1968 }
 0x62d   : > { %v1685_v61 = vpop.f32.mrf.mxu1 }
 0x62e   : > { %v1974_v61 = vsel %vm1395_vm1, %v1969_v60, 0 }
 0x634   : > { %v1626_v62 = vpop.f32.mrf.mxu3 }
 0x635   : > { %v1630_v63 = vadd.f32 %v1626_v62, %v1553_v26 }
 0x63c   : > { %v1628_v0 = vpop.f32.mrf.mxu3 }
 0x6ab   : > { %v1703_v3 = vpop.f32.mrf.mxu2 }
 0x6ac   : > { %v1707_v4 = vadd.f32 %v1703_v3, %v1630_v63 }
 0x6ae   : > { %v1708_v5 = vsel %vm1297_vm0, %v1707_v4, 0.0 }
 0x6af   : > { %1709 = vadd.xlane.f32.xlu0 %v1708_v5 }
 0x6b3   : > { %v1705_v6 = vpop.f32.mrf.mxu2 }
 0x722   : > { %v1710_v14 = vpop.xlane.xlu0 %1709 }
 0x723   : > { %v1718_v15 = vmul.f32 %v4013_v13, %v1710_v14 }
 0x725   : > { %v1719_v16 = vsub.f32 %v1707_v4, %v1718_v15  ;;  %v3020_v4 = vld [vmem:[#allocation10] ss:$0 sm:$0xff] }
 0x727   : > { %v1720_v17 = vmul.f32 %v1719_v16, %v1719_v16 }
 0x729   : > { %v1721_v18 = vsel %vm1297_vm0, %v1720_v17, 0.0 }
 0x72a   : > { %1722 = vadd.xlane.f32.xlu0 %v1721_v18 }
 0x79d   : > { %v1723_v24 = vpop.xlane.xlu0 %1722 }
 0x79e   : > { %v1724_v25 = vmul.f32 %v1723_v24, %v4013_v13 }
 0x7a0   : > { %v1725_v26 = vadd.f32 1e-05, %v1724_v25  ;;  %v1875_v25 = vld [vmem:[%s4166_s2 + $0x4] sm:$0xf] }
 0x7a2   : > { %3048 = vrsqrt.f32 %v1725_v26  ;;  %vm1732_vm5 = vweird.f32 %v1725_v26 }
 0x7a8   : > { %v3049_v27 = vpop.eup %3048 }
 0x7a9   : > { %v1727_v28 = vmul.f32 %v3049_v27, %v1725_v26  ;;  %vm1733_vm4 = vweird.f32 %v3049_v27 }
 0x7aa   : > { %vm1734_vm6 = vmor %vm1732_vm5, %vm1733_vm4 }
 0x7ab   : > { %v1728_v29 = vmul.f32 %v3049_v27, %v1727_v28 }
 0x7ad   : > { %v1729_v30 = vmul.f32 0.5, %v1728_v29 }
 0x7af   : > { %v1730_v31 = vsub.f32 1.5, %v1729_v30 }
 0x7b1   : > { %v1731_v33 = vmul.f32 %v3049_v27, %v1730_v31 }
 0x7b3   : > { %v1735_v35 = vsel %vm1734_vm6, %v3049_v27, %v1731_v33  ;;  %v2025_v27 = vsel %vm1430_vm2, %v1875_v25, 0 }
 0x7b4   : > { %v1736_v1 = vmul.f32 %v1735_v35, %v1719_v16 }
 0x7b6   : > { %v1741_v37 = vmul.f32 %v3016_v34, %v1736_v1 }
 0x7b8   : > { %v4025_v38 = vadd.f32 %v3017_v36, %v1741_v37  ;;  %v1874_v37 = vld [vmem:[%s4166_s2] sm:$0xf] }
 0x7ba   : > { %v1747_v39 = vadd.f32 %v4025_v38, %v3939_v2  ;;  %v2829_v2 = vld [vmem:[%s4164_s10 + $0x8] sm:$0xff] }
 0x7bb   : > { %1861 = vmatpush.bf16.msra.mxu1 %v2829_v2 }
 0x7bc   : > { %v1748_v40 = vpack.c.bf16 %v1747_v39, %v1747_v39  ;;  %v1947_v39 = vsel %vm1430_vm2, %v1874_v37, 0 }
 0x7bd   : > { %1956 = vmatpush.bf16.msrb.mxu0 %v1947_v39 }
 0x7be   : > { %2747 = vmatmul.msk.bf16.vlgmr.msrb.gmra.mxu3 %vm1297_vm0, %v1748_v40 }
 0x7bf   : > { %1862 = vmatpush.bf16.msra.mxu1 %v2828_v51  ;;  %v3021_v51 = vld [vmem:[#allocation12] ss:$0 sm:$0xff] }
 0x7c2   : > { %2773 = vmatmul.msk.bf16.vlgmr.msra.gmra.mxu1 %vm1297_vm0, %v2817_v59 }
 0x7c3   : > { %1983 = vmatpush.bf16.xpose.msrb.mxu1 %v1974_v61 }
 0x83f   : > { %v1864_v5 = vpop.f32.mrf.mxu1 }
 0x840   : > { %v1865_v6 = vadd.f32 %v3020_v4, %v1864_v5 }
 0x841   : > { %v1781_v53 = vpop.f32.mrf.mxu3 }
 0x842   : > { %v1782_v54 = vadd.f32 %v3019_v52, %v1781_v53  ;;  %v1872_v7 = vpack.c.bf16 %v1865_v6, %v1865_v6  ;;  %v1882_v52 = vadd.f32 %v3021_v51, %v4025_v38 }
 0x844   : > { %v1869_v55 = vpack.c.bf16 %v1782_v54, %v1782_v54  ;;  %v1922_v10 = vunpack.c.l.b16 %v1872_v7 }
 0x846   : > { %v1964_v56 = vunpack.c.l.b16 %v1869_v55  ;;  %2774 = vmatmul.msk.bf16.vlgmr.msra.gmra.mxu2 %vm1395_vm1, %v1869_v55 }
 0x847   : > { %v1866_v8 = vpop.f32.mrf.mxu1 }
 0x848   : > { %v1965_v57 = vpack.c.b16 %v1964_v56, %v1964_v56  ;;  %v1867_v9 = vadd.f32 %v3020_v4, %v1866_v8 }
 0x849   : > { %v1783_v58 = vpop.f32.mrf.mxu3 }
 0x84a   : > { %1966 = vrot.lane.b32.xlu0 %v1965_v57, %s3544_s0  ;;  %v1873_v11 = vpack.c.bf16 %v1867_v9, %v1867_v9 }
 0x84c   : > { %v1923_v12 = vunpack.c.l.b16 %v1873_v11 }
 0x84e   : > { %v4046_v14 = vpack.c.b16 %v1923_v12, %v1922_v10 }
 0x850   : > { %1936 = vmatpush.bf16.msra.mxu3 %v4046_v14 }
 0x854   : > { %2034 = vmatpush.bf16.msrb.mxu3 %v2025_v27 }
 0x8bc   : > { %v1967_v62 = vpop.permute.xlu0 %1966 }
 0x8bd   : > { %2777 = vmatmul.msk.bf16.vlgmr.msrb.gmra.mxu1 %vm1395_vm1, %v1967_v62 }
 0x8c9   : > { %v1903_v63 = vpop.f32.mrf.mxu2 }
 0x8ca   : > { %v1908_v0 = vsel %vm1907_vm7, %v1903_v63, -inf }
 0x8cb   : > { %1909 = vmax.xlane.f32.xlu1 %v1908_v0 }
 0x8d1   : > { %v1905_v3 = vpop.f32.mrf.mxu2 }
 0x93a   : > { %v1985_v15 = vpop.f32.mrf.mxu1 }
 0x93b   : > { %v1989_v16 = vsel %vm1907_vm7, %v1985_v15, -inf }
 0x93c   : > { %1990 = vmax.xlane.f32.xlu2 %v1989_v16 }
 0x93e   : > { %v1910_v17 = vpop.xlane.xlu1 %1909 }
 0x93f   : > { %v1911_v18 = vsub.f32 %v1903_v63, %v1910_v17 }
 0x941   : > { %v1912_v19 = vmul.f32 1.442695, %v1911_v18 }
 0x942   : > { %v1987_v20 = vpop.f32.mrf.mxu1 }
 0x943   : > { %3050 = vpow2.f32 %v1912_v19  ;;  %v1876_v20 = vld [vmem:[%s4166_s2 + $0x8] sm:$0xf] }
 0x949   : > { %v3051_v21 = vpop.eup %3050 }
 0x94a   : > { %v1914_v22 = vsel %vm1907_vm7, %v3051_v21, 0.0 }
 0x94b   : > { %1915 = vadd.xlane.f32.xlu0 %v1914_v22  ;;  %v1877_v22 = vld [vmem:[%s4166_s2 + $0xc] sm:$0xf] }
 0x954   : > { %2001 = vrot.lane.b32.xlu2 %v4046_v14, %s3544_s0  ;;  %s4167_s0 = sld [smem:[#allocation43_spill]] }
 0x95c   : > { %2041 = vrot.lane.b32.xlu2 %v1965_v57, %s3546_s26 }
 0x95f   : > { %2118 = vrot.lane.b32.xlu0 %v4030_v49, %s3545_s9 }
 0x9af   : > { %v1991_v23 = vpop.xlane.xlu2 %1990 }
 0x9b0   : > { %v1992_v24 = vsub.f32 %v1985_v15, %v1991_v23  ;;  %v2175_v23 = vsel %vm1430_vm2, %v1877_v22, 0 }
 0x9b2   : > { %v1993_v26 = vmul.f32 1.442695, %v1992_v24 }
 0x9b4   : > { %3052 = vpow2.f32 %v1993_v26 }
 0x9b7   : > { %v2002_v28 = vpop.permute.xlu2 %2001 }
 0x9b8   : > { %2014 = vmatpush.bf16.msrb.mxu2 %v2002_v28 }
 0x9ba   : > { %v3053_v29 = vpop.eup %3052 }
 0x9bb   : > { %v1995_v30 = vsel %vm1907_vm7, %v3053_v29, 0.0 }
 0x9bc   : > { %1996 = vadd.xlane.f32.xlu1 %v1995_v30 }
 0x9be   : > { %v1916_v31 = vpop.xlane.xlu0 %1915 }
 0x9bf   : > { %3054 = vrcp.f32 %v1916_v31  ;;  %v2042_v48 = vpop.permute.xlu2 %2041 }
 0x9c5   : > { %v3055_v33 = vpop.eup %3054 }
 0x9c6   : > { %v1918_v34 = vmul.f32 %v3055_v33, %v3051_v21  ;;  %v2100_v21 = vsel %vm1430_vm2, %v1876_v20, 0 }
 0x9c7   : > { %2109 = vmatpush.bf16.msra.mxu2 %v2100_v21 }
 0x9c8   : > { %v1919_v35 = vpack.c.bf16 %v1918_v34, %v1918_v34 }
 0x9ca   : > { %2775 = vmatmul.msk.bf16.vlgmr.msra.gmra.mxu3 %vm1907_vm7, %v1919_v35 }
 0x9d1   : > { %v2119_v36 = vpop.permute.xlu0 %2118 }
 0x9d2   : > { %v2124_v1 = vsel %vm1395_vm1, %v2119_v36, 0 }
 0x9d3   : > { %2133 = vmatpush.bf16.xpose.msra.mxu3 %v2124_v1 }
 0x9d5   : > { %2043 = vrot.lane.b32.xlu1 %v4030_v49, %s3546_s26 }
 0x9dd   : > { %2116 = vrot.lane.b32.xlu1 %v1965_v57, %s3545_s9 }
 0xa2f   : > { %v1997_v40 = vpop.xlane.xlu1 %1996 }
 0xa30   : > { %3056 = vrcp.f32 %v1997_v40 }
 0xa36   : > { %v3057_v41 = vpop.eup %3056 }
 0xa37   : > { %v1999_v42 = vmul.f32 %v3057_v41, %v3053_v29 }
 0xa39   : > { %v2000_v43 = vpack.c.bf16 %v1999_v42, %v1999_v42 }
 0xa3b   : > { %2778 = vmatmul.msk.bf16.vlgmr.msrb.gmra.mxu2 %vm1907_vm7, %v2000_v43 }
 0xa47   : > { %v2044_v44 = vpop.permute.xlu1 %2043 }
 0xa48   : > { %v2049_v45 = vsel %vm1395_vm1, %v2044_v44, 0 }
 0xa49   : > { %2058 = vmatpush.bf16.xpose.msra.mxu0 %v2049_v45 }
 0xa4d   : > { %v1938_v46 = vpop.f32.mrf.mxu3 }
 0xa4e   : > { %v1942_v32 = vpack.c.bf16 %v1938_v46, %v1938_v46 }
 0xa4f   : > { %v2117_v55 = vpop.permute.xlu1 %2116 }
 0xa50   : > { %2776 = vmatmul.msk.bf16.vlgmr.msrb.gmra.mxu0 %vm1395_vm1, %v1942_v32  ;;  %v2831_v32 = vld [vmem:[%s4167_s0 + $0x8] sm:$0xff] }
 0xa51   : > { %2253 = vmatpush.bf16.msrb.mxu2 %v2831_v32 }
 0xa55   : > { %v1940_v47 = vpop.f32.mrf.mxu3 }
 0xa56   : > { %v2830_v47 = vld [vmem:[%s4167_s0] sm:$0xff] }
 0xa57   : > { %2254 = vmatpush.bf16.msrb.mxu2 %v2830_v47 }
 0xa60   : > { %2780 = vmatmul.msk.bf16.vlgmr.msra.gmra.mxu0 %vm1395_vm1, %v2042_v48 }
 0xabe   : > { %v2016_v49 = vpop.f32.mrf.mxu2 }
 0xabf   : > { %v2020_v50 = vpack.c.bf16 %v2016_v49, %v2016_v49 }
 0xac1   : > { %2779 = vmatmul.msk.bf16.vlgmr.msrb.gmra.mxu3 %vm1395_vm1, %v2020_v50 }
 0xac6   : > { %v2018_v2 = vpop.f32.mrf.mxu2 }
 0xacd   : > { %v1958_v53 = vpop.f32.mrf.mxu0 }
 0xace   : > { %v1962_v54 = vadd.f32 %v1958_v53, %v1882_v52 }
 0xad1   : > { %2783 = vmatmul.msk.bf16.vlgmr.msra.gmra.mxu3 %vm1395_vm1, %v2117_v55 }
 0xad5   : > { %v1960_v56 = vpop.f32.mrf.mxu0 }
 0xadd   : > { %v2060_v57 = vpop.f32.mrf.mxu0 }
 0xade   : > { %v2064_v58 = vsel %vm1907_vm7, %v2060_v57, -inf }
 0xadf   : > { %2065 = vmax.xlane.f32.xlu2 %v2064_v58  ;;  %v3022_v58 = vld [vmem:[#allocation13] ss:$0 sm:$0xff] }
 0xae5   : > { %v2062_v59 = vpop.f32.mrf.mxu0 }
 0xb44   : > { %v2036_v60 = vpop.f32.mrf.mxu3 }
 0xb45   : > { %v2040_v61 = vadd.f32 %v2036_v60, %v1962_v54  ;;  %v3023_v60 = vld [vmem:[#allocation15] ss:$0 sm:$0xff] }
 0xb4c   : > { %v2038_v62 = vpop.f32.mrf.mxu3 }
 0xb52   : > { %v2066_v63 = vpop.xlane.xlu2 %2065 }
 0xb53   : > { %v2067_v0 = vsub.f32 %v2060_v57, %v2066_v63 }
 0xb54   : > { %v2135_v3 = vpop.f32.mrf.mxu3 }
 0xb55   : > { %v2068_v4 = vmul.f32 1.442695, %v2067_v0  ;;  %v2139_v38 = vsel %vm1907_vm7, %v2135_v3, -inf }
 0xb56   : > { %2140 = vmax.xlane.f32.xlu0 %v2139_v38  ;;  %v3024_v38 = vld [vmem:[#allocation16] ss:$0 sm:$0xff] }
 0xb57   : > { %3058 = vpow2.f32 %v2068_v4 }
 0xb5c   : > { %v2137_v5 = vpop.f32.mrf.mxu3 }
 0xb5d   : > { %v3059_v6 = vpop.eup %3058 }
 0xb5e   : > { %v2070_v7 = vsel %vm1907_vm7, %v3059_v6, 0.0 }
 0xb5f   : > { %2071 = vadd.xlane.f32.xlu1 %v2070_v7 }
 0xb6a   : > { %2076 = vrot.lane.b32.xlu0 %v4046_v14, %s3546_s26  ;;  %s1262_s26 = scalar_lea.vmem %s3716_s29, %s3930_s28 }
 0xb78   : > { %2151 = vrot.lane.b32.xlu1 %v4046_v14, %s3545_s9  ;;  %s4168_s9 = sld [smem:[#allocation44_spill]] }
 0xb7e   : > { %v2835_v48 = vld [vmem:[%s4168_s9 + $0x18] sm:$0xff]  ;;  %v2834_v2 = vld [vmem:[%s4168_s9 + $0x10] sm:$0xff]  ;;  %v2832_v4 = vld [vmem:[%s4168_s9] sm:$0xff] }
 0xb7f   : > { %2306 = vmatpush.bf16.msrb.mxu3 %v2835_v48 }
 0xb83   : > { %2307 = vmatpush.bf16.msrb.mxu3 %v2834_v2 }
 0xbc9   : > { %v2141_v8 = vpop.xlane.xlu0 %2140 }
 0xbca   : > { %v2142_v9 = vsub.f32 %v2135_v3, %v2141_v8  ;;  %v2833_v3 = vld [vmem:[%s4168_s9 + $0x8] sm:$0xff] }
 0xbcb   : > { %2308 = vmatpush.bf16.msrb.mxu3 %v2833_v3 }
 0xbcc   : > { %v2143_v10 = vmul.f32 1.442695, %v2142_v9 }
 0xbce   : > { %3060 = vpow2.f32 %v2143_v10  ;;  %v3025_v10 = vld [vmem:[#allocation18] ss:$0 sm:$0xff] }
 0xbcf   : > { %2309 = vmatpush.bf16.msrb.mxu3 %v2832_v4 }
 0xbd2   : > { %v2072_v11 = vpop.xlane.xlu1 %2071 }
 0xbd3   : > { %3062 = vrcp.f32 %v2072_v11 }
 0xbd4   : > { %v3061_v12 = vpop.eup %3060 }
 0xbd5   : > { %v2145_v15 = vsel %vm1907_vm7, %v3061_v12, 0.0 }
 0xbd6   : > { %2146 = vadd.xlane.f32.xlu2 %v2145_v15 }
 0xbd9   : > { %v3063_v16 = vpop.eup %3062 }
 0xbda   : > { %v2074_v17 = vmul.f32 %v3063_v16, %v3059_v6 }
 0xbdc   : > { %v2077_v18 = vpop.permute.xlu0 %2076  ;;  %v2075_v19 = vpack.c.bf16 %v2074_v17, %v2074_v17 }
 0xbdd   : > { %2089 = vmatpush.bf16.msra.mxu1 %v2077_v18 }
 0xbe0   : > { %2781 = vmatmul.msk.bf16.vlgmr.msra.gmra.mxu1 %vm1907_vm7, %v2075_v19 }
 0xbe1   : > { %2184 = vmatpush.bf16.msrb.mxu1 %v2175_v23 }
 0xbea   : > { %v2152_v14 = vpop.permute.xlu1 %2151 }
 0xbeb   : > { %2164 = vmatpush.bf16.msrb.mxu0 %v2152_v14 }
 0xc49   : > { %v2147_v24 = vpop.xlane.xlu2 %2146 }
 0xc4a   : > { %3064 = vrcp.f32 %v2147_v24 }
 0xc50   : > { %v3065_v25 = vpop.eup %3064 }
 0xc51   : > { %v2149_v26 = vmul.f32 %v3065_v25, %v3061_v12 }
 0xc53   : > { %v2150_v27 = vpack.c.bf16 %v2149_v26, %v2149_v26 }
 0xc55   : > { %2784 = vmatmul.msk.bf16.vlgmr.msrb.gmra.mxu0 %vm1907_vm7, %v2150_v27 }
 0xc5d   : > { %v2091_v28 = vpop.f32.mrf.mxu1 }
 0xc5e   : > { %v2095_v29 = vpack.c.bf16 %v2091_v28, %v2091_v28 }
 0xc60   : > { %2782 = vmatmul.msk.bf16.vlgmr.msra.gmra.mxu2 %vm1395_vm1, %v2095_v29 }
 0xc65   : > { %v2093_v30 = vpop.f32.mrf.mxu1 }
 0xcd2   : > { %v2166_v31 = vpop.f32.mrf.mxu0 }
 0xcd3   : > { %v2170_v33 = vpack.c.bf16 %v2166_v31, %v2166_v31  ;;  %v3026_v31 = vld [vmem:[#allocation19] ss:$0 sm:$0xff] }
 0xcd5   : > { %2785 = vmatmul.msk.bf16.vlgmr.msrb.gmra.mxu1 %vm1395_vm1, %v2170_v33 }
 0xcda   : > { %v2168_v34 = vpop.f32.mrf.mxu0 }
 0xce3   : > { %v2111_v35 = vpop.f32.mrf.mxu2 }
 0xce4   : > { %v2115_v36 = vadd.f32 %v2111_v35, %v2040_v61  ;;  %v3027_v35 = vld [vmem:[#allocation21] ss:$0 sm:$0xff] }
 0xceb   : > { %v2113_v1 = vpop.f32.mrf.mxu2 }
 0xd52   : > { %v2186_v37 = vpop.f32.mrf.mxu1 }
 0xd53   : > { %v2190_v39 = vadd.f32 %v2186_v37, %v2115_v36 }
 0xd55   : > { %v2191_v40 = vsel %vm1297_vm0, %v2190_v39, 0.0 }
 0xd56   : > { %2192 = vadd.xlane.f32.xlu2 %v2191_v40 }
 0xd5a   : > { %v2188_v41 = vpop.f32.mrf.mxu1 }
 0xdc9   : > { %v2193_v42 = vpop.xlane.xlu2 %2192 }
 0xdca   : > { %v2194_v43 = vmul.f32 %v2193_v42, %v4013_v13 }
 0xdcc   : > { %v2195_v44 = vsub.f32 %v2190_v39, %v2194_v43 }
 0xdce   : > { %v2196_v45 = vmul.f32 %v2195_v44, %v2195_v44 }
 0xdd0   : > { %v2197_v46 = vsel %vm1297_vm0, %v2196_v45, 0.0 }
 0xdd1   : > { %2198 = vadd.xlane.f32.xlu2 %v2197_v46 }
 0xe44   : > { %v2199_v49 = vpop.xlane.xlu2 %2198 }
 0xe45   : > { %v2200_v50 = vmul.f32 %v2199_v49, %v4013_v13 }
 0xe47   : > { %v2201_v51 = vadd.f32 1e-05, %v2200_v50 }
 0xe49   : > { %3066 = vrsqrt.f32 %v2201_v51  ;;  %vm2208_vm9 = vweird.f32 %v2201_v51 }
 0xe4f   : > { %v3067_v52 = vpop.eup %3066 }
 0xe50   : > { %v2203_v53 = vmul.f32 %v3067_v52, %v2201_v51  ;;  %vm2209_vm8 = vweird.f32 %v3067_v52  ;;  %v3028_v51 = vld [vmem:[%s3706_s25] ss:$0 sm:$0xff] }
 0xe51   : > { %vm2210_vm10 = vmor %vm2208_vm9, %vm2209_vm8 }
 0xe52   : > { %v2204_v54 = vmul.f32 %v3067_v52, %v2203_v53  ;;  %v3029_v53 = vld [vmem:[%s3711_s21] ss:$0 sm:$0xff] }
 0xe54   : > { %v2205_v55 = vmul.f32 0.5, %v2204_v54 }
 0xe56   : > { %v2206_v56 = vsub.f32 1.5, %v2205_v55 }
 0xe58   : > { %v2207_v57 = vmul.f32 %v3067_v52, %v2206_v56 }
 0xe5a   : > { %v2211_v59 = vsel %vm2210_vm10, %v3067_v52, %v2207_v57 }
 0xe5b   : > { %v2212_v61 = vmul.f32 %v2211_v59, %v2195_v44 }
 0xe5d   : > { %v2217_v62 = vmul.f32 %v3022_v58, %v2212_v61 }
 0xe5f   : > { %v2222_v63 = vadd.f32 %v3023_v60, %v2217_v62 }
 0xe61   : > { %v2223_v0 = vpack.c.bf16 %v2222_v63, %v2222_v63 }
 0xe63   : > { %2794 = vmatmul.msk.bf16.vlgmr.msrb.gmra.mxu2 %vm1297_vm0, %v2223_v0 }
 0xee6   : > { %v2256_v5 = vpop.f32.mrf.mxu2 }
 0xee7   : > { %v2257_v6 = vadd.f32 %v3024_v38, %v2256_v5 }
 0xee9   : > { %v2260_v7 = vmax.f32 %v2257_v6, 0.0 }
 0xeeb   : > { %v2261_v8 = vpack.c.bf16 %v2260_v7, %v2260_v7 }
 0xeed   : > { %2811 = vmatmul.msk.bf16.vlgmr.msrb.gmra.mxu3 %vm2298_vm11, %v2261_v8 }
 0xeee   : > { %v2258_v9 = vpop.f32.mrf.mxu2 }
 0xf70   : > { %v2311_v11 = vpop.f32.mrf.mxu3 }
 0xf71   : > { %v2312_v12 = vadd.f32 %v3025_v10, %v2311_v11 }
 0xf73   : > { %v2315_v15 = vadd.f32 %v2312_v12, %v2222_v63 }
 0xf75   : > { %v2316_v16 = vsel %vm1297_vm0, %v2315_v15, 0.0 }
 0xf76   : > { %2317 = vadd.xlane.f32.xlu0 %v2316_v16 }
 0xf78   : > { %v2313_v17 = vpop.f32.mrf.mxu3 }
 0xfe9   : > { %v2318_v18 = vpop.xlane.xlu0 %2317 }
 0xfea   : > { %v2319_v19 = vmul.f32 %v2318_v18, %v4013_v13 }
 0xfec   : > { %v2320_v14 = vsub.f32 %v2315_v15, %v2319_v19 }
 0xfee   : > { %v2321_v20 = vmul.f32 %v2320_v14, %v2320_v14 }
 0xff0   : > { %v2322_v21 = vsel %vm1297_vm0, %v2321_v20, 0.0 }
 0xff1   : > { %2323 = vadd.xlane.f32.xlu2 %v2322_v21 }
0x1064   : > { %v2324_v22 = vpop.xlane.xlu2 %2323 }
0x1065   : > { %v2325_v23 = vmul.f32 %v2324_v22, %v4013_v13 }
0x1067   : > { %v2326_v24 = vadd.f32 1e-05, %v2325_v23 }
0x1069   : > { %3068 = vrsqrt.f32 %v2326_v24  ;;  %vm2333_vm13 = vweird.f32 %v2326_v24 }
0x106f   : > { %v3069_v25 = vpop.eup %3068 }
0x1070   : > { %v2328_v26 = vmul.f32 %v3069_v25, %v2326_v24  ;;  %vm2334_vm12 = vweird.f32 %v3069_v25 }
0x1071   : > { %vm2335_vm14 = vmor %vm2333_vm13, %vm2334_vm12 }
0x1072   : > { %v2329_v27 = vmul.f32 %v3069_v25, %v2328_v26 }
0x1074   : > { %v2330_v28 = vmul.f32 0.5, %v2329_v27 }
0x1076   : > { %v2331_v29 = vsub.f32 1.5, %v2330_v28 }
0x1078   : > { %v2332_v30 = vmul.f32 %v3069_v25, %v2331_v29 }
0x107a   : > { %v2336_v33 = vsel %vm2335_vm14, %v3069_v25, %v2332_v30 }
0x107b   : > { %v2337_v34 = vmul.f32 %v2336_v33, %v2320_v14 }
0x107d   : > { %v2342_v36 = vmul.f32 %v3026_v31, %v2337_v34 }
0x107f   : > { %v2347_v1 = vadd.f32 %v3027_v35, %v2342_v36 }
0x1081   : > { %v2349_v37 = vsel %vm1297_vm0, %v2347_v1, 0.0  ;;  %2348 = vst.msk [vmem:[%s1262_s26] sm:$0xff] %vm1297_vm0, %v2347_v1 }
0x1082   : > { %2350 = vadd.xlane.f32.xlu1 %v2349_v37 }
0x10f5   : > { %v2351_v39 = vpop.xlane.xlu1 %2350 }
0x10f6   : > { %v2352_v40 = vmul.f32 %v2351_v39, %v4013_v13 }
0x10f8   : > { %v2353_v41 = vsub.f32 %v2347_v1, %v2352_v40 }
0x10fa   : > { %v2354_v42 = vmul.f32 %v2353_v41, %v2353_v41 }
0x10fc   : > { %v2355_v43 = vsel %vm1297_vm0, %v2354_v42, 0.0 }
0x10fd   : > { %2356 = vadd.xlane.f32.xlu2 %v2355_v43 }
0x1170   : > { %v2357_v44 = vpop.xlane.xlu2 %2356 }
0x1171   : > { %v2358_v45 = vmul.f32 %v2357_v44, %v4013_v13 }
0x1173   : > { %v2359_v46 = vadd.f32 1e-05, %v2358_v45 }
0x1175   : > { %3070 = vrsqrt.f32 %v2359_v46  ;;  %vm2366_vm1 = vweird.f32 %v2359_v46 }
0x117b   : > { %v3071_v32 = vpop.eup %3070 }
0x117c   : > { %v2361_v47 = vmul.f32 %v3071_v32, %v2359_v46  ;;  %vm2367_vm15 = vweird.f32 %v3071_v32 }
0x117d   : > { %vm2368_vm2 = vmor %vm2366_vm1, %vm2367_vm15 }
0x117e   : > { %v2362_v48 = vmul.f32 %v3071_v32, %v2361_v47 }
0x1180   : > { %v2363_v49 = vmul.f32 0.5, %v2362_v48 }
0x1182   : > { %v2364_v50 = vsub.f32 1.5, %v2363_v49 }
0x1184   : > { %v2365_v2 = vmul.f32 %v3071_v32, %v2364_v50 }
0x1186   : > { %v2369_v52 = vsel %vm2368_vm2, %v3071_v32, %v2365_v2 }
0x1187   : > { %v2370_v54 = vmul.f32 %v2369_v52, %v2353_v41 }
0x1189   : > { %v2375_v55 = vmul.f32 %v3028_v51, %v2370_v54 }
0x118b   : > { %v2380_v13 = vadd.f32 %v3029_v53, %v2375_v55 }
0x118d   : > { %2381 = vst.msk [vmem:[%s1266_s7] sm:$0xff] %vm1297_vm0, %v2380_v13 }
0x118e PF: > { %s4170_s26 = sld [smem:[#allocation46_spill]] }
0x1194   : > { %s85_s7 = sadd.s32 1, %s4170_s26  }
0x1195   : > { %p82_p2 = scmp.ge.s32.totalorder %s85_s7, 4  }
0x1197   :  { %84 = sbr.rel (!%p82_p2) target bundleno = 64 (0x40), region = 285 }
0x119c   :  { %2415 = vsyncpa [#allocation3], 1 }
0x119d   :  { %2417 = vsyncpa [#allocation3 + $0x1], 1 }
0x119e   :  { %2418 = vsyncpa [#allocation5], 1 }
0x119f   :  { %2419 = vsyncpa [#allocation8], 1 }
0x11a0   :  { %2420 = vsyncpa [#allocation11], 1 }
0x11a1   :  { %2421 = vsyncpa [#allocation14], 1 }
0x11a2   :  { %2422 = vsyncpa [#allocation17], 1 }
0x11a3   :  { %2423 = vsyncpa [#allocation20], 1 }

// kernel: transformer_decoder.3
= control target key start
LH: loop header
LB: loop body
LE: loop exit
PB: predicated region body
PF: predicated region fallthrough
CT: control target
= control target key end

     0   :  { %s3823_s6 = smov 1   ;;  %s3824_s10 = smov 2   ;;  %s4542_s0 = inlined_call_operand.smem [shape: u32[34], index: -1, kind: input, shape index: {}] }
   0x1   :  { %s3886_s5 = sld [smem:[%s4542_s0]]   ;;  %s3825_s14 = smov 3  }
   0x2   :  { %s3891_s9 = sld [smem:[%s4542_s0 + %s3823_s6]]   ;;  %s3826_s18 = smov 4  }
   0x3   :  { %s3896_s13 = sld [smem:[%s4542_s0 + %s3824_s10]]   ;;  %s3827_s22 = smov 5  }
   0x4   :  { %s3901_s17 = sld [smem:[%s4542_s0 + %s3825_s14]]   ;;  %s3828_s26 = smov 6  }
   0x5   :  { %s3906_s21 = sld [smem:[%s4542_s0 + %s3826_s18]]   ;;  %s3829_s30 = smov 7  }
   0x6   :  { %s3911_s25 = sld [smem:[%s4542_s0 + %s3827_s22]]   ;;  %s3830_s4 = smov 8  }
   0x7   :  { %4565 = sst [smem:[#allocation39_spill]] %s3886_s5  ;;  %s3831_s10 = smov 9  }
   0x8   :  { %4566 = sst [smem:[#allocation40_spill]] %s3891_s9  ;;  %s3832_s15 = smov 10  }
   0x9   :  { %4567 = sst [smem:[#allocation41_spill]] %s3896_s13  ;;  %s3833_s20 = smov 11  }
   0xa   :  { %4568 = sst [smem:[#allocation42_spill]] %s3901_s17  ;;  %s3835_s1 = smov 13  }
   0xb   :  { %4569 = sst [smem:[#allocation43_spill]] %s3906_s21  ;;  %s3836_s7 = smov 14  }
   0xc   :  { %4570 = sst [smem:[#allocation44_spill]] %s3911_s25  ;;  %s3838_s22 = smov 16  }
   0xd   :  { %s3916_s29 = sld [smem:[%s4542_s0 + %s3828_s26]]   ;;  %s3834_s26 = smov 12  }
   0xe   :  { %s3921_s3 = sld [smem:[%s4542_s0 + %s3829_s30]]   ;;  %s3839_s28 = smov 17  }
   0xf   :  { %s3926_s8 = sld [smem:[%s4542_s0 + %s3830_s4]]  }
  0x10   :  { %s3931_s14 = sld [smem:[%s4542_s0 + %s3831_s10]]  }
  0x11   :  { %s3936_s19 = sld [smem:[%s4542_s0 + %s3832_s15]]   ;;  %s3837_s15 = smov 15  }
  0x12   :  { %s3941_s24 = sld [smem:[%s4542_s0 + %s3833_s20]]  }
  0x13   :  { %4571 = sst [smem:[#allocation45_spill]] %s3916_s29 }
  0x14   :  { %4572 = sst [smem:[#allocation46_spill]] %s3921_s3 }
  0x15   :  { %4573 = sst [smem:[#allocation47_spill]] %s3926_s8 }
  0x16   :  { %4574 = sst [smem:[#allocation48_spill]] %s3931_s14 }
  0x17   :  { %4575 = sst [smem:[#allocation49_spill]] %s3936_s19 }
  0x18   :  { %s3946_s30 = sld [smem:[%s4542_s0 + %s3834_s26]]  }
  0x19   :  { %s3951_s6 = sld [smem:[%s4542_s0 + %s3835_s1]]  }
  0x1a   :  { %s3956_s12 = sld [smem:[%s4542_s0 + %s3836_s7]]   ;;  %s3840_s7 = smov 18  }
  0x1b   :  { %s3961_s20 = sld [smem:[%s4542_s0 + %s3837_s15]]   ;;  %s3841_s15 = smov 19  }
  0x1c   :  { %s3966_s27 = sld [smem:[%s4542_s0 + %s3838_s22]]   ;;  %s3842_s22 = smov 20  }
  0x1d   :  { %s3971_s4 = sld [smem:[%s4542_s0 + %s3839_s28]]   ;;  %s3843_s28 = smov 21  }
  0x1e   :  { %s3976_s17 = sld [smem:[%s4542_s0 + %s3840_s7]]   ;;  %s3844_s7 = smov 22  }
  0x1f   :  { %4576 = sst [smem:[#allocation50_spill]] %s3951_s6 }
  0x20   :  { %4577 = sst [smem:[#allocation51_spill]] %s3956_s12 }
  0x21   :  { %s3981_s12 = sld [smem:[%s4542_s0 + %s3841_s15]]   ;;  %s3845_s15 = smov 23  }
  0x22   :  { %4578 = sst [smem:[#allocation52_spill]] %s3966_s27 }
  0x23   :  { %4579 = sst [smem:[#allocation53_spill]] %s3971_s4 }
  0x24   :  { %4580 = sst [smem:[#allocation54_spill]] %s3976_s17 }
  0x25   :  { %s3986_s13 = sld [smem:[%s4542_s0 + %s3842_s22]]   ;;  %s3846_s22 = smov 24  }
  0x26   :  { %s3991_s27 = sld [smem:[%s4542_s0 + %s3843_s28]]   ;;  %s3847_s28 = smov 25  }
  0x27   :  { %s3996_s19 = sld [smem:[%s4542_s0 + %s3844_s7]]   ;;  %s3848_s7 = smov 26  }
  0x28   :  { %s4001_s14 = sld [smem:[%s4542_s0 + %s3845_s15]]   ;;  %s3849_s15 = smov 27  }
  0x29   :  { %s4006_s25 = sld [smem:[%s4542_s0 + %s3846_s22]]   ;;  %s3850_s22 = smov 28  }
  0x2a   :  { %s4011_s3 = sld [smem:[%s4542_s0 + %s3847_s28]]   ;;  %s3851_s28 = smov 29  }
  0x2b   :  { %s4016_s8 = sld [smem:[%s4542_s0 + %s3848_s7]]   ;;  %s3852_s7 = smov 30  }
  0x2c   :  { %s4021_s21 = sld [smem:[%s4542_s0 + %s3849_s15]]   ;;  %s3853_s15 = smov 31  }
  0x2d   :  { %s4026_s29 = sld [smem:[%s4542_s0 + %s3850_s22]]   ;;  %s3854_s22 = smov 32  }
  0x2e   :  { %s4031_s9 = sld [smem:[%s4542_s0 + %s3851_s28]]   ;;  %s3855_s28 = smov 33  }
  0x2f   :  { %s4041_s5 = sld [smem:[%s4542_s0 + %s3853_s15]]  }
  0x30   :  { %4581 = sst [smem:[#allocation55_spill]] %s4011_s3 }
  0x31   :  { %4582 = sst [smem:[#allocation56_spill]] %s4016_s8 }
  0x32   :  { %s4036_s8 = sld [smem:[%s4542_s0 + %s3852_s7]]  }
  0x33   :  { %4583 = sst [smem:[#allocation57_spill]] %s4026_s29 }
  0x34   :  { %4584 = sst [smem:[#allocation58_spill]] %s4031_s9 }
  0x35   :  { %4586 = sst [smem:[#allocation60_spill]] %s4041_s5 }
  0x36   :  { %s4046_s29 = sld [smem:[%s4542_s0 + %s3854_s22]]  }
  0x37   :  { %s4051_s9 = sld [smem:[%s4542_s0 + %s3855_s28]]  }
  0x38   :  { %4585 = sst [smem:[#allocation59_spill]] %s4036_s8 }
  0x3d   :  { %4587 = sst [smem:[#allocation61_spill]] %s4051_s9 }
  0x3e   :  { %73 = vsyncpa [#allocation3], 0 }
  0x3f   :  { %74 = vsyncpa [#allocation6], 0 }
  0x40   :  { %75 = vsyncpa [#allocation9], 0 }
  0x41   :  { %76 = vsyncpa [#allocation12], 0 }
  0x42   :  { %77 = vsyncpa [#allocation15], 0 }
  0x43   :  { %78 = vsyncpa [#allocation18], 0 }
  0x44   :  { %79 = vsyncpa [#allocation21], 0 }
  0x45   :  { %80 = vsyncpa [#allocation24], 0 }
  0x46   :  { %81 = vsyncpa [#allocation27], 0 }
  0x47   :  { %82 = vsyncpa [#allocation4], 0 }
  0x48   :  { %84 = vsyncpa [#allocation4 + $0x1], 0  ;;  %s4053_s7 = smov 0   ;;  %s4055_s10 = smov 0  }
  0x49   :  { %s4057_s11 = smov 0   ;;  %s4059_s15 = smov 0  }
  0x4a LB: > { %s4588_s6 = sld [smem:[#allocation50_spill]]  ;;  %s4074_s0 = sadd.s32 4294967295, %s3821_s15   ;;  %s3821_s15 = sphi %s4059_s15, %s4627_s15   ;;  %s3817_s11 = sphi %s4057_s11, %s4629_s11   ;;  %s3813_s10 = sphi %s4055_s10, %s4631_s10   ;;  %s3809_s7 = sphi %s4053_s7, %s4630_s7  }
  0x4b   : > { %s4589_s4 = sld [smem:[#allocation53_spill]]  ;;  %s2762_s16 = sadd.s32 4294967294, %s3821_s15  }
  0x4c   : > { %s4590_s3 = sld [smem:[#allocation55_spill]]  ;;  %s4078_s18 = sadd.s32 1, %s3821_s15  }
  0x4d   : > { %s4591_s17 = sld [smem:[#allocation54_spill]]  ;;  %s789_s22 = sadd.s32 1, %s3817_s11 }
  0x4e   : > { %4592 = sst [smem:[#allocation62_spill]] %s3809_s7  ;;  %s786_s23 = ssub.s32 %s3821_s15, %s4078_s18 }
  0x4f   : > { %4593 = sst [smem:[#allocation63_spill]] %s3817_s11  ;;  %p799_p0 = scmp.ne.s32.totalorder %s3817_s11, %s3813_s10 }
  0x50   : > { %4594 = sst [smem:[#allocation64_spill]] %s3821_s15  ;;  %p787_p1 = scmp.eq.s32.totalorder %s786_s23, 0 }
  0x51   : > { %4595 = sst [smem:[#allocation65_spill]] %s4078_s18  ;;  %p800_p2 = scmp.eq.s32.totalorder %s4074_s0, 1 }
  0x52   : > { %p805_p3 = scmp.ne.s32.totalorder %s3813_s10, %s3809_s7  ;;  %p806_p4 = scmp.eq.s32.totalorder %s2762_s16, 1 }
  0x53   : > { %s4089_s26 = scalar_select %p787_p1, %s3817_s11, %s789_s22  }
  0x54   : > { %p4091_p5 = por %p800_p2, %p799_p0  ;;  %p4095_p6 = por %p806_p4, %p805_p3 }
  0x55   : > { %4596 = sst [smem:[#allocation66_spill]] %s4089_s26  ;;  %p2763_p7 = scmp.ge.s32.totalorder %s3821_s15, 1 }
  0x56   : > { %s4598_s1 = scalar_select %p4095_p6, 1, 0 }
  0x57   : > { %p839_p8 = scmp.lt.s32.totalorder %s3821_s15, 3  ;;  %p3063_p9 = scmp.eq.s32.totalorder %s4074_s0, 0 }
  0x58   : > { %4599 = sst [smem:[#allocation67_spill]] %s4598_s1  ;;  %s884_s16 = sshll.u32 %s3946_s30, 4  ;;  %s885_s16 = int_to_ptr.hbm [resolvable:$true] %s884_s16 }
  0x59   : > { %p4102_p10 = pnand %p2763_p7, %p839_p8  ;;  %s3856_s22 = smov [#allocation5]  }
  0x5a   : > { %s886_s23 = sshll.u32 %s3856_s22, 4  ;;  %s911_s26 = sshll.u32 %s3961_s20, 4  ;;  %s887_s23 = int_to_ptr.vmem [resolvable:$true] %s886_s23  ;;  %s4116_s26 = int_to_ptr.hbm [resolvable:$true] %s911_s26 }
  0x5b   : > { %p3010_p11 = pneg %p4102_p10  ;;  %s937_s18 = sshll.u32 %s4591_s17, 4  ;;  %s4134_s18 = int_to_ptr.hbm [resolvable:$true] %s937_s18 }
  0x5c   : > { %s3857_s1 = smov [#allocation8]   ;;  %s3243_s15 = sshra.s32 %s885_s16, 4  ;;  %s3244_s15 = int_to_ptr.hbm [resolvable:$true] %s3243_s15 }
  0x5d   : > { %p4112_p12 = pnand %p3063_p9, %p3010_p11  ;;  %s4119_s7 = sshll.u32 %s3857_s1, 4  ;;  %s914_s7 = int_to_ptr.vmem [resolvable:$true] %s4119_s7 }
  0x5e   : > { %s3245_s9 = scalar_lea.hbm %s3244_s15, 1  ;;  %s3250_s5 = scalar_lea.hbm %s3946_s30, 1 }
  0x5f   : > { %p3246_p13 = scmp.ne.s32.totalorder %s3244_s15, %s3245_s9  ;;  %p4123_p0 = pneg %p4112_p12 }
  0x60   : > { %p3251_p3 = scmp.lt.s32.totalorder %s3244_s15, %s3946_s30  ;;  %p3252_p4 = scmp.lt.s32.totalorder %s3250_s5, %s3245_s9 }
  0x61   : > { %p3248_p1 = pnand %p4123_p0, %p3246_p13 }
  0x62   : > { %p3253_p7 = por %p3252_p4, %p3251_p3 }
  0x63   : > { %p3249_p2 = pneg %p3248_p1 }
  0x65   : > { %p3254_p8 = pnand %p3253_p7, %p3249_p2 }
  0x67   : > { %3257 = shalt.err (!%p3254_p8)
}
  0x68   : > { %3016 = dma.hbm_to_vmem [thread:$0]  (!%p4112_p12), %s885_s16, 16, %s887_s23, [#allocation6]  }
  0x69   : > { %s3273_s1 = sshra.s32 %s4116_s26, 4  ;;  %s3280_s5 = scalar_lea.hbm %s3961_s20, 1  ;;  %s3274_s1 = int_to_ptr.hbm [resolvable:$true] %s3273_s1 }
  0x6a   : > { %s3275_s8 = scalar_lea.hbm %s3274_s1, 1  ;;  %p3281_p2 = scmp.lt.s32.totalorder %s3274_s1, %s3961_s20 }
  0x6b   : > { %p3276_p11 = scmp.ne.s32.totalorder %s3274_s1, %s3275_s8  ;;  %p3282_p3 = scmp.lt.s32.totalorder %s3280_s5, %s3275_s8 }
  0x6d   : > { %p3278_p13 = pnand %p3276_p11, %p4123_p0  ;;  %p3283_p4 = por %p3282_p3, %p3281_p2 }
  0x6f   : > { %p3279_p1 = pneg %p3278_p13 }
  0x71   : > { %p3284_p7 = pnand %p3283_p4, %p3279_p1 }
  0x73   : > { %3287 = shalt.err (!%p3284_p7)
}
  0x74   : > { %3022 = dma.hbm_to_vmem [thread:$0]  (!%p4112_p12), %s4116_s26, 16, %s914_s7, [#allocation9]  }
  0x75   : > { %s3858_s9 = smov [#allocation11]   ;;  %s963_s16 = sshll.u32 %s3986_s13, 4  ;;  %s964_s16 = int_to_ptr.hbm [resolvable:$true] %s963_s16 }
  0x76   : > { %s939_s15 = sshll.u32 %s3858_s9, 4  ;;  %s3303_s23 = sshra.s32 %s4134_s18, 4  ;;  %s940_s15 = int_to_ptr.vmem [resolvable:$true] %s939_s15  ;;  %s3304_s23 = int_to_ptr.hbm [resolvable:$true] %s3303_s23 }
  0x77   : > { %s3305_s1 = scalar_lea.hbm %s3304_s23, 16  ;;  %s3310_s8 = scalar_lea.hbm %s4591_s17, 16 }
  0x78   : > { %p3306_p8 = scmp.ne.s32.totalorder %s3304_s23, %s3305_s1  ;;  %p3311_p1 = scmp.lt.s32.totalorder %s3304_s23, %s4591_s17 }
  0x79   : > { %p3312_p2 = scmp.lt.s32.totalorder %s3310_s8, %s3305_s1 }
  0x7a   : > { %p3308_p11 = pnand %p3306_p8, %p4123_p0 }
  0x7b   : > { %p3313_p3 = por %p3312_p2, %p3311_p1 }
  0x7c   : > { %p3309_p13 = pneg %p3308_p11 }
  0x7e   : > { %p3314_p4 = pnand %p3313_p3, %p3309_p13 }
  0x80   : > { %3317 = shalt.err (!%p3314_p4)
}
  0x81   : > { %s3859_s5 = smov 64   ;;  %s3860_s7 = smov 4  }
  0x82   : > { %3028 = dma.hbm_to_vmem [thread:$0]  (!%p4112_p12), %s4134_s18, 256, %s940_s15, [#allocation12], %s3859_s5, %s3859_s5, %s3860_s7  }
  0x83   : > { %s3861_s26 = smov [#allocation14]   ;;  %s990_s23 = sshll.u32 %s3996_s19, 4  ;;  %s4157_s23 = int_to_ptr.hbm [resolvable:$true] %s990_s23 }
  0x84   : > { %s965_s9 = sshll.u32 %s3861_s26, 4  ;;  %s3333_s1 = sshra.s32 %s964_s16, 4  ;;  %s966_s9 = int_to_ptr.vmem [resolvable:$true] %s965_s9  ;;  %s3334_s1 = int_to_ptr.hbm [resolvable:$true] %s3333_s1 }
  0x85   : > { %s3335_s8 = scalar_lea.hbm %s3334_s1, 16  ;;  %s3340_s17 = scalar_lea.hbm %s3986_s13, 16 }
  0x86   : > { %p3336_p7 = scmp.ne.s32.totalorder %s3334_s1, %s3335_s8  ;;  %p3341_p13 = scmp.lt.s32.totalorder %s3334_s1, %s3986_s13 }
  0x87   : > { %p3342_p1 = scmp.lt.s32.totalorder %s3340_s17, %s3335_s8 }
  0x88   : > { %p3338_p8 = pnand %p3336_p7, %p4123_p0 }
  0x89   : > { %p3343_p2 = por %p3342_p1, %p3341_p13 }
  0x8a   : > { %p3339_p11 = pneg %p3338_p8 }
  0x8c   : > { %p3344_p3 = pnand %p3343_p2, %p3339_p11 }
  0x8e   : > { %3347 = shalt.err (!%p3344_p3)
}
  0x8f   : > { %3034 = dma.hbm_to_vmem [thread:$0]  (!%p4112_p12), %s964_s16, 256, %s966_s9, [#allocation15], %s3859_s5, %s3859_s5, %s3860_s7  }
  0x90   : > { %s1013_s18 = sshll.u32 %s4006_s25, 4  ;;  %s3862_s15 = smov [#allocation17]   ;;  %s4169_s18 = int_to_ptr.hbm [resolvable:$true] %s1013_s18 }
  0x91   : > { %s992_s26 = sshll.u32 %s3862_s15, 4  ;;  %s3363_s17 = sshra.s32 %s4157_s23, 4  ;;  %s993_s26 = int_to_ptr.vmem [resolvable:$true] %s992_s26  ;;  %s3364_s17 = int_to_ptr.hbm [resolvable:$true] %s3363_s17 }
  0x92   : > { %s3365_s1 = scalar_lea.hbm %s3364_s17, 1  ;;  %s3370_s8 = scalar_lea.hbm %s3996_s19, 1 }
  0x93   : > { %p3366_p4 = scmp.ne.s32.totalorder %s3364_s17, %s3365_s1  ;;  %p3371_p11 = scmp.lt.s32.totalorder %s3364_s17, %s3996_s19 }
  0x94   : > { %p3372_p13 = scmp.lt.s32.totalorder %s3370_s8, %s3365_s1 }
  0x95   : > { %p3368_p7 = pnand %p3366_p4, %p4123_p0 }
  0x96   : > { %p3373_p1 = por %p3372_p13, %p3371_p11 }
  0x97   : > { %p3369_p8 = pneg %p3368_p7 }
  0x99   : > { %p3374_p2 = pnand %p3373_p1, %p3369_p8 }
  0x9b   : > { %3377 = shalt.err (!%p3374_p2)
}
  0x9c   : > { %3040 = dma.hbm_to_vmem [thread:$0]  (!%p4112_p12), %s4157_s23, 16, %s993_s26, [#allocation18]  }
  0x9d   : > { %s3863_s16 = smov [#allocation20]   ;;  %s1043_s15 = sshll.u32 %s4021_s21, 4  ;;  %s4180_s15 = int_to_ptr.hbm [resolvable:$true] %s1043_s15 }
  0x9e   : > { %s1015_s9 = sshll.u32 %s3863_s16, 4  ;;  %s3393_s17 = sshra.s32 %s4169_s18, 4  ;;  %s1016_s9 = int_to_ptr.vmem [resolvable:$true] %s1015_s9  ;;  %s3394_s17 = int_to_ptr.hbm [resolvable:$true] %s3393_s17 }
  0x9f   : > { %s3395_s1 = scalar_lea.hbm %s3394_s17, 16  ;;  %s3400_s8 = scalar_lea.hbm %s4006_s25, 16 }
  0xa0   : > { %p3396_p3 = scmp.ne.s32.totalorder %s3394_s17, %s3395_s1  ;;  %p3401_p8 = scmp.lt.s32.totalorder %s3394_s17, %s4006_s25 }
  0xa1   : > { %p3402_p11 = scmp.lt.s32.totalorder %s3400_s8, %s3395_s1 }
  0xa2   : > { %p3398_p4 = pnand %p3396_p3, %p4123_p0 }
  0xa3   : > { %p3403_p13 = por %p3402_p11, %p3401_p8 }
  0xa4   : > { %p3399_p7 = pneg %p3398_p4 }
  0xa6   : > { %p3404_p1 = pnand %p3403_p13, %p3399_p7 }
  0xa8   : > { %3407 = shalt.err (!%p3404_p1)
}
  0xa9   : > { %3046 = dma.hbm_to_vmem [thread:$0]  (!%p4112_p12), %s4169_s18, 256, %s1016_s9, [#allocation21], %s3859_s5, %s3859_s5, %s3860_s7  }
  0xaa   : > { %s872_s23 = sshll.u32 %s3941_s24, 4  ;;  %s3864_s26 = smov [#allocation23]   ;;  %s4194_s23 = int_to_ptr.hbm [resolvable:$true] %s872_s23 }
  0xab   : > { %s1045_s16 = sshll.u32 %s3864_s26, 4  ;;  %s3423_s17 = sshra.s32 %s4180_s15, 4  ;;  %s1046_s16 = int_to_ptr.vmem [resolvable:$true] %s1045_s16  ;;  %s3424_s17 = int_to_ptr.hbm [resolvable:$true] %s3423_s17 }
  0xac   : > { %s3425_s1 = scalar_lea.hbm %s3424_s17, 1  ;;  %s3430_s8 = scalar_lea.hbm %s4021_s21, 1 }
  0xad   : > { %p3426_p2 = scmp.ne.s32.totalorder %s3424_s17, %s3425_s1  ;;  %p3431_p7 = scmp.lt.s32.totalorder %s3424_s17, %s4021_s21 }
  0xae   : > { %p3432_p8 = scmp.lt.s32.totalorder %s3430_s8, %s3425_s1 }
  0xaf   : > { %p3428_p3 = pnand %p3426_p2, %p4123_p0 }
  0xb0   : > { %p3433_p11 = por %p3432_p8, %p3431_p7 }
  0xb1   : > { %p3429_p4 = pneg %p3428_p3 }
  0xb3   : > { %p3434_p13 = pnand %p3433_p11, %p3429_p4 }
  0xb5   : > { %3437 = shalt.err (!%p3434_p13)
}
  0xb6   : > { %3052 = dma.hbm_to_vmem [thread:$0]  (!%p4112_p12), %s4180_s15, 16, %s1046_s16, [#allocation24]  }
  0xb7   : > { %s3865_s5 = smov [#allocation2]   ;;  %s896_s18 = sshll.u32 %s4588_s6, 4  ;;  %s4205_s18 = int_to_ptr.hbm [resolvable:$true] %s896_s18 }
  0xb8   : > { %s874_s7 = sshll.u32 %s3865_s5, 4  ;;  %s3453_s9 = sshra.s32 %s4194_s23, 4  ;;  %s875_s7 = int_to_ptr.vmem [resolvable:$true] %s874_s7  ;;  %s3454_s9 = int_to_ptr.hbm [resolvable:$true] %s3453_s9 }
  0xb9   : > { %s3455_s26 = scalar_lea.hbm %s3454_s9, 1  ;;  %s3460_s17 = scalar_lea.hbm %s3941_s24, 1 }
  0xba   : > { %p3456_p1 = scmp.ne.s32.totalorder %s3454_s9, %s3455_s26  ;;  %p3461_p4 = scmp.lt.s32.totalorder %s3454_s9, %s3941_s24 }
  0xbb   : > { %p3462_p7 = scmp.lt.s32.totalorder %s3460_s17, %s3455_s26 }
  0xbc   : > { %p3458_p2 = pnand %p3456_p1, %p4123_p0 }
  0xbd   : > { %p3463_p8 = por %p3462_p7, %p3461_p4 }
  0xbe   : > { %p3459_p3 = pneg %p3458_p2 }
  0xc0   : > { %p3464_p11 = pnand %p3463_p8, %p3459_p3 }
  0xc2   : > { %3467 = shalt.err (!%p3464_p11)
}
  0xc3   : > { %3013 = dma.hbm_to_vmem [thread:$0]  (!%p4112_p12), %s4194_s23, 16, %s875_s7, [#allocation3]  }
  0xc4   : > { %s926_s15 = sshll.u32 %s4589_s4, 4  ;;  %s3866_s16 = smov [#allocation7]   ;;  %s4216_s15 = int_to_ptr.hbm [resolvable:$true] %s926_s15 }
  0xc5   : > { %s898_s1 = sshll.u32 %s3866_s16, 4  ;;  %s3483_s8 = sshra.s32 %s4205_s18, 4  ;;  %s899_s1 = int_to_ptr.vmem [resolvable:$true] %s898_s1  ;;  %s3484_s8 = int_to_ptr.hbm [resolvable:$true] %s3483_s8 }
  0xc6   : > { %s3485_s5 = scalar_lea.hbm %s3484_s8, 1  ;;  %s3490_s9 = scalar_lea.hbm %s4588_s6, 1 }
  0xc7   : > { %p3486_p13 = scmp.ne.s32.totalorder %s3484_s8, %s3485_s5  ;;  %p3491_p3 = scmp.lt.s32.totalorder %s3484_s8, %s4588_s6 }
  0xc8   : > { %p3492_p4 = scmp.lt.s32.totalorder %s3490_s9, %s3485_s5 }
  0xc9   : > { %p3488_p1 = pnand %p3486_p13, %p4123_p0 }
  0xca   : > { %p3493_p7 = por %p3492_p4, %p3491_p3 }
  0xcb   : > { %p3489_p2 = pneg %p3488_p1 }
  0xcd   : > { %p3494_p8 = pnand %p3493_p7, %p3489_p2 }
  0xcf   : > { %3497 = shalt.err (!%p3494_p8)
}
  0xd0   : > { %3019 = dma.hbm_to_vmem [thread:$0]  (!%p4112_p12), %s4205_s18, 16, %s899_s1, [#allocation6]  }
  0xd1   : > { %s3867_s23 = smov [#allocation10]   ;;  %s952_s26 = sshll.u32 %s3981_s12, 4  ;;  %s4227_s26 = int_to_ptr.hbm [resolvable:$true] %s952_s26 }
  0xd2   : > { %s928_s7 = sshll.u32 %s3867_s23, 4  ;;  %s3513_s17 = sshra.s32 %s4216_s15, 4  ;;  %s929_s7 = int_to_ptr.vmem [resolvable:$true] %s928_s7  ;;  %s3514_s17 = int_to_ptr.hbm [resolvable:$true] %s3513_s17 }
  0xd3   : > { %s3515_s16 = scalar_lea.hbm %s3514_s17, 1  ;;  %s3520_s8 = scalar_lea.hbm %s4589_s4, 1 }
  0xd4   : > { %p3516_p11 = scmp.ne.s32.totalorder %s3514_s17, %s3515_s16  ;;  %p3521_p2 = scmp.lt.s32.totalorder %s3514_s17, %s4589_s4 }
  0xd5   : > { %p3522_p3 = scmp.lt.s32.totalorder %s3520_s8, %s3515_s16 }
  0xd6   : > { %p3518_p13 = pnand %p3516_p11, %p4123_p0 }
  0xd7   : > { %p3523_p4 = por %p3522_p3, %p3521_p2 }
  0xd8   : > { %p3519_p1 = pneg %p3518_p13 }
  0xda   : > { %p3524_p7 = pnand %p3523_p4, %p3519_p1 }
  0xdc   : > { %3527 = shalt.err (!%p3524_p7)
}
  0xdd   : > { %3025 = dma.hbm_to_vmem [thread:$0]  (!%p4112_p12), %s4216_s15, 16, %s929_s7, [#allocation9]  }
  0xde   : > { %s978_s18 = sshll.u32 %s3991_s27, 4  ;;  %s3868_s1 = smov [#allocation13]   ;;  %s4238_s18 = int_to_ptr.hbm [resolvable:$true] %s978_s18 }
  0xdf   : > { %s954_s5 = sshll.u32 %s3868_s1, 4  ;;  %s3543_s9 = sshra.s32 %s4227_s26, 4  ;;  %s955_s5 = int_to_ptr.vmem [resolvable:$true] %s954_s5  ;;  %s3544_s9 = int_to_ptr.hbm [resolvable:$true] %s3543_s9 }
  0xe0   : > { %s3545_s23 = scalar_lea.hbm %s3544_s9, 1  ;;  %s3550_s17 = scalar_lea.hbm %s3981_s12, 1 }
  0xe1   : > { %p3546_p8 = scmp.ne.s32.totalorder %s3544_s9, %s3545_s23  ;;  %p3551_p1 = scmp.lt.s32.totalorder %s3544_s9, %s3981_s12 }
  0xe2   : > { %p3552_p2 = scmp.lt.s32.totalorder %s3550_s17, %s3545_s23 }
  0xe3   : > { %p3548_p11 = pnand %p3546_p8, %p4123_p0 }
  0xe4   : > { %p3553_p3 = por %p3552_p2, %p3551_p1 }
  0xe5   : > { %p3549_p13 = pneg %p3548_p11 }
  0xe7   : > { %p3554_p4 = pnand %p3553_p3, %p3549_p13 }
  0xe9   : > { %3557 = shalt.err (!%p3554_p4)
}
  0xea   : > { %3031 = dma.hbm_to_vmem [thread:$0]  (!%p4112_p12), %s4227_s26, 16, %s955_s5, [#allocation12]  }
  0xeb   : > { %s3869_s15 = smov [#allocation16]   ;;  %s1002_s16 = sshll.u32 %s4001_s14, 4  ;;  %s4249_s16 = int_to_ptr.hbm [resolvable:$true] %s1002_s16 }
  0xec   : > { %s980_s7 = sshll.u32 %s3869_s15, 4  ;;  %s3573_s8 = sshra.s32 %s4238_s18, 4  ;;  %s981_s7 = int_to_ptr.vmem [resolvable:$true] %s980_s7  ;;  %s3574_s8 = int_to_ptr.hbm [resolvable:$true] %s3573_s8 }
  0xed   : > { %s3575_s1 = scalar_lea.hbm %s3574_s8, 1  ;;  %s3580_s9 = scalar_lea.hbm %s3991_s27, 1 }
  0xee   : > { %p3576_p7 = scmp.ne.s32.totalorder %s3574_s8, %s3575_s1  ;;  %p3581_p13 = scmp.lt.s32.totalorder %s3574_s8, %s3991_s27 }
  0xef   : > { %p3582_p1 = scmp.lt.s32.totalorder %s3580_s9, %s3575_s1 }
  0xf0   : > { %p3578_p8 = pnand %p3576_p7, %p4123_p0 }
  0xf1   : > { %p3583_p2 = por %p3582_p1, %p3581_p13 }
  0xf2   : > { %p3579_p11 = pneg %p3578_p8 }
  0xf4   : > { %p3584_p3 = pnand %p3583_p2, %p3579_p11 }
  0xf6   : > { %3587 = shalt.err (!%p3584_p3)
}
  0xf7   : > { %3037 = dma.hbm_to_vmem [thread:$0]  (!%p4112_p12), %s4238_s18, 16, %s981_s7, [#allocation15]  }
  0xf8   : > { %s1028_s26 = sshll.u32 %s4590_s3, 4  ;;  %s3870_s5 = smov [#allocation19]   ;;  %s4260_s26 = int_to_ptr.hbm [resolvable:$true] %s1028_s26 }
  0xf9   : > { %s1004_s23 = sshll.u32 %s3870_s5, 4  ;;  %s3603_s17 = sshra.s32 %s4249_s16, 4  ;;  %s1005_s23 = int_to_ptr.vmem [resolvable:$true] %s1004_s23  ;;  %s3604_s17 = int_to_ptr.hbm [resolvable:$true] %s3603_s17 }
  0xfa   : > { %s3605_s15 = scalar_lea.hbm %s3604_s17, 1  ;;  %s3610_s8 = scalar_lea.hbm %s4001_s14, 1 }
  0xfb   : > { %p3606_p4 = scmp.ne.s32.totalorder %s3604_s17, %s3605_s15  ;;  %p3611_p11 = scmp.lt.s32.totalorder %s3604_s17, %s4001_s14 }
  0xfc   : > { %p3612_p13 = scmp.lt.s32.totalorder %s3610_s8, %s3605_s15 }
  0xfd   : > { %p3608_p7 = pnand %p3606_p4, %p4123_p0 }
  0xfe   : > { %p3613_p1 = por %p3612_p13, %p3611_p11 }
  0xff   : > { %p3609_p8 = pneg %p3608_p7 }
 0x101   : > { %p3614_p2 = pnand %p3613_p1, %p3609_p8 }
 0x103   : > { %3617 = shalt.err (!%p3614_p2)
}
 0x104   : > { %s4603_s18 = sld [smem:[#allocation57_spill]]  ;;  %s3871_s7 = smov [#allocation22]  }
 0x105   : > { %3043 = dma.hbm_to_vmem [thread:$0]  (!%p4112_p12), %s4249_s16, 16, %s1005_s23, [#allocation18]  }
 0x106   : > { %s1030_s1 = sshll.u32 %s3871_s7, 4  ;;  %s3633_s5 = sshra.s32 %s4260_s26, 4  ;;  %s1031_s1 = int_to_ptr.vmem [resolvable:$true] %s1030_s1  ;;  %s3634_s5 = int_to_ptr.hbm [resolvable:$true] %s3633_s5 }
 0x107   : > { %s3635_s17 = scalar_lea.hbm %s3634_s5, 1  ;;  %s3640_s15 = scalar_lea.hbm %s4590_s3, 1 }
 0x108   : > { %p3636_p3 = scmp.ne.s32.totalorder %s3634_s5, %s3635_s17  ;;  %p3641_p8 = scmp.lt.s32.totalorder %s3634_s5, %s4590_s3 }
 0x109   : > { %p3642_p11 = scmp.lt.s32.totalorder %s3640_s15, %s3635_s17 }
 0x10a   : > { %s1055_s9 = sshll.u32 %s4603_s18, 4  ;;  %p3638_p4 = pnand %p3636_p3, %p4123_p0  ;;  %s4271_s9 = int_to_ptr.hbm [resolvable:$true] %s1055_s9 }
 0x10b   : > { %p3643_p13 = por %p3642_p11, %p3641_p8 }
 0x10c   : > { %p3639_p7 = pneg %p3638_p4 }
 0x10e   : > { %p3644_p1 = pnand %p3643_p13, %p3639_p7 }
 0x110   : > { %3647 = shalt.err (!%p3644_p1)
}
 0x111   : > { %s4604_s16 = sld [smem:[#allocation58_spill]]  ;;  %s3872_s8 = smov [#allocation25]  }
 0x112   : > { %3049 = dma.hbm_to_vmem [thread:$0]  (!%p4112_p12), %s4260_s26, 16, %s1031_s1, [#allocation21]  }
 0x113   : > { %s1057_s7 = sshll.u32 %s3872_s8, 4  ;;  %s3663_s5 = sshra.s32 %s4271_s9, 4  ;;  %s1058_s7 = int_to_ptr.vmem [resolvable:$true] %s1057_s7  ;;  %s3664_s5 = int_to_ptr.hbm [resolvable:$true] %s3663_s5 }
 0x114   : > { %s3665_s17 = scalar_lea.hbm %s3664_s5, 1  ;;  %s3670_s15 = scalar_lea.hbm %s4603_s18, 1 }
 0x115   : > { %p3666_p2 = scmp.ne.s32.totalorder %s3664_s5, %s3665_s17  ;;  %p3671_p7 = scmp.lt.s32.totalorder %s3664_s5, %s4603_s18 }
 0x116   : > { %p3672_p8 = scmp.lt.s32.totalorder %s3670_s15, %s3665_s17 }
 0x117   : > { %s1067_s23 = sshll.u32 %s4604_s16, 4  ;;  %p3668_p3 = pnand %p3666_p2, %p4123_p0  ;;  %s4282_s23 = int_to_ptr.hbm [resolvable:$true] %s1067_s23 }
 0x118   : > { %p3673_p11 = por %p3672_p8, %p3671_p7 }
 0x119   : > { %p3669_p4 = pneg %p3668_p3 }
 0x11b   : > { %p3674_p13 = pnand %p3673_p11, %p3669_p4 }
 0x11d   : > { %3677 = shalt.err (!%p3674_p13)
}
 0x11e   : > { %3055 = dma.hbm_to_vmem [thread:$0]  (!%p4112_p12), %s4271_s9, 16, %s1058_s7, [#allocation24]  }
 0x11f   : > { %s3873_s26 = smov [#allocation26]   ;;  %s3693_s8 = sshra.s32 %s4282_s23, 4  ;;  %s3694_s8 = int_to_ptr.hbm [resolvable:$true] %s3693_s8 }
 0x120   : > { %s1069_s1 = sshll.u32 %s3873_s26, 4  ;;  %s3695_s3 = scalar_lea.hbm %s3694_s8, 1  ;;  %s1070_s1 = int_to_ptr.vmem [resolvable:$true] %s1069_s1 }
 0x121   : > { %p3696_p1 = scmp.ne.s32.totalorder %s3694_s8, %s3695_s3  ;;  %s3700_s5 = scalar_lea.hbm %s4604_s16, 1 }
 0x122   : > { %p3701_p4 = scmp.lt.s32.totalorder %s3694_s8, %s4604_s16  ;;  %p3702_p7 = scmp.lt.s32.totalorder %s3700_s5, %s3695_s3 }
 0x123   : > { %p3698_p2 = pnand %p3696_p1, %p4123_p0 }
 0x124   : > { %p3703_p8 = por %p3702_p7, %p3701_p4 }
 0x125   : > { %p3699_p3 = pneg %p3698_p2 }
 0x127   : > { %p3704_p11 = pnand %p3703_p8, %p3699_p3 }
 0x129   : > { %3707 = shalt.err (!%p3704_p11)
}
 0x12a   : > { %3058 = dma.hbm_to_vmem [thread:$0]  (!%p4112_p12), %s4282_s23, 16, %s1070_s1, [#allocation27]  }
 0x12b   : > { %1118 = sbr.rel (%p4102_p10) target bundleno = 4560 (0x11d0), region = 148 }
 0x130   : > { %3768 = dma.done.wait (%p3063_p9), [#allocation3], 16  }
 0x131   : > { %3770 = vsyncadd (%p3063_p9), [#allocation3], 4294967280 }
 0x132   : > { %3772 = dma.done.wait (%p3063_p9), [#allocation6], 32  }
 0x133   : > { %3774 = vsyncadd (%p3063_p9), [#allocation6], 4294967264 }
 0x134   : > { %3776 = dma.done.wait (%p3063_p9), [#allocation9], 32  }
 0x135   : > { %3778 = vsyncadd (%p3063_p9), [#allocation9], 4294967264 }
 0x136   : > { %3780 = dma.done.wait (%p3063_p9), [#allocation12], 272  }
 0x137   : > { %3782 = vsyncadd (%p3063_p9), [#allocation12], 4294967024 }
 0x138   : > { %3784 = dma.done.wait (%p3063_p9), [#allocation15], 272  }
 0x139   : > { %3786 = vsyncadd (%p3063_p9), [#allocation15], 4294967024 }
 0x13a   : > { %3788 = dma.done.wait (%p3063_p9), [#allocation18], 32  }
 0x13b   : > { %3790 = vsyncadd (%p3063_p9), [#allocation18], 4294967264 }
 0x13c   : > { %3792 = dma.done.wait (%p3063_p9), [#allocation21], 272  }
 0x13d   : > { %3794 = vsyncadd (%p3063_p9), [#allocation21], 4294967024 }
 0x13e   : > { %3796 = dma.done.wait (%p3063_p9), [#allocation24], 32  }
 0x13f   : > { %3798 = vsyncadd (%p3063_p9), [#allocation24], 4294967264 }
 0x140   : > { %3800 = dma.done.wait (%p3063_p9), [#allocation27], 16  }
 0x141   : > { %3802 = vsyncadd (%p3063_p9), [#allocation27], 4294967280  ;;  %s4605_s3 = sld [smem:[#allocation39_spill]]  ;;  %p1295_p10 = scmp.lt.s32.totalorder %s4074_s0, 1  ;;  %vm1347_vm0 = vcmask 261120   ;;  %vm1445_vm1 = vcmask 64512  }
 0x142   : > { %s4606_s11 = sld [smem:[#allocation40_spill]]  ;;  %s3874_s5 = smov 120   ;;  %vm1480_vm2 = vcmask 1043456   ;;  %vm1957_vm7 = vcmask 130048   ;;  %vm2348_vm11 = vcmask 523264  }
 0x143   : > { %s4607_s2 = sld [smem:[#allocation45_spill]] }
 0x144   : > { %s4608_s22 = sld [smem:[#allocation43_spill]] }
 0x145   : > { %s4609_s9 = sld [smem:[#allocation47_spill]] }
 0x146   : > { %s1296_s23 = scalar_select %p1295_p10, %s4074_s0, 1 }
 0x147   : > { %s4610_s26 = sld [smem:[#allocation46_spill]] }
 0x148   : > { %s4340_s7 = sshll.u32 %s1296_s23, 3  ;;  %s4611_s1 = sld [smem:[#allocation44_spill]] }
 0x149   : > { %s1298_s17 = scalar_lea.vmem %s4605_s3, %s4340_s7  ;;  %s1302_s15 = scalar_lea.vmem %s4606_s11, %s4340_s7  ;;  %v2929_v0 = vld [vmem:[%s4607_s2 + $0x8] sm:$0xff]  ;;  %v2928_v5 = vld [vmem:[%s4607_s2] sm:$0xff] }
 0x14a   : > { %v4347_v1 = vld [vmem:[%s1298_s17] sm:$0xff]  ;;  %v2927_v3 = vld [vmem:[%s4608_s22 + $0x8] sm:$0xff]  ;;  %1390 = vmatpush.bf16.msra.mxu1 %v2929_v0  ;;  %s4612_s8 = sld [smem:[#allocation48_spill]]  ;;  %s3875_s3 = smov 104  }
 0x14b   : > { %v4349_v2 = vld [vmem:[%s1302_s15] sm:$0xff]  ;;  %v2931_v4 = vld [vmem:[%s4609_s9 + $0x8] sm:$0xff]  ;;  %1357 = vmatpush.bf16.msra.mxu0 %v2927_v3  ;;  %v1326_v10 = vpack.c.bf16 %v4347_v1, %v4347_v1  ;;  %s4613_s11 = sld [smem:[#allocation49_spill]]  ;;  %s3876_s17 = smov 112  }
 0x14c   : > { %v1324_v6 = vadd.f32 %v4349_v2, %v4347_v1  ;;  %v2926_v7 = vld [vmem:[%s4608_s22] sm:$0xff]  ;;  %1426 = vmatpush.bf16.msra.mxu2 %v2931_v4  ;;  %s4615_s15 = sld [smem:[#allocation52_spill]] }
 0x14d   : > { %v2930_v8 = vld [vmem:[%s4609_s9] sm:$0xff] }
 0x14e   : > { %v1325_v9 = vpack.c.bf16 %v1324_v6, %v1324_v6  ;;  %1391 = vmatpush.bf16.msra.mxu1 %v2928_v5  ;;  %v3183_v11 = vld [vmem:[%s4610_s26] ss:$0 sm:$0xff] }
 0x14f   : > { %1358 = vmatpush.bf16.msra.mxu0 %v2926_v7  ;;  %v3184_v12 = vld [vmem:[%s4611_s1] ss:$0 sm:$0xff]  ;;  %s4617_s1 = sld [smem:[#allocation41_spill]] }
 0x150   : > { %1427 = vmatpush.bf16.msra.mxu2 %v2930_v8  ;;  %v3185_v21 = vld [vmem:[%s4612_s8] ss:$0 sm:$0xff]  ;;  %s4618_s8 = sld [smem:[#allocation51_spill]] }
 0x151   : > { %2823 = vmatmul.msk.bf16.vlgmr.msra.gmra.mxu1 %vm1347_vm0, %v1325_v9  ;;  %s4614_s23 = smov %s4613_s11  ;;  %v1437_v50 = vld [vmem:[%s4613_s11 + $0x4] sm:$0xf] }
 0x152   : > { %2814 = vmatmul.msk.bf16.vlgmr.msra.gmra.mxu0 %vm1347_vm0, %v1325_v9  ;;  %v1588_v51 = vsel %vm1480_vm2, %v1437_v50, 0  ;;  %v1436_v52 = vld [vmem:[%s4614_s23] sm:$0xf]  ;;  %v1439_v50 = vld [vmem:[%s4614_s23 + $0xc] sm:$0xf]  ;;  %s4616_s26 = smov %s4615_s15 }
 0x153   : > { %2832 = vmatmul.msk.bf16.vlgmr.msra.gmra.mxu2 %vm1347_vm0, %v1326_v10  ;;  %v1502_v53 = vsel %vm1480_vm2, %v1436_v52, 0 }
 0x154   : > { %1511 = vmatpush.bf16.msrb.mxu1 %v1502_v53 }
 0x155   : > { %s1307_s11 = scalar_lea.vmem %s4617_s1, %s4340_s7 }
 0x1ce   : > { %v1393_v13 = vpop.f32.mrf.mxu1 }
 0x1cf   : > { %v1394_v14 = vadd.f32 %v3183_v11, %v1393_v13  ;;  %v1360_v15 = vpop.f32.mrf.mxu0 }
 0x1d0   : > { %v1361_v16 = vadd.f32 %v3184_v12, %v1360_v15 }
 0x1d1   : > { %v1434_v17 = vpack.c.bf16 %v1394_v14, %v1394_v14 }
 0x1d2   : > { %v1433_v20 = vpack.c.bf16 %v1361_v16, %v1361_v16 }
 0x1d3   : > { %v1524_v18 = vunpack.c.l.b16 %v1434_v17  ;;  %v1450_v19 = vsel %vm1445_vm1, %v1434_v17, 0 }
 0x1d4   : > { %1459 = vmatpush.bf16.xpose.msra.mxu3 %v1450_v19  ;;  %v1519_v25 = vunpack.c.l.b16 %v1433_v20 }
 0x1d5   : > { %v1525_v22 = vpack.c.b16 %v1524_v18, %v1524_v18 }
 0x1d6   : > { %v1429_v23 = vpop.f32.mrf.mxu2  ;;  %v1395_v24 = vpop.f32.mrf.mxu1  ;;  %v4368_v28 = vpack.c.b16 %v1519_v25, %v1519_v25 }
 0x1d7   : > { %1526 = vrot.lane.b32.xlu0 %v1525_v22, %s3874_s5  ;;  %v1430_v26 = vadd.f32 %v3185_v21, %v1429_v23  ;;  %v1362_v27 = vpop.f32.mrf.mxu0 }
 0x1d9   : > { %v1435_v29 = vpack.c.bf16 %v1430_v26, %v1430_v26 }
 0x1db   : > { %2833 = vmatmul.msk.bf16.vlgmr.msra.gmra.mxu3 %vm1445_vm1, %v1433_v20  ;;  %v1560_v31 = vunpack.c.l.b16 %v1435_v29  ;;  %v1482_v39 = vsel %vm1480_vm2, %v1435_v29, 0 }
 0x1dc   : > { %1491 = vmatpush.bf16.msrb.mxu0 %v1482_v39 }
 0x1dd   : > { %v4373_v32 = vpack.c.b16 %v1560_v31, %v1560_v31 }
 0x1de   : > { %v1431_v30 = vpop.f32.mrf.mxu2 }
 0x1df   : > { %1521 = vrot.lane.b32.xlu0 %v4368_v28, %s3874_s5 }
 0x1e0   : > { %1597 = vmatpush.bf16.msra.mxu0 %v1588_v51  ;;  %v1742_v51 = vsel %vm1480_vm2, %v1439_v50, 0 }
 0x1e7   : > { %1562 = vrot.lane.b32.xlu0 %v4373_v32, %s3874_s5 }
 0x1ef   : > { %1683 = vrot.lane.b32.xlu0 %v1525_v22, %s3875_s3 }
 0x1f7   : > { %1681 = vrot.lane.b32.xlu0 %v4368_v28, %s3875_s3 }
 0x249   : > { %v1527_v33 = vpop.permute.xlu0 %1526 }
 0x24a   : > { %v1532_v34 = vsel %vm1445_vm1, %v1527_v33, 0 }
 0x24b   : > { %1541 = vmatpush.bf16.xpose.msrb.mxu2 %v1532_v34 }
 0x251   : > { %v1522_v35 = vpop.permute.xlu0 %1521 }
 0x252   : > { %2836 = vmatmul.msk.bf16.vlgmr.msrb.gmra.mxu2 %vm1445_vm1, %v1522_v35 }
 0x259   : > { %v1563_v48 = vpop.permute.xlu0 %1562 }
 0x25a   : > { %v1568_v49 = vsel %vm1480_vm2, %v1563_v48, 0  ;;  %v1438_v48 = vld [vmem:[%s4614_s23 + $0x8] sm:$0xf] }
 0x25b   : > { %1577 = vmatpush.bf16.msrb.mxu3 %v1568_v49  ;;  %v1665_v49 = vsel %vm1480_vm2, %v1438_v48, 0 }
 0x25e   : > { %v1461_v36 = vpop.f32.mrf.mxu3 }
 0x25f   : > { %v1465_v37 = vsel %vm1445_vm1, %v1461_v36, -inf  ;;  %1674 = vmatpush.bf16.msra.mxu3 %v1665_v49 }
 0x260   : > { %1466 = vmax.xlane.f32.xlu1 %v1465_v37 }
 0x261   : > { %v1684_v62 = vpop.permute.xlu0 %1683 }
 0x262   : > { %v1689_v0 = vsel %vm1445_vm1, %v1684_v62, 0 }
 0x266   : > { %v1463_v38 = vpop.f32.mrf.mxu3 }
 0x269   : > { %v1682_v18 = vpop.permute.xlu0 %1681 }
 0x2d3   : > { %v1467_v40 = vpop.xlane.xlu1 %1466 }
 0x2d4   : > { %v1468_v41 = vsub.f32 %v1461_v36, %v1467_v40 }
 0x2d5   : > { %v1543_v42 = vpop.f32.mrf.mxu2 }
 0x2d6   : > { %v1469_v43 = vmul.f32 1.442695, %v1468_v41  ;;  %v1547_v44 = vsel %vm1445_vm1, %v1543_v42, -inf }
 0x2d7   : > { %1548 = vmax.xlane.f32.xlu1 %v1547_v44 }
 0x2d8   : > { %3201 = vpow2.f32 %v1469_v43 }
 0x2dd   : > { %v1545_v45 = vpop.f32.mrf.mxu2 }
 0x2de   : > { %v3202_v46 = vpop.eup %3201 }
 0x2df   : > { %v1471_v47 = vsel %vm1445_vm1, %v3202_v46, 0.0 }
 0x2e0   : > { %1472 = vadd.xlane.f32.xlu2 %v1471_v47 }
 0x2f0   : > { %1606 = vrot.lane.b32.xlu1 %v1525_v22, %s3876_s17  ;;  %v3186_v22 = vld [vmem:[#allocation2] ss:$0 sm:$0xff] }
 0x2f1   : > { %v1444_v23 = vadd.f32 %v3186_v22, %v4347_v1  ;;  %v2933_v22 = vld [vmem:[%s4618_s8 + $0x8] sm:$0xff] }
 0x34a   : > { %v1549_v54 = vpop.xlane.xlu1 %1548 }
 0x34b   : > { %v1550_v55 = vsub.f32 %v1543_v42, %v1549_v54 }
 0x34d   : > { %v1551_v56 = vmul.f32 1.442695, %v1550_v55 }
 0x34f   : > { %3203 = vpow2.f32 %v1551_v56 }
 0x353   : > { %v1473_v57 = vpop.xlane.xlu2 %1472 }
 0x354   : > { %3205 = vrcp.f32 %v1473_v57 }
 0x355   : > { %v3204_v58 = vpop.eup %3203 }
 0x356   : > { %v1553_v59 = vsel %vm1445_vm1, %v3204_v58, 0.0 }
 0x357   : > { %1554 = vadd.xlane.f32.xlu2 %v1553_v59 }
 0x35a   : > { %v3206_v60 = vpop.eup %3205 }
 0x35b   : > { %v1475_v61 = vmul.f32 %v3206_v60, %v3202_v46 }
 0x35d   : > { %v1476_v63 = vpack.c.bf16 %v1475_v61, %v1475_v61 }
 0x35f   : > { %2834 = vmatmul.msk.bf16.vlgmr.msrb.gmra.mxu0 %vm1445_vm1, %v1476_v63 }
 0x360   : > { %1698 = vmatpush.bf16.xpose.msrb.mxu0 %v1689_v0 }
 0x362   : > { %v1607_v3 = vpop.permute.xlu1 %1606 }
 0x363   : > { %v1612_v4 = vsel %vm1445_vm1, %v1607_v3, 0 }
 0x364   : > { %1621 = vmatpush.bf16.xpose.msra.mxu1 %v1612_v4 }
 0x36f   : > { %1604 = vrot.lane.b32.xlu2 %v4368_v28, %s3876_s17 }
 0x3ca   : > { %v1555_v5 = vpop.xlane.xlu2 %1554 }
 0x3cb   : > { %3207 = vrcp.f32 %v1555_v5 }
 0x3d1   : > { %v3208_v6 = vpop.eup %3207 }
 0x3d2   : > { %v1557_v7 = vmul.f32 %v3208_v6, %v3204_v58  ;;  %v1605_v12 = vpop.permute.xlu2 %1604 }
 0x3d4   : > { %v1558_v8 = vpack.c.bf16 %v1557_v7, %v1557_v7  ;;  %v3877_v7 = vmov 32.0  }
 0x3d6   : > { %2837 = vmatmul.msk.bf16.vlgmr.msrb.gmra.mxu3 %vm1445_vm1, %v1558_v8 }
 0x3d7   : > { %1828 = vmatpush.bf16.msrb.mxu3 %v2933_v22 }
 0x3dc   : > { %v1493_v9 = vpop.f32.mrf.mxu0 }
 0x3dd   : > { %v1497_v10 = vpack.c.bf16 %v1493_v9, %v1493_v9 }
 0x3df   : > { %2835 = vmatmul.msk.bf16.vlgmr.msrb.gmra.mxu1 %vm1445_vm1, %v1497_v10 }
 0x3e4   : > { %v1495_v11 = vpop.f32.mrf.mxu0 }
 0x3ef   : > { %2839 = vmatmul.msk.bf16.vlgmr.msra.gmra.mxu1 %vm1445_vm1, %v1605_v12 }
 0x459   : > { %v1579_v13 = vpop.f32.mrf.mxu3 }
 0x45a   : > { %v1583_v14 = vpack.c.bf16 %v1579_v13, %v1579_v13 }
 0x45c   : > { %v1513_v15 = vpop.f32.mrf.mxu1  ;;  %2838 = vmatmul.msk.bf16.vlgmr.msra.gmra.mxu0 %vm1445_vm1, %v1583_v14 }
 0x45d   : > { %v1517_v24 = vadd.f32 %v1513_v15, %v1444_v23  ;;  %v2932_v23 = vld [vmem:[%s4618_s8] sm:$0xff]  ;;  %s3743_s8 = scalar_lea.hbm %s4046_s29, 16 }
 0x45e   : > { %1829 = vmatpush.bf16.msrb.mxu3 %v2932_v23 }
 0x461   : > { %v1581_v16 = vpop.f32.mrf.mxu3 }
 0x464   : > { %v1515_v17 = vpop.f32.mrf.mxu1 }
 0x46c   : > { %v1623_v19 = vpop.f32.mrf.mxu1  ;;  %2842 = vmatmul.msk.bf16.vlgmr.msrb.gmra.mxu0 %vm1445_vm1, %v1682_v18 }
 0x46d   : > { %v1627_v20 = vsel %vm1445_vm1, %v1623_v19, -inf }
 0x46e   : > { %1628 = vmax.xlane.f32.xlu0 %v1627_v20  ;;  %v2934_v20 = vld [vmem:[%s4616_s26] sm:$0xff] }
 0x474   : > { %v1625_v21 = vpop.f32.mrf.mxu1 }
 0x475   : > { %v2924_v21 = vld [vmem:[%s1307_s11] sm:$0xff] }
 0x4d9   : > { %v1599_v25 = vpop.f32.mrf.mxu0 }
 0x4da   : > { %v1603_v26 = vadd.f32 %v1599_v25, %v1517_v24 }
 0x4e1   : > { %v1629_v27 = vpop.xlane.xlu0 %1628  ;;  %v1601_v28 = vpop.f32.mrf.mxu0 }
 0x4e2   : > { %v1630_v29 = vsub.f32 %v1623_v19, %v1629_v27  ;;  %v2935_v19 = vld [vmem:[%s4615_s15 + $0x8] sm:$0xff]  ;;  %s4619_s15 = sld [smem:[#allocation42_spill]] }
 0x4e3   : > { %1869 = vmatpush.bf16.msra.mxu0 %v2935_v19 }
 0x4e4   : > { %v1631_v30 = vmul.f32 1.442695, %v1630_v29 }
 0x4e6   : > { %3209 = vpow2.f32 %v1631_v30 }
 0x4e7   : > { %1870 = vmatpush.bf16.msra.mxu0 %v2934_v20 }
 0x4e8   : > { %s1312_s1 = scalar_lea.vmem %s4619_s15, %s4340_s7  ;;  %s2919_s15 = sshll.u32 %s4074_s0, 3 }
 0x4e9   : > { %v1700_v31 = vpop.f32.mrf.mxu0 }
 0x4ea   : > { %v1704_v33 = vsel %vm1445_vm1, %v1700_v31, -inf  ;;  %2866 = vmatmul.msk.bf16.vlgmr.msra.gmra.mxu0 %vm1347_vm0, %v2924_v21 }
 0x4eb   : > { %1705 = vmax.xlane.f32.xlu2 %v1704_v33 }
 0x4ec   : > { %v3210_v34 = vpop.eup %3209 }
 0x4ed   : > { %v1633_v35 = vsel %vm1445_vm1, %v3210_v34, 0.0 }
 0x4ee   : > { %1634 = vadd.xlane.f32.xlu1 %v1633_v35 }
 0x4f1   : > { %v1702_v36 = vpop.f32.mrf.mxu0 }
 0x4f2   : > { %v3188_v36 = vld [vmem:[#allocation7] ss:$0 sm:$0xff] }
 0x503   : > { %1639 = vrot.lane.b32.xlu2 %v4373_v32, %s3876_s17 }
 0x507   : > { %1716 = vrot.lane.b32.xlu1 %v4373_v32, %s3875_s3 }
 0x55e   : > { %v1706_v1 = vpop.xlane.xlu2 %1705 }
 0x55f   : > { %v1707_v37 = vsub.f32 %v1700_v31, %v1706_v1 }
 0x561   : > { %v1708_v38 = vmul.f32 1.442695, %v1707_v37  ;;  %v1635_v39 = vpop.xlane.xlu1 %1634 }
 0x562   : > { %3211 = vrcp.f32 %v1635_v39 }
 0x563   : > { %3213 = vpow2.f32 %v1708_v38 }
 0x566   : > { %v1640_v40 = vpop.permute.xlu2 %1639 }
 0x567   : > { %v1645_v41 = vsel %vm1480_vm2, %v1640_v40, 0 }
 0x568   : > { %v3212_v42 = vpop.eup %3211  ;;  %1654 = vmatpush.bf16.msra.mxu2 %v1645_v41  ;;  %v3189_v41 = vld [vmem:[#allocation10] ss:$0 sm:$0xff] }
 0x569   : > { %v3214_v43 = vpop.eup %3213  ;;  %v1637_v44 = vmul.f32 %v3212_v42, %v3210_v34  ;;  %v3187_v34 = vld [vmem:[#allocation5] ss:$0 sm:$0xff]  ;;  %v1872_v42 = vpop.f32.mrf.mxu0 }
 0x56a   : > { %v1710_v45 = vsel %vm1445_vm1, %v3214_v43, 0.0 }
 0x56b   : > { %v1638_v46 = vpack.c.bf16 %v1637_v44, %v1637_v44  ;;  %1711 = vadd.xlane.f32.xlu0 %v1710_v45 }
 0x56c   : > { %1751 = vmatpush.bf16.msrb.mxu2 %v1742_v51  ;;  %v2936_v51 = vld [vmem:[#allocation11] sm:$0xff] }
 0x56d   : > { %2840 = vmatmul.msk.bf16.vlgmr.msra.gmra.mxu2 %vm1445_vm1, %v1638_v46 }
 0x571   : > { %v1874_v45 = vpop.f32.mrf.mxu0 }
 0x572   : > { %v1875_v46 = vadd.f32 %v3189_v41, %v1874_v45 }
 0x579   : > { %v1717_v32 = vpop.permute.xlu1 %1716 }
 0x57a   : > { %v1722_v47 = vsel %vm1480_vm2, %v1717_v32, 0 }
 0x57b   : > { %1731 = vmatpush.bf16.msrb.mxu1 %v1722_v47  ;;  %v1921_v47 = vpack.c.bf16 %v1875_v46, %v1875_v46 }
 0x57d   : > { %v1936_v48 = vunpack.c.l.b16 %v1921_v47 }
 0x5de   : > { %v1712_v52 = vpop.xlane.xlu0 %1711 }
 0x5df   : > { %3215 = vrcp.f32 %v1712_v52  ;;  %v3190_v52 = vld [vmem:[#allocation8] ss:$0 sm:$0xff] }
 0x5e0   : > { %3217 = vrcp.f32 %v3877_v7 }
 0x5e5   : > { %v3216_v53 = vpop.eup %3215 }
 0x5e6   : > { %v1714_v54 = vmul.f32 %v3216_v53, %v3214_v43  ;;  %v3218_v8 = vpop.eup %3217  ;;  %v1873_v43 = vadd.f32 %v3189_v41, %v1872_v42 }
 0x5e7   : > { %v1762_v9 = vmul.f32 32.0, %v3218_v8  ;;  %vm1766_vm3 = vweird.f32 %v3218_v8 }
 0x5e8   : > { %v1715_v55 = vpack.c.bf16 %v1714_v54, %v1714_v54  ;;  %v1920_v44 = vpack.c.bf16 %v1873_v43, %v1873_v43 }
 0x5e9   : > { %v1763_v10 = vsub.f32 1.0, %v1762_v9 }
 0x5ea   : > { %2843 = vmatmul.msk.bf16.vlgmr.msrb.gmra.mxu1 %vm1445_vm1, %v1715_v55  ;;  %v1935_v32 = vunpack.c.l.b16 %v1920_v44 }
 0x5eb   : > { %v1764_v11 = vmul.f32 %v3218_v8, %v1763_v10 }
 0x5ec   : > { %v4440_v49 = vpack.c.b16 %v1936_v48, %v1935_v32 }
 0x5ed   : > { %v1765_v12 = vadd.f32 %v3218_v8, %v1764_v11 }
 0x5ee   : > { %v1942_v50 = vsel %vm1445_vm1, %v4440_v49, 0  ;;  %2018 = vrot.lane.b32.xlu2 %v4440_v49, %s3874_s5 }
 0x5ef   : > { %v4423_v13 = vsel %vm1766_vm3, %v3218_v8, %v1765_v12  ;;  %1951 = vmatpush.bf16.xpose.msra.mxu2 %v1942_v50 }
 0x5f0   : > { %v1656_v56 = vpop.f32.mrf.mxu2 }
 0x5f1   : > { %v1660_v57 = vpack.c.bf16 %v1656_v56, %v1656_v56 }
 0x5f3   : > { %2841 = vmatmul.msk.bf16.vlgmr.msra.gmra.mxu3 %vm1445_vm1, %v1660_v57 }
 0x5f8   : > { %v1658_v58 = vpop.f32.mrf.mxu2 }
 0x667   : > { %v1733_v59 = vpop.f32.mrf.mxu1 }
 0x668   : > { %v1737_v60 = vpack.c.bf16 %v1733_v59, %v1733_v59  ;;  %v2925_v59 = vld [vmem:[%s1312_s1] sm:$0xff]  ;;  %s2447_s1 = scalar_lea.hbm %s4046_s29, %s2919_s15 }
 0x669   : > { %s2451_s4 = sshll.u32 %s2447_s1, 4  ;;  %s2452_s4 = int_to_ptr.hbm [resolvable:$true] %s2451_s4 }
 0x66a   : > { %2844 = vmatmul.msk.bf16.vlgmr.msrb.gmra.mxu2 %vm1445_vm1, %v1737_v60  ;;  %v2019_v60 = vpop.permute.xlu2 %2018 }
 0x66f   : > { %v1735_v61 = vpop.f32.mrf.mxu1 }
 0x670   : > { %v2024_v61 = vsel %vm1445_vm1, %v2019_v60, 0 }
 0x676   : > { %v1676_v62 = vpop.f32.mrf.mxu3 }
 0x677   : > { %v1680_v63 = vadd.f32 %v1676_v62, %v1603_v26 }
 0x67e   : > { %v1678_v0 = vpop.f32.mrf.mxu3 }
 0x6ed   : > { %v1753_v3 = vpop.f32.mrf.mxu2 }
 0x6ee   : > { %v1757_v4 = vadd.f32 %v1753_v3, %v1680_v63 }
 0x6f0   : > { %v1758_v5 = vsel %vm1347_vm0, %v1757_v4, 0.0 }
 0x6f1   : > { %1759 = vadd.xlane.f32.xlu0 %v1758_v5 }
 0x6f5   : > { %v1755_v6 = vpop.f32.mrf.mxu2 }
 0x764   : > { %v1760_v14 = vpop.xlane.xlu0 %1759 }
 0x765   : > { %v1768_v15 = vmul.f32 %v4423_v13, %v1760_v14 }
 0x767   : > { %v1769_v16 = vsub.f32 %v1757_v4, %v1768_v15  ;;  %v3191_v4 = vld [vmem:[#allocation13] ss:$0 sm:$0xff] }
 0x769   : > { %v1770_v17 = vmul.f32 %v1769_v16, %v1769_v16 }
 0x76b   : > { %v1771_v18 = vsel %vm1347_vm0, %v1770_v17, 0.0 }
 0x76c   : > { %1772 = vadd.xlane.f32.xlu0 %v1771_v18 }
 0x7df   : > { %v1773_v24 = vpop.xlane.xlu0 %1772 }
 0x7e0   : > { %v1774_v25 = vmul.f32 %v1773_v24, %v4423_v13 }
 0x7e2   : > { %v1775_v26 = vadd.f32 1e-05, %v1774_v25  ;;  %v1925_v25 = vld [vmem:[#allocation14 + $0x4] sm:$0xf] }
 0x7e4   : > { %3219 = vrsqrt.f32 %v1775_v26  ;;  %vm1782_vm5 = vweird.f32 %v1775_v26 }
 0x7ea   : > { %v3220_v27 = vpop.eup %3219 }
 0x7eb   : > { %v1777_v28 = vmul.f32 %v3220_v27, %v1775_v26  ;;  %vm1783_vm4 = vweird.f32 %v3220_v27 }
 0x7ec   : > { %vm1784_vm6 = vmor %vm1782_vm5, %vm1783_vm4 }
 0x7ed   : > { %v1778_v29 = vmul.f32 %v3220_v27, %v1777_v28 }
 0x7ef   : > { %v1779_v30 = vmul.f32 0.5, %v1778_v29 }
 0x7f1   : > { %v1780_v31 = vsub.f32 1.5, %v1779_v30 }
 0x7f3   : > { %v1781_v33 = vmul.f32 %v3220_v27, %v1780_v31 }
 0x7f5   : > { %v1785_v35 = vsel %vm1784_vm6, %v3220_v27, %v1781_v33  ;;  %v2075_v27 = vsel %vm1480_vm2, %v1925_v25, 0 }
 0x7f6   : > { %v1786_v1 = vmul.f32 %v1785_v35, %v1769_v16 }
 0x7f8   : > { %v1791_v37 = vmul.f32 %v3187_v34, %v1786_v1 }
 0x7fa   : > { %v4435_v38 = vadd.f32 %v3188_v36, %v1791_v37  ;;  %v1924_v37 = vld [vmem:[#allocation14] sm:$0xf] }
 0x7fc   : > { %v1797_v39 = vadd.f32 %v4435_v38, %v4349_v2  ;;  %v2937_v2 = vld [vmem:[#allocation11 + $0x8] sm:$0xff] }
 0x7fd   : > { %1911 = vmatpush.bf16.msra.mxu1 %v2937_v2 }
 0x7fe   : > { %v1798_v40 = vpack.c.bf16 %v1797_v39, %v1797_v39  ;;  %v1997_v39 = vsel %vm1480_vm2, %v1924_v37, 0 }
 0x7ff   : > { %2006 = vmatpush.bf16.msrb.mxu0 %v1997_v39 }
 0x800   : > { %2853 = vmatmul.msk.bf16.vlgmr.msrb.gmra.mxu3 %vm1347_vm0, %v1798_v40 }
 0x801   : > { %1912 = vmatpush.bf16.msra.mxu1 %v2936_v51  ;;  %v3192_v51 = vld [vmem:[#allocation16] ss:$0 sm:$0xff] }
 0x804   : > { %2879 = vmatmul.msk.bf16.vlgmr.msra.gmra.mxu1 %vm1347_vm0, %v2925_v59 }
 0x805   : > { %2033 = vmatpush.bf16.xpose.msrb.mxu1 %v2024_v61 }
 0x881   : > { %v1914_v5 = vpop.f32.mrf.mxu1 }
 0x882   : > { %v1915_v6 = vadd.f32 %v3191_v4, %v1914_v5 }
 0x883   : > { %v1831_v53 = vpop.f32.mrf.mxu3 }
 0x884   : > { %v1832_v54 = vadd.f32 %v3190_v52, %v1831_v53  ;;  %v1922_v7 = vpack.c.bf16 %v1915_v6, %v1915_v6  ;;  %v1932_v52 = vadd.f32 %v3192_v51, %v4435_v38 }
 0x886   : > { %v1919_v55 = vpack.c.bf16 %v1832_v54, %v1832_v54  ;;  %v1972_v10 = vunpack.c.l.b16 %v1922_v7 }
 0x888   : > { %v2014_v56 = vunpack.c.l.b16 %v1919_v55  ;;  %2880 = vmatmul.msk.bf16.vlgmr.msra.gmra.mxu2 %vm1445_vm1, %v1919_v55 }
 0x889   : > { %v1916_v8 = vpop.f32.mrf.mxu1 }
 0x88a   : > { %v2015_v57 = vpack.c.b16 %v2014_v56, %v2014_v56  ;;  %v1917_v9 = vadd.f32 %v3191_v4, %v1916_v8 }
 0x88b   : > { %v1833_v58 = vpop.f32.mrf.mxu3 }
 0x88c   : > { %2016 = vrot.lane.b32.xlu0 %v2015_v57, %s3874_s5  ;;  %v1923_v11 = vpack.c.bf16 %v1917_v9, %v1917_v9 }
 0x88e   : > { %v1973_v12 = vunpack.c.l.b16 %v1923_v11 }
 0x890   : > { %v4454_v14 = vpack.c.b16 %v1973_v12, %v1972_v10 }
 0x892   : > { %1986 = vmatpush.bf16.msra.mxu3 %v4454_v14 }
 0x896   : > { %2084 = vmatpush.bf16.msrb.mxu3 %v2075_v27 }
 0x8fe   : > { %v2017_v62 = vpop.permute.xlu0 %2016 }
 0x8ff   : > { %2883 = vmatmul.msk.bf16.vlgmr.msrb.gmra.mxu1 %vm1445_vm1, %v2017_v62 }
 0x90b   : > { %v1953_v63 = vpop.f32.mrf.mxu2 }
 0x90c   : > { %v1958_v0 = vsel %vm1957_vm7, %v1953_v63, -inf }
 0x90d   : > { %1959 = vmax.xlane.f32.xlu1 %v1958_v0 }
 0x913   : > { %v1955_v3 = vpop.f32.mrf.mxu2 }
 0x97c   : > { %v2035_v15 = vpop.f32.mrf.mxu1 }
 0x97d   : > { %v2039_v16 = vsel %vm1957_vm7, %v2035_v15, -inf }
 0x97e   : > { %2040 = vmax.xlane.f32.xlu2 %v2039_v16 }
 0x980   : > { %v1960_v17 = vpop.xlane.xlu1 %1959 }
 0x981   : > { %v1961_v18 = vsub.f32 %v1953_v63, %v1960_v17 }
 0x983   : > { %v1962_v19 = vmul.f32 1.442695, %v1961_v18 }
 0x984   : > { %v2037_v20 = vpop.f32.mrf.mxu1 }
 0x985   : > { %3221 = vpow2.f32 %v1962_v19 }
 0x98b   : > { %v3222_v21 = vpop.eup %3221 }
 0x98c   : > { %v1964_v22 = vsel %vm1957_vm7, %v3222_v21, 0.0 }
 0x98d   : > { %1965 = vadd.xlane.f32.xlu0 %v1964_v22  ;;  %v1927_v22 = vld [vmem:[#allocation14 + $0xc] sm:$0xf] }
 0x996   : > { %2051 = vrot.lane.b32.xlu2 %v4454_v14, %s3874_s5  ;;  %s4620_s5 = sld [smem:[#allocation56_spill]] }
 0x99e   : > { %2091 = vrot.lane.b32.xlu2 %v2015_v57, %s3876_s17 }
 0x9a1   : > { %2168 = vrot.lane.b32.xlu0 %v4440_v49, %s3875_s3 }
 0x9f1   : > { %v2041_v23 = vpop.xlane.xlu2 %2040 }
 0x9f2   : > { %v2042_v24 = vsub.f32 %v2035_v15, %v2041_v23  ;;  %v2225_v23 = vsel %vm1480_vm2, %v1927_v22, 0 }
 0x9f4   : > { %v2043_v26 = vmul.f32 1.442695, %v2042_v24 }
 0x9f6   : > { %3223 = vpow2.f32 %v2043_v26 }
 0x9f9   : > { %v2052_v28 = vpop.permute.xlu2 %2051 }
 0x9fa   : > { %2064 = vmatpush.bf16.msrb.mxu2 %v2052_v28 }
 0x9fc   : > { %v3224_v29 = vpop.eup %3223 }
 0x9fd   : > { %v2045_v30 = vsel %vm1957_vm7, %v3224_v29, 0.0 }
 0x9fe   : > { %2046 = vadd.xlane.f32.xlu1 %v2045_v30 }
 0xa00   : > { %v1966_v31 = vpop.xlane.xlu0 %1965 }
 0xa01   : > { %3225 = vrcp.f32 %v1966_v31  ;;  %v2092_v48 = vpop.permute.xlu2 %2091 }
 0xa07   : > { %v3226_v33 = vpop.eup %3225 }
 0xa08   : > { %v1968_v34 = vmul.f32 %v3226_v33, %v3222_v21 }
 0xa0a   : > { %v1969_v35 = vpack.c.bf16 %v1968_v34, %v1968_v34 }
 0xa0c   : > { %2881 = vmatmul.msk.bf16.vlgmr.msra.gmra.mxu3 %vm1957_vm7, %v1969_v35 }
 0xa13   : > { %v2169_v36 = vpop.permute.xlu0 %2168 }
 0xa14   : > { %v2174_v1 = vsel %vm1445_vm1, %v2169_v36, 0 }
 0xa15   : > { %2183 = vmatpush.bf16.xpose.msra.mxu3 %v2174_v1 }
 0xa17   : > { %2093 = vrot.lane.b32.xlu1 %v4440_v49, %s3876_s17 }
 0xa1f   : > { %2166 = vrot.lane.b32.xlu1 %v2015_v57, %s3875_s3 }
 0xa71   : > { %v2047_v40 = vpop.xlane.xlu1 %2046 }
 0xa72   : > { %3227 = vrcp.f32 %v2047_v40 }
 0xa78   : > { %v3228_v41 = vpop.eup %3227 }
 0xa79   : > { %v2049_v42 = vmul.f32 %v3228_v41, %v3224_v29 }
 0xa7b   : > { %v2050_v43 = vpack.c.bf16 %v2049_v42, %v2049_v42 }
 0xa7d   : > { %2884 = vmatmul.msk.bf16.vlgmr.msrb.gmra.mxu2 %vm1957_vm7, %v2050_v43 }
 0xa89   : > { %v2094_v44 = vpop.permute.xlu1 %2093 }
 0xa8a   : > { %v2099_v45 = vsel %vm1445_vm1, %v2094_v44, 0 }
 0xa8b   : > { %2108 = vmatpush.bf16.xpose.msra.mxu0 %v2099_v45 }
 0xa8f   : > { %v1988_v46 = vpop.f32.mrf.mxu3 }
 0xa90   : > { %v1992_v32 = vpack.c.bf16 %v1988_v46, %v1988_v46 }
 0xa91   : > { %v2167_v55 = vpop.permute.xlu1 %2166 }
 0xa92   : > { %2882 = vmatmul.msk.bf16.vlgmr.msrb.gmra.mxu0 %vm1445_vm1, %v1992_v32  ;;  %v2939_v32 = vld [vmem:[#allocation20 + $0x8] sm:$0xff] }
 0xa97   : > { %v1990_v47 = vpop.f32.mrf.mxu3 }
 0xa98   : > { %v2938_v47 = vld [vmem:[#allocation20] sm:$0xff] }
 0xaa2   : > { %2886 = vmatmul.msk.bf16.vlgmr.msra.gmra.mxu0 %vm1445_vm1, %v2092_v48  ;;  %v2943_v48 = vld [vmem:[%s4620_s5 + $0x18] sm:$0xff] }
 0xb00   : > { %v2066_v49 = vpop.f32.mrf.mxu2 }
 0xb01   : > { %v2070_v50 = vpack.c.bf16 %v2066_v49, %v2066_v49 }
 0xb03   : > { %2885 = vmatmul.msk.bf16.vlgmr.msrb.gmra.mxu3 %vm1445_vm1, %v2070_v50 }
 0xb04   : > { %2356 = vmatpush.bf16.msrb.mxu3 %v2943_v48 }
 0xb08   : > { %v2068_v2 = vpop.f32.mrf.mxu2 }
 0xb09   : > { %v2942_v2 = vld [vmem:[%s4620_s5 + $0x10] sm:$0xff] }
 0xb0a   : > { %2357 = vmatpush.bf16.msrb.mxu3 %v2942_v2 }
 0xb0f   : > { %v2008_v53 = vpop.f32.mrf.mxu0 }
 0xb10   : > { %v2012_v54 = vadd.f32 %v2008_v53, %v1932_v52 }
 0xb13   : > { %2889 = vmatmul.msk.bf16.vlgmr.msra.gmra.mxu3 %vm1445_vm1, %v2167_v55 }
 0xb17   : > { %v2010_v56 = vpop.f32.mrf.mxu0 }
 0xb1f   : > { %v2110_v57 = vpop.f32.mrf.mxu0 }
 0xb20   : > { %v2114_v58 = vsel %vm1957_vm7, %v2110_v57, -inf }
 0xb21   : > { %2115 = vmax.xlane.f32.xlu2 %v2114_v58  ;;  %v3193_v58 = vld [vmem:[#allocation17] ss:$0 sm:$0xff] }
 0xb27   : > { %v2112_v59 = vpop.f32.mrf.mxu0 }
 0xb86   : > { %v2086_v60 = vpop.f32.mrf.mxu3 }
 0xb87   : > { %v2090_v61 = vadd.f32 %v2086_v60, %v2012_v54  ;;  %v3194_v60 = vld [vmem:[#allocation19] ss:$0 sm:$0xff] }
 0xb8e   : > { %v2088_v62 = vpop.f32.mrf.mxu3 }
 0xb94   : > { %v2116_v63 = vpop.xlane.xlu2 %2115 }
 0xb95   : > { %v2117_v0 = vsub.f32 %v2110_v57, %v2116_v63 }
 0xb96   : > { %v2185_v3 = vpop.f32.mrf.mxu3 }
 0xb97   : > { %v2118_v4 = vmul.f32 1.442695, %v2117_v0  ;;  %v2189_v38 = vsel %vm1957_vm7, %v2185_v3, -inf }
 0xb98   : > { %2190 = vmax.xlane.f32.xlu0 %v2189_v38  ;;  %v3195_v38 = vld [vmem:[#allocation22] ss:$0 sm:$0xff] }
 0xb99   : > { %3229 = vpow2.f32 %v2118_v4  ;;  %v2940_v4 = vld [vmem:[%s4620_s5] sm:$0xff] }
 0xb9e   : > { %v2187_v5 = vpop.f32.mrf.mxu3 }
 0xb9f   : > { %v3230_v6 = vpop.eup %3229 }
 0xba0   : > { %v2120_v7 = vsel %vm1957_vm7, %v3230_v6, 0.0 }
 0xba1   : > { %2121 = vadd.xlane.f32.xlu1 %v2120_v7 }
 0xbac   : > { %2126 = vrot.lane.b32.xlu0 %v4454_v14, %s3876_s17 }
 0xbba   : > { %2201 = vrot.lane.b32.xlu1 %v4454_v14, %s3875_s3  ;;  %v1926_v14 = vld [vmem:[#allocation14 + $0x8] sm:$0xf]  ;;  %s1286_s3 = sand.u32 1, %s3813_s10  }
 0xbbb   : > { %v2150_v21 = vsel %vm1480_vm2, %v1926_v14, 0  ;;  %s2798_s17 = sshll.u32 %s1286_s3, 3 }
 0xbbc   : > { %2159 = vmatpush.bf16.msra.mxu2 %v2150_v21  ;;  %s1288_s11 = scalar_lea.vmem [#allocation28], %s2798_s17  ;;  %s2433_s17 = scalar_lea.sflag [#allocation4], %s1286_s3 }
 0xbbd   : > { %s2449_s2 = sshll.u32 %s1288_s11, 4  ;;  %s2450_s2 = int_to_ptr.vmem [resolvable:$true] %s2449_s2 }
 0xbc0   : > { %2303 = vmatpush.bf16.msrb.mxu2 %v2939_v32 }
 0xbc4   : > { %2304 = vmatpush.bf16.msrb.mxu2 %v2938_v47 }
 0xc0b   : > { %v2191_v8 = vpop.xlane.xlu0 %2190 }
 0xc0c   : > { %v2192_v9 = vsub.f32 %v2185_v3, %v2191_v8  ;;  %v2941_v3 = vld [vmem:[%s4620_s5 + $0x8] sm:$0xff]  ;;  %s3737_s5 = sshra.s32 %s2452_s4, 4  ;;  %s3738_s5 = int_to_ptr.hbm [resolvable:$true] %s3737_s5 }
 0xc0d   : > { %2358 = vmatpush.bf16.msrb.mxu3 %v2941_v3  ;;  %s3739_s6 = scalar_lea.hbm %s3738_s5, 8  ;;  %p3744_p13 = scmp.lt.s32.totalorder %s3738_s5, %s4046_s29 }
 0xc0e   : > { %v2193_v10 = vmul.f32 1.442695, %v2192_v9  ;;  %p3740_p9 = scmp.ne.s32.totalorder %s3738_s5, %s3739_s6  ;;  %p3745_p1 = scmp.lt.s32.totalorder %s3743_s8, %s3739_s6 }
 0xc10   : > { %3231 = vpow2.f32 %v2193_v10  ;;  %v3196_v10 = vld [vmem:[#allocation23] ss:$0 sm:$0xff]  ;;  %p3741_p12 = pnand %p3740_p9, %p4091_p5  ;;  %p3746_p2 = por %p3745_p1, %p3744_p13 }
 0xc11   : > { %2359 = vmatpush.bf16.msrb.mxu3 %v2940_v4 }
 0xc12   : > { %p3742_p0 = pneg %p3741_p12 }
 0xc14   : > { %v2122_v11 = vpop.xlane.xlu1 %2121  ;;  %p3747_p3 = pnand %p3746_p2, %p3742_p0 }
 0xc15   : > { %3233 = vrcp.f32 %v2122_v11 }
 0xc16   : > { %v3232_v12 = vpop.eup %3231 }
 0xc17   : > { %v2195_v15 = vsel %vm1957_vm7, %v3232_v12, 0.0 }
 0xc18   : > { %2196 = vadd.xlane.f32.xlu2 %v2195_v15 }
 0xc1b   : > { %v3234_v16 = vpop.eup %3233 }
 0xc1c   : > { %v2124_v17 = vmul.f32 %v3234_v16, %v3230_v6 }
 0xc1e   : > { %v2127_v18 = vpop.permute.xlu0 %2126  ;;  %v2125_v19 = vpack.c.bf16 %v2124_v17, %v2124_v17 }
 0xc1f   : > { %2139 = vmatpush.bf16.msra.mxu1 %v2127_v18 }
 0xc22   : > { %2887 = vmatmul.msk.bf16.vlgmr.msra.gmra.mxu1 %vm1957_vm7, %v2125_v19 }
 0xc23   : > { %2234 = vmatpush.bf16.msrb.mxu1 %v2225_v23 }
 0xc2c   : > { %v2202_v20 = vpop.permute.xlu1 %2201 }
 0xc2d   : > { %2214 = vmatpush.bf16.msrb.mxu0 %v2202_v20 }
 0xc8b   : > { %v2197_v24 = vpop.xlane.xlu2 %2196 }
 0xc8c   : > { %3235 = vrcp.f32 %v2197_v24 }
 0xc92   : > { %v3236_v25 = vpop.eup %3235 }
 0xc93   : > { %v2199_v26 = vmul.f32 %v3236_v25, %v3232_v12 }
 0xc95   : > { %v2200_v27 = vpack.c.bf16 %v2199_v26, %v2199_v26 }
 0xc97   : > { %2890 = vmatmul.msk.bf16.vlgmr.msrb.gmra.mxu0 %vm1957_vm7, %v2200_v27 }
 0xc9f   : > { %v2141_v28 = vpop.f32.mrf.mxu1 }
 0xca0   : > { %v2145_v29 = vpack.c.bf16 %v2141_v28, %v2141_v28 }
 0xca2   : > { %2888 = vmatmul.msk.bf16.vlgmr.msra.gmra.mxu2 %vm1445_vm1, %v2145_v29 }
 0xca7   : > { %v2143_v30 = vpop.f32.mrf.mxu1 }
 0xd14   : > { %v2216_v31 = vpop.f32.mrf.mxu0 }
 0xd15   : > { %v2220_v33 = vpack.c.bf16 %v2216_v31, %v2216_v31  ;;  %v3197_v31 = vld [vmem:[#allocation25] ss:$0 sm:$0xff] }
 0xd17   : > { %2891 = vmatmul.msk.bf16.vlgmr.msrb.gmra.mxu1 %vm1445_vm1, %v2220_v33 }
 0xd1c   : > { %v2218_v34 = vpop.f32.mrf.mxu0 }
 0xd25   : > { %v2161_v35 = vpop.f32.mrf.mxu2 }
 0xd26   : > { %v2165_v36 = vadd.f32 %v2161_v35, %v2090_v61  ;;  %v3198_v35 = vld [vmem:[#allocation26] ss:$0 sm:$0xff] }
 0xd2d   : > { %v2163_v1 = vpop.f32.mrf.mxu2 }
 0xd94   : > { %v2236_v37 = vpop.f32.mrf.mxu1 }
 0xd95   : > { %v2240_v39 = vadd.f32 %v2236_v37, %v2165_v36 }
 0xd97   : > { %v2241_v40 = vsel %vm1347_vm0, %v2240_v39, 0.0 }
 0xd98   : > { %2242 = vadd.xlane.f32.xlu2 %v2241_v40 }
 0xd9c   : > { %v2238_v41 = vpop.f32.mrf.mxu1 }
 0xe0b   : > { %v2243_v42 = vpop.xlane.xlu2 %2242 }
 0xe0c   : > { %v2244_v43 = vmul.f32 %v2243_v42, %v4423_v13 }
 0xe0e   : > { %v2245_v44 = vsub.f32 %v2240_v39, %v2244_v43 }
 0xe10   : > { %v2246_v45 = vmul.f32 %v2245_v44, %v2245_v44 }
 0xe12   : > { %v2247_v46 = vsel %vm1347_vm0, %v2246_v45, 0.0 }
 0xe13   : > { %2248 = vadd.xlane.f32.xlu2 %v2247_v46 }
 0xe86   : > { %v2249_v49 = vpop.xlane.xlu2 %2248 }
 0xe87   : > { %v2250_v50 = vmul.f32 %v2249_v49, %v4423_v13 }
 0xe89   : > { %v2251_v51 = vadd.f32 1e-05, %v2250_v50 }
 0xe8b   : > { %3237 = vrsqrt.f32 %v2251_v51  ;;  %vm2258_vm9 = vweird.f32 %v2251_v51 }
 0xe91   : > { %v3238_v52 = vpop.eup %3237 }
 0xe92   : > { %v2253_v53 = vmul.f32 %v3238_v52, %v2251_v51  ;;  %vm2259_vm8 = vweird.f32 %v3238_v52 }
 0xe93   : > { %vm2260_vm10 = vmor %vm2258_vm9, %vm2259_vm8 }
 0xe94   : > { %v2254_v54 = vmul.f32 %v3238_v52, %v2253_v53 }
 0xe96   : > { %v2255_v55 = vmul.f32 0.5, %v2254_v54 }
 0xe98   : > { %v2256_v56 = vsub.f32 1.5, %v2255_v55 }
 0xe9a   : > { %v2257_v57 = vmul.f32 %v3238_v52, %v2256_v56 }
 0xe9c   : > { %v2261_v59 = vsel %vm2260_vm10, %v3238_v52, %v2257_v57 }
 0xe9d   : > { %v2262_v61 = vmul.f32 %v2261_v59, %v2245_v44 }
 0xe9f   : > { %v2267_v62 = vmul.f32 %v3193_v58, %v2262_v61 }
 0xea1   : > { %v2272_v63 = vadd.f32 %v3194_v60, %v2267_v62 }
 0xea3   : > { %v2273_v0 = vpack.c.bf16 %v2272_v63, %v2272_v63 }
 0xea5   : > { %2900 = vmatmul.msk.bf16.vlgmr.msrb.gmra.mxu2 %vm1347_vm0, %v2273_v0 }
 0xf28   : > { %v2306_v5 = vpop.f32.mrf.mxu2 }
 0xf29   : > { %v2307_v6 = vadd.f32 %v3195_v38, %v2306_v5 }
 0xf2b   : > { %v2310_v7 = vmax.f32 %v2307_v6, 0.0 }
 0xf2d   : > { %v2311_v8 = vpack.c.bf16 %v2310_v7, %v2310_v7 }
 0xf2f   : > { %2917 = vmatmul.msk.bf16.vlgmr.msrb.gmra.mxu3 %vm2348_vm11, %v2311_v8 }
 0xf30   : > { %v2308_v9 = vpop.f32.mrf.mxu2 }
 0xfb2   : > { %v2361_v11 = vpop.f32.mrf.mxu3 }
 0xfb3   : > { %v2362_v12 = vadd.f32 %v3196_v10, %v2361_v11 }
 0xfb5   : > { %v2365_v15 = vadd.f32 %v2362_v12, %v2272_v63 }
 0xfb7   : > { %v2366_v16 = vsel %vm1347_vm0, %v2365_v15, 0.0 }
 0xfb8   : > { %2367 = vadd.xlane.f32.xlu0 %v2366_v16 }
 0xfba   : > { %v2363_v17 = vpop.f32.mrf.mxu3 }
0x102b   : > { %v2368_v18 = vpop.xlane.xlu0 %2367 }
0x102c   : > { %v2369_v19 = vmul.f32 %v2368_v18, %v4423_v13 }
0x102e   : > { %v2370_v20 = vsub.f32 %v2365_v15, %v2369_v19 }
0x1030   : > { %v2371_v14 = vmul.f32 %v2370_v20, %v2370_v20 }
0x1032   : > { %v2372_v21 = vsel %vm1347_vm0, %v2371_v14, 0.0 }
0x1033   : > { %2373 = vadd.xlane.f32.xlu2 %v2372_v21 }
0x10a6   : > { %v2374_v22 = vpop.xlane.xlu2 %2373 }
0x10a7   : > { %v2375_v23 = vmul.f32 %v2374_v22, %v4423_v13 }
0x10a9   : > { %v2376_v24 = vadd.f32 1e-05, %v2375_v23 }
0x10ab   : > { %3239 = vrsqrt.f32 %v2376_v24  ;;  %vm2383_vm13 = vweird.f32 %v2376_v24 }
0x10b1   : > { %v3240_v25 = vpop.eup %3239 }
0x10b2   : > { %v2378_v26 = vmul.f32 %v3240_v25, %v2376_v24  ;;  %vm2384_vm12 = vweird.f32 %v3240_v25 }
0x10b3   : > { %vm2385_vm14 = vmor %vm2383_vm13, %vm2384_vm12 }
0x10b4   : > { %v2379_v27 = vmul.f32 %v3240_v25, %v2378_v26 }
0x10b6   : > { %v2380_v28 = vmul.f32 0.5, %v2379_v27 }
0x10b8   : > { %v2381_v29 = vsub.f32 1.5, %v2380_v28 }
0x10ba   : > { %v2382_v30 = vmul.f32 %v3240_v25, %v2381_v29 }
0x10bc   : > { %v2386_v33 = vsel %vm2385_vm14, %v3240_v25, %v2382_v30 }
0x10bd   : > { %v2387_v34 = vmul.f32 %v2386_v33, %v2370_v20 }
0x10bf   : > { %v2392_v36 = vmul.f32 %v3197_v31, %v2387_v34 }
0x10c1   : > { %v2397_v1 = vadd.f32 %v3198_v35, %v2392_v36 }
0x10c3   : > { %v2399_v37 = vsel %vm1347_vm0, %v2397_v1, 0.0  ;;  %2398 = vst.msk [vmem:[%s1288_s11] sm:$0xff] %vm1347_vm0, %v2397_v1 }
0x10c4   : > { %2400 = vadd.xlane.f32.xlu1 %v2399_v37 }
0x1137   : > { %v2401_v39 = vpop.xlane.xlu1 %2400 }
0x1138   : > { %v2402_v40 = vmul.f32 %v2401_v39, %v4423_v13 }
0x113a   : > { %v2403_v41 = vsub.f32 %v2397_v1, %v2402_v40 }
0x113c   : > { %v2404_v42 = vmul.f32 %v2403_v41, %v2403_v41 }
0x113e   : > { %v2405_v43 = vsel %vm1347_vm0, %v2404_v42, 0.0 }
0x113f   : > { %2406 = vadd.xlane.f32.xlu2 %v2405_v43 }
0x1140   : > { %3750 = shalt.err (!%p3747_p3)
}
0x1141   : > { %s4621_s0 = sld [smem:[#allocation59_spill]] }
0x1142   : > { %3008 = dma.vmem_to_hbm [thread:$0]  (%p4091_p5), %s2450_s2, 128, %s2452_s4, %s2433_s17  }
0x1143   : > { %s4622_s11 = sld [smem:[#allocation60_spill]] }
0x1144   : > { %s4623_s3 = sld [smem:[#allocation61_spill]] }
0x1147   : > { %v3199_v51 = vld [vmem:[%s4621_s0] ss:$0 sm:$0xff] }
0x1149   : > { %v3200_v53 = vld [vmem:[%s4622_s11] ss:$0 sm:$0xff] }
0x114a   : > { %s1316_s6 = scalar_lea.vmem %s4623_s3, %s4340_s7 }
0x11b2   : > { %v2407_v44 = vpop.xlane.xlu2 %2406 }
0x11b3   : > { %v2408_v45 = vmul.f32 %v2407_v44, %v4423_v13 }
0x11b5   : > { %v2409_v46 = vadd.f32 1e-05, %v2408_v45 }
0x11b7   : > { %3241 = vrsqrt.f32 %v2409_v46  ;;  %vm2416_vm1 = vweird.f32 %v2409_v46 }
0x11bd   : > { %v3242_v32 = vpop.eup %3241 }
0x11be   : > { %v2411_v47 = vmul.f32 %v3242_v32, %v2409_v46  ;;  %vm2417_vm15 = vweird.f32 %v3242_v32 }
0x11bf   : > { %vm2418_vm2 = vmor %vm2416_vm1, %vm2417_vm15 }
0x11c0   : > { %v2412_v48 = vmul.f32 %v3242_v32, %v2411_v47 }
0x11c2   : > { %v2413_v49 = vmul.f32 0.5, %v2412_v48 }
0x11c4   : > { %v2414_v50 = vsub.f32 1.5, %v2413_v49 }
0x11c6   : > { %v2415_v2 = vmul.f32 %v3242_v32, %v2414_v50 }
0x11c8   : > { %v2419_v52 = vsel %vm2418_vm2, %v3242_v32, %v2415_v2 }
0x11c9   : > { %v2420_v54 = vmul.f32 %v2419_v52, %v2403_v41 }
0x11cb   : > { %v2425_v55 = vmul.f32 %v3199_v51, %v2420_v54 }
0x11cd   : > { %v2430_v13 = vadd.f32 %v3200_v53, %v2425_v55 }
0x11cf   : > { %2431 = vst.msk [vmem:[%s1316_s6] sm:$0xff] %vm1347_vm0, %v2430_v13 }
0x11d0 PF: > { %s4624_s4 = sld [smem:[#allocation64_spill]] }
0x11d1   : > { %s4625_s28 = sld [smem:[#allocation62_spill]] }
0x11d6   : > { %p3095_p5 = scmp.ge.s32.totalorder %s4624_s4, 2 }
0x11d7   : > { %s2466_s8 = sand.u32 1, %s4625_s28  }
0x11d8   : > { %p3060_p4 = pnand %p3095_p5, %p4095_p6  ;;  %s2467_s5 = scalar_lea.sflag [#allocation4], %s2466_s8 }
0x11da   : > { %p3061_p7 = pneg %p3060_p4 }
0x11dc   : > { %3804 = dma.done.wait (%p3061_p7), %s2467_s5, 128  }
0x11dd   : > { %3806 = vsyncadd (%p3061_p7), %s2467_s5, 4294967168  ;;  %s4627_s15 = sld [smem:[#allocation65_spill]]  ;;  %s4630_s7 = smov %s3813_s10 }
0x11de   : > { %s4628_s1 = sld [smem:[#allocation63_spill]] }
0x11df   : > { %s4629_s11 = sld [smem:[#allocation66_spill]] }
0x11e3   : > { %p87_p8 = scmp.ge.s32.totalorder %s4627_s15, 4  }
0x11e4   : > { %s4631_s10 = smov %s4628_s1 }
0x11e5   :  { %89 = sbr.rel (!%p87_p8) target bundleno = 74 (0x4a), region = 302 }
0x11ea   :  { %2480 = vsyncpa [#allocation3], 1 }
0x11eb   :  { %2482 = vsyncpa [#allocation3 + $0x1], 1 }
0x11ec   :  { %2483 = vsyncpa [#allocation6], 1 }
0x11ed   :  { %2484 = vsyncpa [#allocation9], 1 }
0x11ee   :  { %2485 = vsyncpa [#allocation12], 1 }
0x11ef   :  { %2486 = vsyncpa [#allocation15], 1 }
0x11f0   :  { %2487 = vsyncpa [#allocation18], 1 }
0x11f1   :  { %2488 = vsyncpa [#allocation21], 1 }
0x11f2   :  { %2489 = vsyncpa [#allocation24], 1 }
0x11f3   :  { %2490 = vsyncpa [#allocation27], 1 }
0x11f4   :  { %2491 = vsyncpa [#allocation4], 1 }
0x11f5   :  { %2493 = vsyncpa [#allocation4 + $0x1], 1 }

</bundles_post_ra>
